<compile_context>
chip_gen: v7x
topology: tpu7x:2x2x1
jax: 0.10.0
libtpu: 0.0.40
codegen_flags: <defaults>
</compile_context>

<pallas_src>
import functools
import math

import jax
import jax.numpy as jnp
import numpy as np
from jax.experimental import pallas as pl
from jax.experimental.pallas import tpu as pltpu

C1 = 32          # conv1 output channels
C2 = 64          # conv2 output channels
K = 3            # conv kernel size (padding 1, stride 1)
DH = 128         # fc1 hidden width
NCLASS = 10
NCLASS_PAD = 128  # classes padded to one full lane tile (dense final store)
NPAD = 8         # batch rows padded to one sublane tile for the fc/softmax tail


def _round_up(v, m):
    return (v + m - 1) // m * m


def _layout(n, img):
    """Static lane-layout constants for the fused kernel.

    Activations are channel-major: channels on sublanes, a flattened,
    zero-padded (image, row, col) coordinate on lanes.  With one zero pad
    row/col around every image, a conv tap (dy, dx) is a static lane slice at
    offset dy*row_stride + dx and a 2x2 max-pool is the max of 4 such slices.
    """
    rs1 = img + 2                 # conv1 row stride (padded row length)
    is1 = rs1 * rs1               # per-image stride in the conv1 coordinate
    wm1 = n * is1                 # width of the pool1 "max" array
    wz1 = wm1 + rs1 + 1           # width of the conv1 output
    offx = rs1 + 1                # where coordinate 0 sits inside xbuf
    wxb = _round_up(wz1 + 2 * (rs1 + 1), 128)

    hp = img // 2
    rsp = hp + 2                  # conv2 row stride
    isp = rsp * rsp
    wm2 = n * isp
    wz2 = wm2 + rsp + 1
    off1 = rsp + 1                # where coordinate 0 sits inside pool1
    wp1 = _round_up(wz2 + 2 * (rsp + 1), 128)

    hq = img // 4
    s2 = hq * hq
    return dict(rs1=rs1, is1=is1, wm1=wm1, wz1=wz1, offx=offx, wxb=wxb,
                hp=hp, rsp=rsp, isp=isp, wm2=wm2, wz2=wz2, off1=off1, wp1=wp1,
                hq=hq, s2=s2)


# ---------------------------------------------------------------------------
# The fused kernel: conv1+ReLU+pool1 -> conv2+ReLU+pool2 -> fc1+ReLU -> fc2 ->
# softmax, all in one invocation, everything resident in VMEM.
# ---------------------------------------------------------------------------
def _dcnn_kernel(xbuf_ref, w1_ref, b1_ref, sel1_ref, w2_ref, b2_ref, sel2_ref,
                 wf1_ref, bf1_ref, wf2_ref, bf2_ref, o_ref, *,
                 rs1, wz1, wm1, rsp, off1, wz2, wm2, offx, s2):
    f32 = jnp.float32

    # ---- conv1 (1 -> 32 ch): 9 shifted slices of the zero-padded input row,
    #      accumulated as outer products (single input channel => cheaper on
    #      the VPU than 9 tiny MXU pushes).  Bias + ReLU applied once.
    xrow = xbuf_ref[...]                                      # (1, WXB)
    w1 = w1_ref[...]                                          # (C1, 9)
    z1 = None
    for ky in range(K):
        for kx in range(K):
            start = offx + (ky - 1) * rs1 + (kx - 1)
            src = xrow[:, start:start + wz1]                  # (1, WZ1)
            tap = ky * K + kx
            term = w1[:, tap:tap + 1] * src                   # (C1, WZ1)
            z1 = term if z1 is None else z1 + term
    r1 = jnp.maximum(z1 + b1_ref[...], 0.0)                   # (C1, WZ1)

    # ---- maxpool1 2x2: max of 4 shifted slices, then a 0/1 pick-matmul that
    #      compacts the pooled pixels into the zero-padded conv2 lane layout.
    m1 = jnp.maximum(
        jnp.maximum(r1[:, 0:wm1], r1[:, 1:1 + wm1]),
        jnp.maximum(r1[:, rs1:rs1 + wm1], r1[:, rs1 + 1:rs1 + 1 + wm1]))
    pool1 = jnp.dot(m1, sel1_ref[...], preferred_element_type=f32)  # (C1, WP1)

    # ---- conv2 (32 -> 64 ch): 9 shifted slices of pool1 stacked along the
    #      sublane axis (tile-aligned) -> ONE (C2, 9*C1) @ (9*C1, WZ2) matmul.
    taps2 = [pool1[:, off1 + dy * rsp + dx: off1 + dy * rsp + dx + wz2]
             for dy in (-1, 0, 1) for dx in (-1, 0, 1)]
    cols2 = jnp.concatenate(taps2, axis=0)                    # (9*C1, WZ2)
    z2 = jnp.dot(w2_ref[...], cols2, preferred_element_type=f32)    # (C2, WZ2)
    r2 = jnp.maximum(z2 + b2_ref[...], 0.0)

    # ---- maxpool2 2x2 (max of 4 shifted slices) + pick-matmul.  The pick is
    #      A @ B^T (NT dot_general) so it simultaneously flips the layout from
    #      channel-major to (spatial*batch rows, channel lanes) for fc1.
    m2 = jnp.maximum(
        jnp.maximum(r2[:, 0:wm2], r2[:, 1:1 + wm2]),
        jnp.maximum(r2[:, rsp:rsp + wm2], r2[:, rsp + 1:rsp + 1 + wm2]))
    pool2 = jax.lax.dot_general(sel2_ref[...], m2,
                                (((1,), (1,)), ((), ())),
                                preferred_element_type=f32)   # (s2*NPAD, C2)

    # ---- fc1.  The torch NCHW flatten is folded into an offline row
    #      permutation of the fc1 weight; the (spatial, channel) contraction is
    #      an unrolled sum of (NPAD, C2) @ (C2, DH) block matmuls.
    # TODO(synk): a single K=s2*C2 matmul would need a sublane<->lane relayout
    # of pool2 that Mosaic lowers poorly at this size; these blocks are a tiny
    # fraction of the kernel's MXU time, so they are kept.
    acc = None
    for s in range(s2):
        part = jnp.dot(pool2[s * NPAD:(s + 1) * NPAD, :],
                       wf1_ref[s * C2:(s + 1) * C2, :],
                       preferred_element_type=f32)
        acc = part if acc is None else acc + part
    h = jnp.maximum(acc + bf1_ref[...], 0.0)                  # (NPAD, DH)

    # ---- fc2 (classes padded to 128 lanes with a -1e30 bias) + softmax.
    logits = jnp.dot(h, wf2_ref[...], preferred_element_type=f32) + bf2_ref[...]
    mx = jnp.max(logits, axis=-1, keepdims=True)
    e = jnp.exp(logits - mx)
    denom = jnp.sum(e, axis=-1, keepdims=True)
    inv = pl.reciprocal(denom, approx=True)                   # EUP slot
    inv = inv * (2.0 - denom * inv)                           # 1 Newton step -> ~f32 exact
    o_ref[...] = e * inv                                      # dense (NPAD, 128) store


# ---------------------------------------------------------------------------
# Forward pass (equivalent to DCNN.forward)
# ---------------------------------------------------------------------------
def dcnn_forward(x_nchw, params):
    x = x_nchw.astype(jnp.float32)
    n, cin, ih, iw = x.shape
    assert cin == 1 and ih == iw and ih % 4 == 0 and n <= NPAD
    L = _layout(n, ih)
    assert params["sel1"].shape == (L["wm1"], L["wp1"])
    assert params["sel2"].shape == (L["s2"] * NPAD, L["wm2"])

    # Host-side prep (the only glue left): pad + flatten the raw input into the
    # kernel's zero-padded lane layout.
    xpad = jnp.pad(x[:, 0], ((0, 0), (1, 1), (1, 1)))         # (n, img+2, img+2)
    xflat = xpad.reshape(1, n * L["is1"])
    xbuf = jnp.pad(xflat,
                   ((0, 0), (L["offx"], L["wxb"] - L["offx"] - n * L["is1"])))

    kern = functools.partial(
        _dcnn_kernel,
        rs1=L["rs1"], wz1=L["wz1"], wm1=L["wm1"], rsp=L["rsp"],
        off1=L["off1"], wz2=L["wz2"], wm2=L["wm2"], offx=L["offx"],
        s2=L["s2"])

    args = (xbuf, params["w1"], params["b1"], params["sel1"], params["w2"],
            params["b2"], params["sel2"], params["wf1p"], params["bf1"],
            params["wf2p"], params["bf2p"])
    out = pl.pallas_call(
        kern,
        out_shape=jax.ShapeDtypeStruct((NPAD, NCLASS_PAD), jnp.float32),
        # No grid: whole arrays resident & single-buffered in VMEM (~1.5 MiB).
        in_specs=[pl.BlockSpec(memory_space=pltpu.MemorySpace.VMEM)] * len(args),
        out_specs=pl.BlockSpec(memory_space=pltpu.MemorySpace.VMEM),
    )(*args)
    return out[:n, :NCLASS]


# ---------------------------------------------------------------------------
# Pure-JAX reference (torch-layout weights, NCHW) for validation
# ---------------------------------------------------------------------------
def reference_forward(x, p):
    prec = jax.lax.Precision.HIGHEST
    y = jax.lax.conv_general_dilated(
        x.astype(jnp.float32), p["conv1_w"], (1, 1), ((1, 1), (1, 1)),
        dimension_numbers=("NCHW", "OIHW", "NCHW"), precision=prec,
    ) + p["conv1_b"].reshape(1, -1, 1, 1)
    y = jnp.maximum(y, 0.0)
    y = jax.lax.reduce_window(y, -jnp.inf, jax.lax.max, (1, 1, 2, 2), (1, 1, 2, 2), "VALID")
    y = jax.lax.conv_general_dilated(
        y, p["conv2_w"], (1, 1), ((1, 1), (1, 1)),
        dimension_numbers=("NCHW", "OIHW", "NCHW"), precision=prec,
    ) + p["conv2_b"].reshape(1, -1, 1, 1)
    y = jnp.maximum(y, 0.0)
    y = jax.lax.reduce_window(y, -jnp.inf, jax.lax.max, (1, 1, 2, 2), (1, 1, 2, 2), "VALID")
    flat = y.reshape(y.shape[0], -1)                          # torch Flatten on NCHW
    h = jnp.maximum(jnp.dot(flat, p["fc1_w"], precision=prec) + p["fc1_b"], 0.0)
    logits = jnp.dot(h, p["fc2_w"], precision=prec) + p["fc2_b"]
    return jax.nn.softmax(logits, axis=1)


# ---------------------------------------------------------------------------
# Deterministic parameter init (torch layouts) + offline kernel-layout prep
# ---------------------------------------------------------------------------
def init_params(key, img_size, batch):
    hq = img_size // 4
    s2 = hq * hq
    d_flat = C2 * s2
    ks = jax.random.split(key, 8)

    conv1_w = jax.random.normal(ks[0], (C1, 1, K, K), jnp.float32) * 0.2
    conv1_b = jax.random.normal(ks[1], (C1,), jnp.float32) * 0.05
    conv2_w = jax.random.normal(ks[2], (C2, C1, K, K), jnp.float32) / math.sqrt(C1 * K * K)
    conv2_b = jax.random.normal(ks[3], (C2,), jnp.float32) * 0.05
    fc1_w = jax.random.normal(ks[4], (d_flat, DH), jnp.float32) / math.sqrt(d_flat)
    fc1_b = jax.random.normal(ks[5], (DH,), jnp.float32) * 0.01
    fc2_w = jax.random.normal(ks[6], (DH, NCLASS), jnp.float32) / math.sqrt(DH)
    fc2_b = jax.random.normal(ks[7], (NCLASS,), jnp.float32) * 0.01

    # ---- one-time offline weight re-layouts for the fused kernel ------------
    w1 = conv1_w.reshape(C1, K * K)                                   # (32, 9)
    b1 = conv1_b.reshape(C1, 1)
    # conv2 taps: [c2, (ky*3+kx)*C1 + c1]
    w2 = jnp.transpose(conv2_w, (0, 2, 3, 1)).reshape(C2, K * K * C1)  # (64, 288)
    b2 = conv2_b.reshape(C2, 1)
    # fold torch NCHW flatten (c2*s2 + s) into an fc1 row permutation (s*C2+c2)
    wf1p = jnp.transpose(fc1_w.reshape(C2, s2, DH), (1, 0, 2)).reshape(d_flat, DH)
    bf1 = fc1_b.reshape(1, DH)
    wf2p = jnp.zeros((DH, NCLASS_PAD), jnp.float32).at[:, :NCLASS].set(fc2_w)
    bf2p = jnp.full((1, NCLASS_PAD), -1e30, jnp.float32).at[0, :NCLASS].set(fc2_b)

    # ---- 0/1 "pick" matrices for the two max-pools (built offline).
    #      sel1 also re-packs into the zero-padded conv2 lane layout,
    #      sel2 also flips channel-major -> (spatial*batch, channel) for fc1.
    L = _layout(batch, img_size)
    sel1 = np.zeros((L["wm1"], L["wp1"]), np.float32)
    for nb in range(batch):
        for yp in range(L["hp"]):
            for xp in range(L["hp"]):
                j = nb * L["is1"] + (2 * yp + 1) * L["rs1"] + (2 * xp + 1)
                q = L["off1"] + nb * L["isp"] + (yp + 1) * L["rsp"] + (xp + 1)
                sel1[j, q] = 1.0
    sel2 = np.zeros((L["s2"] * NPAD, L["wm2"]), np.float32)
    for nb in range(batch):
        for yq in range(L["hq"]):
            for xq in range(L["hq"]):
                s = yq * L["hq"] + xq
                j = nb * L["isp"] + (2 * yq + 1) * L["rsp"] + (2 * xq + 1)
                sel2[s * NPAD + nb, j] = 1.0

    return dict(conv1_w=conv1_w, conv1_b=conv1_b, conv2_w=conv2_w, conv2_b=conv2_b,
                fc1_w=fc1_w, fc1_b=fc1_b, fc2_w=fc2_w, fc2_b=fc2_b,
                w1=w1, b1=b1, w2=w2, b2=b2, wf1p=wf1p, bf1=bf1,
                wf2p=wf2p, bf2p=bf2p,
                sel1=jnp.asarray(sel1), sel2=jnp.asarray(sel2))


if __name__ == "__main__":
    img_size = 16      # small test shape (DCNN default is 28); any multiple of 4 works
    batch = 2

    root = jax.random.PRNGKey(0)
    k_x, k_p = jax.random.split(root)
    x = jax.random.normal(k_x, (batch, 1, img_size, img_size), jnp.float32)
    params = init_params(k_p, img_size, batch)

    fwd = jax.jit(dcnn_forward)
    out = jax.block_until_ready(fwd(x, params))

    assert out.shape == (batch, NCLASS)
    assert bool(jnp.all(jnp.isfinite(out)))
    # approx-reciprocal + 1 Newton step: rows sum to 1 within ~1e-5..1e-4
    assert jnp.allclose(jnp.sum(out, axis=1), 1.0, atol=1e-4)

    ref = reference_forward(x, params)
    max_err = float(jnp.max(jnp.abs(out - ref)))
    assert max_err < 2e-3, f"max abs diff vs reference = {max_err}"

    print("KERNEL_OK")
</pallas_src>

<mosaic_0001>
module attributes {stable_mosaic.version = 11 : i64} {
  func.func @_dcnn_kernel(%arg0: memref<1x768xf32, #tpu.memory_space<vmem>>, %arg1: memref<32x9xf32, #tpu.memory_space<vmem>>, %arg2: memref<32x1xf32, #tpu.memory_space<vmem>>, %arg3: memref<648x256xf32, #tpu.memory_space<vmem>>, %arg4: memref<64x288xf32, #tpu.memory_space<vmem>>, %arg5: memref<64x1xf32, #tpu.memory_space<vmem>>, %arg6: memref<128x200xf32, #tpu.memory_space<vmem>>, %arg7: memref<1024x128xf32, #tpu.memory_space<vmem>>, %arg8: memref<1x128xf32, #tpu.memory_space<vmem>>, %arg9: memref<128x128xf32, #tpu.memory_space<vmem>>, %arg10: memref<1x128xf32, #tpu.memory_space<vmem>>, %arg11: memref<8x128xf32, #tpu.memory_space<vmem>>) attributes {dimension_semantics = [], scalar_prefetch = 0 : i64, scratch_operands = 0 : i64, tpu.core_type = #tpu.core_type<tc>} {
    %c0 = arith.constant 0 : index
    %c0_0 = arith.constant 0 : index
    %0 = vector.load %arg0[%c0, %c0_0] : memref<1x768xf32, #tpu.memory_space<vmem>>, vector<1x768xf32>
    %c0_1 = arith.constant 0 : index
    %c0_2 = arith.constant 0 : index
    %1 = vector.load %arg1[%c0_1, %c0_2] : memref<32x9xf32, #tpu.memory_space<vmem>>, vector<32x9xf32>
    %2 = vector.extract_strided_slice %0 {offsets = [0, 0], sizes = [1, 667], strides = [1, 1]} : vector<1x768xf32> to vector<1x667xf32>
    %3 = vector.extract_strided_slice %1 {offsets = [0, 0], sizes = [32, 1], strides = [1, 1]} : vector<32x9xf32> to vector<32x1xf32>
    %4 = vector.broadcast %3 : vector<32x1xf32> to vector<32x667xf32>
    %5 = vector.broadcast %2 : vector<1x667xf32> to vector<32x667xf32>
    %6 = arith.mulf %4, %5 : vector<32x667xf32>
    %7 = vector.extract_strided_slice %0 {offsets = [0, 1], sizes = [1, 667], strides = [1, 1]} : vector<1x768xf32> to vector<1x667xf32>
    %8 = vector.extract_strided_slice %1 {offsets = [0, 1], sizes = [32, 1], strides = [1, 1]} : vector<32x9xf32> to vector<32x1xf32>
    %9 = vector.broadcast %8 : vector<32x1xf32> to vector<32x667xf32>
    %10 = vector.broadcast %7 : vector<1x667xf32> to vector<32x667xf32>
    %11 = arith.mulf %9, %10 : vector<32x667xf32>
    %12 = arith.addf %6, %11 : vector<32x667xf32>
    %13 = vector.extract_strided_slice %0 {offsets = [0, 2], sizes = [1, 667], strides = [1, 1]} : vector<1x768xf32> to vector<1x667xf32>
    %14 = vector.extract_strided_slice %1 {offsets = [0, 2], sizes = [32, 1], strides = [1, 1]} : vector<32x9xf32> to vector<32x1xf32>
    %15 = vector.broadcast %14 : vector<32x1xf32> to vector<32x667xf32>
    %16 = vector.broadcast %13 : vector<1x667xf32> to vector<32x667xf32>
    %17 = arith.mulf %15, %16 : vector<32x667xf32>
    %18 = arith.addf %12, %17 : vector<32x667xf32>
    %19 = vector.extract_strided_slice %0 {offsets = [0, 18], sizes = [1, 667], strides = [1, 1]} : vector<1x768xf32> to vector<1x667xf32>
    %20 = vector.extract_strided_slice %1 {offsets = [0, 3], sizes = [32, 1], strides = [1, 1]} : vector<32x9xf32> to vector<32x1xf32>
    %21 = vector.broadcast %20 : vector<32x1xf32> to vector<32x667xf32>
    %22 = vector.broadcast %19 : vector<1x667xf32> to vector<32x667xf32>
    %23 = arith.mulf %21, %22 : vector<32x667xf32>
    %24 = arith.addf %18, %23 : vector<32x667xf32>
    %25 = vector.extract_strided_slice %0 {offsets = [0, 19], sizes = [1, 667], strides = [1, 1]} : vector<1x768xf32> to vector<1x667xf32>
    %26 = vector.extract_strided_slice %1 {offsets = [0, 4], sizes = [32, 1], strides = [1, 1]} : vector<32x9xf32> to vector<32x1xf32>
    %27 = vector.broadcast %26 : vector<32x1xf32> to vector<32x667xf32>
    %28 = vector.broadcast %25 : vector<1x667xf32> to vector<32x667xf32>
    %29 = arith.mulf %27, %28 : vector<32x667xf32>
    %30 = arith.addf %24, %29 : vector<32x667xf32>
    %31 = vector.extract_strided_slice %0 {offsets = [0, 20], sizes = [1, 667], strides = [1, 1]} : vector<1x768xf32> to vector<1x667xf32>
    %32 = vector.extract_strided_slice %1 {offsets = [0, 5], sizes = [32, 1], strides = [1, 1]} : vector<32x9xf32> to vector<32x1xf32>
    %33 = vector.broadcast %32 : vector<32x1xf32> to vector<32x667xf32>
    %34 = vector.broadcast %31 : vector<1x667xf32> to vector<32x667xf32>
    %35 = arith.mulf %33, %34 : vector<32x667xf32>
    %36 = arith.addf %30, %35 : vector<32x667xf32>
    %37 = vector.extract_strided_slice %0 {offsets = [0, 36], sizes = [1, 667], strides = [1, 1]} : vector<1x768xf32> to vector<1x667xf32>
    %38 = vector.extract_strided_slice %1 {offsets = [0, 6], sizes = [32, 1], strides = [1, 1]} : vector<32x9xf32> to vector<32x1xf32>
    %39 = vector.broadcast %38 : vector<32x1xf32> to vector<32x667xf32>
    %40 = vector.broadcast %37 : vector<1x667xf32> to vector<32x667xf32>
    %41 = arith.mulf %39, %40 : vector<32x667xf32>
    %42 = arith.addf %36, %41 : vector<32x667xf32>
    %43 = vector.extract_strided_slice %0 {offsets = [0, 37], sizes = [1, 667], strides = [1, 1]} : vector<1x768xf32> to vector<1x667xf32>
    %44 = vector.extract_strided_slice %1 {offsets = [0, 7], sizes = [32, 1], strides = [1, 1]} : vector<32x9xf32> to vector<32x1xf32>
    %45 = vector.broadcast %44 : vector<32x1xf32> to vector<32x667xf32>
    %46 = vector.broadcast %43 : vector<1x667xf32> to vector<32x667xf32>
    %47 = arith.mulf %45, %46 : vector<32x667xf32>
    %48 = arith.addf %42, %47 : vector<32x667xf32>
    %49 = vector.extract_strided_slice %0 {offsets = [0, 38], sizes = [1, 667], strides = [1, 1]} : vector<1x768xf32> to vector<1x667xf32>
    %50 = vector.extract_strided_slice %1 {offsets = [0, 8], sizes = [32, 1], strides = [1, 1]} : vector<32x9xf32> to vector<32x1xf32>
    %51 = vector.broadcast %50 : vector<32x1xf32> to vector<32x667xf32>
    %52 = vector.broadcast %49 : vector<1x667xf32> to vector<32x667xf32>
    %53 = arith.mulf %51, %52 : vector<32x667xf32>
    %54 = arith.addf %48, %53 : vector<32x667xf32>
    %c0_3 = arith.constant 0 : index
    %c0_4 = arith.constant 0 : index
    %55 = vector.load %arg2[%c0_3, %c0_4] : memref<32x1xf32, #tpu.memory_space<vmem>>, vector<32x1xf32>
    %56 = vector.broadcast %55 : vector<32x1xf32> to vector<32x667xf32>
    %57 = arith.addf %54, %56 : vector<32x667xf32>
    %cst = arith.constant 0.000000e+00 : f32
    %58 = vector.broadcast %cst : f32 to vector<32x667xf32>
    %59 = arith.maximumf %57, %58 : vector<32x667xf32>
    %60 = vector.extract_strided_slice %59 {offsets = [0, 0], sizes = [32, 648], strides = [1, 1]} : vector<32x667xf32> to vector<32x648xf32>
    %61 = vector.extract_strided_slice %59 {offsets = [0, 1], sizes = [32, 648], strides = [1, 1]} : vector<32x667xf32> to vector<32x648xf32>
    %62 = arith.maximumf %60, %61 : vector<32x648xf32>
    %63 = vector.extract_strided_slice %59 {offsets = [0, 18], sizes = [32, 648], strides = [1, 1]} : vector<32x667xf32> to vector<32x648xf32>
    %64 = vector.extract_strided_slice %59 {offsets = [0, 19], sizes = [32, 648], strides = [1, 1]} : vector<32x667xf32> to vector<32x648xf32>
    %65 = arith.maximumf %63, %64 : vector<32x648xf32>
    %66 = arith.maximumf %62, %65 : vector<32x648xf32>
    %c0_5 = arith.constant 0 : index
    %c0_6 = arith.constant 0 : index
    %67 = vector.load %arg3[%c0_5, %c0_6] : memref<648x256xf32, #tpu.memory_space<vmem>>, vector<648x256xf32>
    %cst_7 = arith.constant dense<0.000000e+00> : vector<32x256xf32>
    %68 = tpu.matmul %66, %67, %cst_7 {dimension_numbers = #tpu.dot_dimension_numbers<[1], [0], [0], [1], [0, 0, 1, 1], [], []>} : vector<32x648xf32>, vector<648x256xf32>, vector<32x256xf32> -> vector<32x256xf32>
    %69 = vector.extract_strided_slice %68 {offsets = [0, 0], sizes = [32, 211], strides = [1, 1]} : vector<32x256xf32> to vector<32x211xf32>
    %70 = vector.extract_strided_slice %68 {offsets = [0, 1], sizes = [32, 211], strides = [1, 1]} : vector<32x256xf32> to vector<32x211xf32>
    %71 = vector.extract_strided_slice %68 {offsets = [0, 2], sizes = [32, 211], strides = [1, 1]} : vector<32x256xf32> to vector<32x211xf32>
    %72 = vector.extract_strided_slice %68 {offsets = [0, 10], sizes = [32, 211], strides = [1, 1]} : vector<32x256xf32> to vector<32x211xf32>
    %73 = vector.extract_strided_slice %68 {offsets = [0, 11], sizes = [32, 211], strides = [1, 1]} : vector<32x256xf32> to vector<32x211xf32>
    %74 = vector.extract_strided_slice %68 {offsets = [0, 12], sizes = [32, 211], strides = [1, 1]} : vector<32x256xf32> to vector<32x211xf32>
    %75 = vector.extract_strided_slice %68 {offsets = [0, 20], sizes = [32, 211], strides = [1, 1]} : vector<32x256xf32> to vector<32x211xf32>
    %76 = vector.extract_strided_slice %68 {offsets = [0, 21], sizes = [32, 211], strides = [1, 1]} : vector<32x256xf32> to vector<32x211xf32>
    %77 = vector.extract_strided_slice %68 {offsets = [0, 22], sizes = [32, 211], strides = [1, 1]} : vector<32x256xf32> to vector<32x211xf32>
    %78 = tpu.concatenate %69, %70, %71, %72, %73, %74, %75, %76, %77 in 0 : vector<32x211xf32>, vector<32x211xf32>, vector<32x211xf32>, vector<32x211xf32>, vector<32x211xf32>, vector<32x211xf32>, vector<32x211xf32>, vector<32x211xf32>, vector<32x211xf32> -> vector<288x211xf32>
    %c0_8 = arith.constant 0 : index
    %c0_9 = arith.constant 0 : index
    %79 = vector.load %arg4[%c0_8, %c0_9] : memref<64x288xf32, #tpu.memory_space<vmem>>, vector<64x288xf32>
    %cst_10 = arith.constant dense<0.000000e+00> : vector<64x211xf32>
    %80 = tpu.matmul %79, %78, %cst_10 {dimension_numbers = #tpu.dot_dimension_numbers<[1], [0], [0], [1], [0, 0, 1, 1], [], []>} : vector<64x288xf32>, vector<288x211xf32>, vector<64x211xf32> -> vector<64x211xf32>
    %c0_11 = arith.constant 0 : index
    %c0_12 = arith.constant 0 : index
    %81 = vector.load %arg5[%c0_11, %c0_12] : memref<64x1xf32, #tpu.memory_space<vmem>>, vector<64x1xf32>
    %82 = vector.broadcast %81 : vector<64x1xf32> to vector<64x211xf32>
    %83 = arith.addf %80, %82 : vector<64x211xf32>
    %cst_13 = arith.constant 0.000000e+00 : f32
    %84 = vector.broadcast %cst_13 : f32 to vector<64x211xf32>
    %85 = arith.maximumf %83, %84 : vector<64x211xf32>
    %86 = vector.extract_strided_slice %85 {offsets = [0, 0], sizes = [64, 200], strides = [1, 1]} : vector<64x211xf32> to vector<64x200xf32>
    %87 = vector.extract_strided_slice %85 {offsets = [0, 1], sizes = [64, 200], strides = [1, 1]} : vector<64x211xf32> to vector<64x200xf32>
    %88 = arith.maximumf %86, %87 : vector<64x200xf32>
    %89 = vector.extract_strided_slice %85 {offsets = [0, 10], sizes = [64, 200], strides = [1, 1]} : vector<64x211xf32> to vector<64x200xf32>
    %90 = vector.extract_strided_slice %85 {offsets = [0, 11], sizes = [64, 200], strides = [1, 1]} : vector<64x211xf32> to vector<64x200xf32>
    %91 = arith.maximumf %89, %90 : vector<64x200xf32>
    %92 = arith.maximumf %88, %91 : vector<64x200xf32>
    %c0_14 = arith.constant 0 : index
    %c0_15 = arith.constant 0 : index
    %93 = vector.load %arg6[%c0_14, %c0_15] : memref<128x200xf32, #tpu.memory_space<vmem>>, vector<128x200xf32>
    %cst_16 = arith.constant dense<0.000000e+00> : vector<128x64xf32>
    %94 = tpu.matmul %93, %92, %cst_16 {dimension_numbers = #tpu.dot_dimension_numbers<[1], [1], [0], [0], [0, 0, 1, 0], [], []>} : vector<128x200xf32>, vector<64x200xf32>, vector<128x64xf32> -> vector<128x64xf32>
    %95 = vector.extract_strided_slice %94 {offsets = [0, 0], sizes = [8, 64], strides = [1, 1]} : vector<128x64xf32> to vector<8x64xf32>
    %c0_17 = arith.constant 0 : index
    %c0_18 = arith.constant 0 : index
    %96 = vector.load %arg7[%c0_17, %c0_18] : memref<1024x128xf32, #tpu.memory_space<vmem>>, vector<64x128xf32>
    %cst_19 = arith.constant dense<0.000000e+00> : vector<8x128xf32>
    %97 = tpu.matmul %95, %96, %cst_19 {dimension_numbers = #tpu.dot_dimension_numbers<[1], [0], [0], [1], [0, 0, 1, 1], [], []>} : vector<8x64xf32>, vector<64x128xf32>, vector<8x128xf32> -> vector<8x128xf32>
    %98 = vector.extract_strided_slice %94 {offsets = [8, 0], sizes = [8, 64], strides = [1, 1]} : vector<128x64xf32> to vector<8x64xf32>
    %c64 = arith.constant 64 : index
    %c0_20 = arith.constant 0 : index
    %99 = vector.load %arg7[%c64, %c0_20] : memref<1024x128xf32, #tpu.memory_space<vmem>>, vector<64x128xf32>
    %cst_21 = arith.constant dense<0.000000e+00> : vector<8x128xf32>
    %100 = tpu.matmul %98, %99, %cst_21 {dimension_numbers = #tpu.dot_dimension_numbers<[1], [0], [0], [1], [0, 0, 1, 1], [], []>} : vector<8x64xf32>, vector<64x128xf32>, vector<8x128xf32> -> vector<8x128xf32>
    %101 = arith.addf %97, %100 : vector<8x128xf32>
    %102 = vector.extract_strided_slice %94 {offsets = [16, 0], sizes = [8, 64], strides = [1, 1]} : vector<128x64xf32> to vector<8x64xf32>
    %c128 = arith.constant 128 : index
    %c0_22 = arith.constant 0 : index
    %103 = vector.load %arg7[%c128, %c0_22] : memref<1024x128xf32, #tpu.memory_space<vmem>>, vector<64x128xf32>
    %cst_23 = arith.constant dense<0.000000e+00> : vector<8x128xf32>
    %104 = tpu.matmul %102, %103, %cst_23 {dimension_numbers = #tpu.dot_dimension_numbers<[1], [0], [0], [1], [0, 0, 1, 1], [], []>} : vector<8x64xf32>, vector<64x128xf32>, vector<8x128xf32> -> vector<8x128xf32>
    %105 = arith.addf %101, %104 : vector<8x128xf32>
    %106 = vector.extract_strided_slice %94 {offsets = [24, 0], sizes = [8, 64], strides = [1, 1]} : vector<128x64xf32> to vector<8x64xf32>
    %c192 = arith.constant 192 : index
    %c0_24 = arith.constant 0 : index
    %107 = vector.load %arg7[%c192, %c0_24] : memref<1024x128xf32, #tpu.memory_space<vmem>>, vector<64x128xf32>
    %cst_25 = arith.constant dense<0.000000e+00> : vector<8x128xf32>
    %108 = tpu.matmul %106, %107, %cst_25 {dimension_numbers = #tpu.dot_dimension_numbers<[1], [0], [0], [1], [0, 0, 1, 1], [], []>} : vector<8x64xf32>, vector<64x128xf32>, vector<8x128xf32> -> vector<8x128xf32>
    %109 = arith.addf %105, %108 : vector<8x128xf32>
    %110 = vector.extract_strided_slice %94 {offsets = [32, 0], sizes = [8, 64], strides = [1, 1]} : vector<128x64xf32> to vector<8x64xf32>
    %c256 = arith.constant 256 : index
    %c0_26 = arith.constant 0 : index
    %111 = vector.load %arg7[%c256, %c0_26] : memref<1024x128xf32, #tpu.memory_space<vmem>>, vector<64x128xf32>
    %cst_27 = arith.constant dense<0.000000e+00> : vector<8x128xf32>
    %112 = tpu.matmul %110, %111, %cst_27 {dimension_numbers = #tpu.dot_dimension_numbers<[1], [0], [0], [1], [0, 0, 1, 1], [], []>} : vector<8x64xf32>, vector<64x128xf32>, vector<8x128xf32> -> vector<8x128xf32>
    %113 = arith.addf %109, %112 : vector<8x128xf32>
    %114 = vector.extract_strided_slice %94 {offsets = [40, 0], sizes = [8, 64], strides = [1, 1]} : vector<128x64xf32> to vector<8x64xf32>
    %c320 = arith.constant 320 : index
    %c0_28 = arith.constant 0 : index
    %115 = vector.load %arg7[%c320, %c0_28] : memref<1024x128xf32, #tpu.memory_space<vmem>>, vector<64x128xf32>
    %cst_29 = arith.constant dense<0.000000e+00> : vector<8x128xf32>
    %116 = tpu.matmul %114, %115, %cst_29 {dimension_numbers = #tpu.dot_dimension_numbers<[1], [0], [0], [1], [0, 0, 1, 1], [], []>} : vector<8x64xf32>, vector<64x128xf32>, vector<8x128xf32> -> vector<8x128xf32>
    %117 = arith.addf %113, %116 : vector<8x128xf32>
    %118 = vector.extract_strided_slice %94 {offsets = [48, 0], sizes = [8, 64], strides = [1, 1]} : vector<128x64xf32> to vector<8x64xf32>
    %c384 = arith.constant 384 : index
    %c0_30 = arith.constant 0 : index
    %119 = vector.load %arg7[%c384, %c0_30] : memref<1024x128xf32, #tpu.memory_space<vmem>>, vector<64x128xf32>
    %cst_31 = arith.constant dense<0.000000e+00> : vector<8x128xf32>
    %120 = tpu.matmul %118, %119, %cst_31 {dimension_numbers = #tpu.dot_dimension_numbers<[1], [0], [0], [1], [0, 0, 1, 1], [], []>} : vector<8x64xf32>, vector<64x128xf32>, vector<8x128xf32> -> vector<8x128xf32>
    %121 = arith.addf %117, %120 : vector<8x128xf32>
    %122 = vector.extract_strided_slice %94 {offsets = [56, 0], sizes = [8, 64], strides = [1, 1]} : vector<128x64xf32> to vector<8x64xf32>
    %c448 = arith.constant 448 : index
    %c0_32 = arith.constant 0 : index
    %123 = vector.load %arg7[%c448, %c0_32] : memref<1024x128xf32, #tpu.memory_space<vmem>>, vector<64x128xf32>
    %cst_33 = arith.constant dense<0.000000e+00> : vector<8x128xf32>
    %124 = tpu.matmul %122, %123, %cst_33 {dimension_numbers = #tpu.dot_dimension_numbers<[1], [0], [0], [1], [0, 0, 1, 1], [], []>} : vector<8x64xf32>, vector<64x128xf32>, vector<8x128xf32> -> vector<8x128xf32>
    %125 = arith.addf %121, %124 : vector<8x128xf32>
    %126 = vector.extract_strided_slice %94 {offsets = [64, 0], sizes = [8, 64], strides = [1, 1]} : vector<128x64xf32> to vector<8x64xf32>
    %c512 = arith.constant 512 : index
    %c0_34 = arith.constant 0 : index
    %127 = vector.load %arg7[%c512, %c0_34] : memref<1024x128xf32, #tpu.memory_space<vmem>>, vector<64x128xf32>
    %cst_35 = arith.constant dense<0.000000e+00> : vector<8x128xf32>
    %128 = tpu.matmul %126, %127, %cst_35 {dimension_numbers = #tpu.dot_dimension_numbers<[1], [0], [0], [1], [0, 0, 1, 1], [], []>} : vector<8x64xf32>, vector<64x128xf32>, vector<8x128xf32> -> vector<8x128xf32>
    %129 = arith.addf %125, %128 : vector<8x128xf32>
    %130 = vector.extract_strided_slice %94 {offsets = [72, 0], sizes = [8, 64], strides = [1, 1]} : vector<128x64xf32> to vector<8x64xf32>
    %c576 = arith.constant 576 : index
    %c0_36 = arith.constant 0 : index
    %131 = vector.load %arg7[%c576, %c0_36] : memref<1024x128xf32, #tpu.memory_space<vmem>>, vector<64x128xf32>
    %cst_37 = arith.constant dense<0.000000e+00> : vector<8x128xf32>
    %132 = tpu.matmul %130, %131, %cst_37 {dimension_numbers = #tpu.dot_dimension_numbers<[1], [0], [0], [1], [0, 0, 1, 1], [], []>} : vector<8x64xf32>, vector<64x128xf32>, vector<8x128xf32> -> vector<8x128xf32>
    %133 = arith.addf %129, %132 : vector<8x128xf32>
    %134 = vector.extract_strided_slice %94 {offsets = [80, 0], sizes = [8, 64], strides = [1, 1]} : vector<128x64xf32> to vector<8x64xf32>
    %c640 = arith.constant 640 : index
    %c0_38 = arith.constant 0 : index
    %135 = vector.load %arg7[%c640, %c0_38] : memref<1024x128xf32, #tpu.memory_space<vmem>>, vector<64x128xf32>
    %cst_39 = arith.constant dense<0.000000e+00> : vector<8x128xf32>
    %136 = tpu.matmul %134, %135, %cst_39 {dimension_numbers = #tpu.dot_dimension_numbers<[1], [0], [0], [1], [0, 0, 1, 1], [], []>} : vector<8x64xf32>, vector<64x128xf32>, vector<8x128xf32> -> vector<8x128xf32>
    %137 = arith.addf %133, %136 : vector<8x128xf32>
    %138 = vector.extract_strided_slice %94 {offsets = [88, 0], sizes = [8, 64], strides = [1, 1]} : vector<128x64xf32> to vector<8x64xf32>
    %c704 = arith.constant 704 : index
    %c0_40 = arith.constant 0 : index
    %139 = vector.load %arg7[%c704, %c0_40] : memref<1024x128xf32, #tpu.memory_space<vmem>>, vector<64x128xf32>
    %cst_41 = arith.constant dense<0.000000e+00> : vector<8x128xf32>
    %140 = tpu.matmul %138, %139, %cst_41 {dimension_numbers = #tpu.dot_dimension_numbers<[1], [0], [0], [1], [0, 0, 1, 1], [], []>} : vector<8x64xf32>, vector<64x128xf32>, vector<8x128xf32> -> vector<8x128xf32>
    %141 = arith.addf %137, %140 : vector<8x128xf32>
    %142 = vector.extract_strided_slice %94 {offsets = [96, 0], sizes = [8, 64], strides = [1, 1]} : vector<128x64xf32> to vector<8x64xf32>
    %c768 = arith.constant 768 : index
    %c0_42 = arith.constant 0 : index
    %143 = vector.load %arg7[%c768, %c0_42] : memref<1024x128xf32, #tpu.memory_space<vmem>>, vector<64x128xf32>
    %cst_43 = arith.constant dense<0.000000e+00> : vector<8x128xf32>
    %144 = tpu.matmul %142, %143, %cst_43 {dimension_numbers = #tpu.dot_dimension_numbers<[1], [0], [0], [1], [0, 0, 1, 1], [], []>} : vector<8x64xf32>, vector<64x128xf32>, vector<8x128xf32> -> vector<8x128xf32>
    %145 = arith.addf %141, %144 : vector<8x128xf32>
    %146 = vector.extract_strided_slice %94 {offsets = [104, 0], sizes = [8, 64], strides = [1, 1]} : vector<128x64xf32> to vector<8x64xf32>
    %c832 = arith.constant 832 : index
    %c0_44 = arith.constant 0 : index
    %147 = vector.load %arg7[%c832, %c0_44] : memref<1024x128xf32, #tpu.memory_space<vmem>>, vector<64x128xf32>
    %cst_45 = arith.constant dense<0.000000e+00> : vector<8x128xf32>
    %148 = tpu.matmul %146, %147, %cst_45 {dimension_numbers = #tpu.dot_dimension_numbers<[1], [0], [0], [1], [0, 0, 1, 1], [], []>} : vector<8x64xf32>, vector<64x128xf32>, vector<8x128xf32> -> vector<8x128xf32>
    %149 = arith.addf %145, %148 : vector<8x128xf32>
    %150 = vector.extract_strided_slice %94 {offsets = [112, 0], sizes = [8, 64], strides = [1, 1]} : vector<128x64xf32> to vector<8x64xf32>
    %c896 = arith.constant 896 : index
    %c0_46 = arith.constant 0 : index
    %151 = vector.load %arg7[%c896, %c0_46] : memref<1024x128xf32, #tpu.memory_space<vmem>>, vector<64x128xf32>
    %cst_47 = arith.constant dense<0.000000e+00> : vector<8x128xf32>
    %152 = tpu.matmul %150, %151, %cst_47 {dimension_numbers = #tpu.dot_dimension_numbers<[1], [0], [0], [1], [0, 0, 1, 1], [], []>} : vector<8x64xf32>, vector<64x128xf32>, vector<8x128xf32> -> vector<8x128xf32>
    %153 = arith.addf %149, %152 : vector<8x128xf32>
    %154 = vector.extract_strided_slice %94 {offsets = [120, 0], sizes = [8, 64], strides = [1, 1]} : vector<128x64xf32> to vector<8x64xf32>
    %c960 = arith.constant 960 : index
    %c0_48 = arith.constant 0 : index
    %155 = vector.load %arg7[%c960, %c0_48] : memref<1024x128xf32, #tpu.memory_space<vmem>>, vector<64x128xf32>
    %cst_49 = arith.constant dense<0.000000e+00> : vector<8x128xf32>
    %156 = tpu.matmul %154, %155, %cst_49 {dimension_numbers = #tpu.dot_dimension_numbers<[1], [0], [0], [1], [0, 0, 1, 1], [], []>} : vector<8x64xf32>, vector<64x128xf32>, vector<8x128xf32> -> vector<8x128xf32>
    %157 = arith.addf %153, %156 : vector<8x128xf32>
    %c0_50 = arith.constant 0 : index
    %c0_51 = arith.constant 0 : index
    %158 = vector.load %arg8[%c0_50, %c0_51] : memref<1x128xf32, #tpu.memory_space<vmem>>, vector<1x128xf32>
    %159 = vector.broadcast %158 : vector<1x128xf32> to vector<8x128xf32>
    %160 = arith.addf %157, %159 : vector<8x128xf32>
    %cst_52 = arith.constant 0.000000e+00 : f32
    %161 = vector.broadcast %cst_52 : f32 to vector<8x128xf32>
    %162 = arith.maximumf %160, %161 : vector<8x128xf32>
    %c0_53 = arith.constant 0 : index
    %c0_54 = arith.constant 0 : index
    %163 = vector.load %arg9[%c0_53, %c0_54] : memref<128x128xf32, #tpu.memory_space<vmem>>, vector<128x128xf32>
    %cst_55 = arith.constant dense<0.000000e+00> : vector<8x128xf32>
    %164 = tpu.matmul %162, %163, %cst_55 {dimension_numbers = #tpu.dot_dimension_numbers<[1], [0], [0], [1], [0, 0, 1, 1], [], []>} : vector<8x128xf32>, vector<128x128xf32>, vector<8x128xf32> -> vector<8x128xf32>
    %c0_56 = arith.constant 0 : index
    %c0_57 = arith.constant 0 : index
    %165 = vector.load %arg10[%c0_56, %c0_57] : memref<1x128xf32, #tpu.memory_space<vmem>>, vector<1x128xf32>
    %166 = vector.broadcast %165 : vector<1x128xf32> to vector<8x128xf32>
    %167 = arith.addf %164, %166 : vector<8x128xf32>
    %cst_58 = arith.constant dense<0xFF800000> : vector<8xf32>
    %168 = vector.multi_reduction <maximumf>, %167, %cst_58 [1] : vector<8x128xf32> to vector<8xf32>
    %169 = vector.shape_cast %168 : vector<8xf32> to vector<8x1xf32>
    %170 = vector.broadcast %169 : vector<8x1xf32> to vector<8x128xf32>
    %171 = arith.subf %167, %170 : vector<8x128xf32>
    %172 = math.exp %171 : vector<8x128xf32>
    %cst_59 = arith.constant dense<0.000000e+00> : vector<8xf32>
    %173 = vector.multi_reduction <add>, %172, %cst_59 [1] : vector<8x128xf32> to vector<8xf32>
    %174 = vector.shape_cast %173 : vector<8xf32> to vector<8x1xf32>
    %175 = tpu.reciprocal %174 {approx = true} : vector<8x1xf32> -> vector<8x1xf32>
    %176 = arith.mulf %174, %175 : vector<8x1xf32>
    %cst_60 = arith.constant 2.000000e+00 : f32
    %177 = vector.broadcast %cst_60 : f32 to vector<8x1xf32>
    %178 = arith.subf %177, %176 : vector<8x1xf32>
    %179 = arith.mulf %175, %178 : vector<8x1xf32>
    %180 = vector.broadcast %179 : vector<8x1xf32> to vector<8x128xf32>
    %181 = arith.mulf %172, %180 : vector<8x128xf32>
    %c0_61 = arith.constant 0 : index
    %c0_62 = arith.constant 0 : index
    %182 = vector.load %arg11[%c0_61, %c0_62] : memref<8x128xf32, #tpu.memory_space<vmem>>, vector<8x128xf32>
    tpu.vector_store %arg11[%c0_61, %c0_62], %181 {strides = array<i32>} : memref<8x128xf32, #tpu.memory_space<vmem>>, vector<8x128xf32>,
    return
  }
}

</mosaic_0001>

<bundles_post_ra>
// kernel: dcnn_forward.1
= control target key start
LH: loop header
LB: loop body
LE: loop exit
PB: predicated region body
PF: predicated region fallthrough
CT: control target
= control target key end

     0   :  { %16 = vsyncpa [#allocation3], 0  ;;  %s9153_s0 = inlined_call_operand.vmem [shape: f32[1,768], index: 0, kind: input, shape index: {}]   ;;  %s9154_s1 = inlined_call_operand.vmem [shape: f32[32,9], index: 1, kind: input, shape index: {}]   ;;  %s9155_s2 = inlined_call_operand.vmem [shape: f32[32,1], index: 2, kind: input, shape index: {}]   ;;  %s9156_s3 = inlined_call_operand.hbm [shape: f32[648,256], index: 3, kind: input, shape index: {}]   ;;  %s9157_s4 = inlined_call_operand.vmem [shape: f32[64,288], index: 4, kind: input, shape index: {}]   ;;  %s9158_s5 = inlined_call_operand.vmem [shape: f32[64,1], index: 5, kind: input, shape index: {}]   ;;  %s9159_s6 = inlined_call_operand.vmem [shape: f32[128,200], index: 6, kind: input, shape index: {}]   ;;  %s9160_s7 = inlined_call_operand.hbm [shape: f32[1024,128], index: 7, kind: input, shape index: {}]   ;;  %s9161_s8 = inlined_call_operand.vmem [shape: f32[1,128], index: 8, kind: input, shape index: {}]   ;;  %s9162_s9 = inlined_call_operand.vmem [shape: f32[128,128], index: 9, kind: input, shape index: {}]   ;;  %s9163_s10 = inlined_call_operand.vmem [shape: f32[1,128], index: 10, kind: input, shape index: {}]   ;;  %s9164_s11 = inlined_call_operand.vmem [shape: f32[8,128], index: 11, kind: output, shape index: {}]  }
   0x1   :  { %17 = vsyncpa [#allocation5], 0  ;;  %s6331_s17 = smov [#allocation2]   ;;  %s6283_s21 = scalar_lea.hbm %s9156_s3, 20736 }
   0x2   :  { %s29_s18 = sshll.u32 %s6331_s17, 4  ;;  %p6284_p0 = scmp.ne.s32.totalorder %s9156_s3, %s6283_s21  ;;  %s30_s18 = int_to_ptr.vmem [resolvable:$true] %s29_s18 }
   0x3   :  { %p6287_p1 = scmp.lt.u32.totalorder %s6283_s21, %s9156_s3 }
   0x5   :  { %p6289_p2 = pnand %p6287_p1, %p6284_p0 }
   0x7   :  { %6292 = shalt.err (!%p6289_p2)
}
   0x8   :  { %s6293_s26 = scalar_lea.vmem %s30_s18, 20736  ;;  %p6298_p4 = scmp.lt.s32.totalorder %s30_s18, %s30_s18 }
   0x9   :  { %p6294_p3 = scmp.ne.s32.totalorder %s30_s18, %s6293_s26  ;;  %p6299_p5 = scmp.lt.s32.totalorder %s6293_s26, %s6293_s26 }
   0xb   :  { %p6300_p6 = por %p6299_p5, %p6298_p4 }
   0xd   :  { %p6301_p7 = pnand %p6300_p6, %p6294_p3 }
   0xf   :  { %6304 = shalt.err (!%p6301_p7)
}
  0x10   :  { %s6332_s27 = smov 256   ;;  %s6333_s28 = smov 16  }
  0x11   :  { %35 = dma.hbm_to_vmem [thread:$0]  %s9156_s3, 20736, %s30_s18, [#allocation3], %s6332_s27, %s6332_s27, %s6333_s28  }
  0x12   :  { %s6334_s12 = smov [#allocation4]   ;;  %s6305_s16 = scalar_lea.hbm %s9160_s7, 16384 }
  0x13   :  { %s47_s13 = sshll.u32 %s6334_s12, 4  ;;  %p6306_p8 = scmp.ne.s32.totalorder %s9160_s7, %s6305_s16  ;;  %s48_s13 = int_to_ptr.vmem [resolvable:$true] %s47_s13 }
  0x14   :  { %p6309_p9 = scmp.lt.u32.totalorder %s6305_s16, %s9160_s7 }
  0x16   :  { %p6311_p10 = pnand %p6309_p9, %p6306_p8 }
  0x18   :  { %6314 = shalt.err (!%p6311_p10)
}
  0x19   :  { %s6315_s22 = scalar_lea.vmem %s48_s13, 16384  ;;  %p6320_p12 = scmp.lt.s32.totalorder %s48_s13, %s48_s13 }
  0x1a   :  { %p6316_p11 = scmp.ne.s32.totalorder %s48_s13, %s6315_s22  ;;  %p6321_p13 = scmp.lt.s32.totalorder %s6315_s22, %s6315_s22 }
  0x1c   :  { %p6322_p0 = por %p6321_p13, %p6320_p12 }
  0x1e   :  { %p6323_p1 = pnand %p6322_p0, %p6316_p11 }
  0x20   :  { %6326 = shalt.err (!%p6323_p1)
}
  0x21   :  { %s6335_s3 = smov 128   ;;  %s6336_s18 = smov 8  }
  0x22   :  { %53 = dma.hbm_to_vmem [thread:$0]  %s9160_s7, 16384, %s48_s13, [#allocation5], %s6335_s3, %s6335_s3, %s6336_s18  }
  0x23   :  { %6327 = dma.done.wait [#allocation3], 20736  }
  0x24   :  { %6328 = vsyncadd [#allocation3], 4294946560 }
  0x25   :  { %6329 = dma.done.wait [#allocation5], 16384  }
  0x26   :  { %6330 = vsyncadd [#allocation5], 4294950912  ;;  %v6337_v0 = vmov 1   ;;  %v6338_v1 = vmov 3   ;;  %v92_v2 = vlaneseq  ;;  %v67_v4 = vld [vmem:[%s9154_s1] sm:$0xff]  ;;  %v6339_v8 = vmov 2  }
  0x27   :  { %5923 = vset.pattern.permute.xlu0 %v6337_v0  ;;  %5925 = vset.pattern.permute.xlu1 %v6338_v1  ;;  %v6455_v6 = vld [vmem:[%s9153_s0] sm:$0x3f]  ;;  %v6340_v9 = vmov 4   ;;  %v6463_v10 = vld [vmem:[%s9154_s1 + $0x8] sm:$0xff]  ;;  %v6341_v11 = vmov 5   ;;  %v6342_v12 = vmov 7  }
  0x28   :  { %v6446_v3 = vshrl.u32 %v92_v2, 7  ;;  %147 = vperm.xlu0 %5923, %v67_v4   ;;  %509 = vperm.xlu1 %5925, %v67_v4   ;;  %v6343_v13 = vmov 8   ;;  %v6344_v14 = vmov 6   ;;  %v6472_v15 = vld [vmem:[%s9154_s1 + $0x10] sm:$0xff]  ;;  %v6483_v16 = vld [vmem:[%s9154_s1 + $0x18] sm:$0xff]  ;;  %v6345_v17 = vmov 0  }
  0x29   :  { %s6346_s1 = smov 127   ;;  %s6347_s14 = smov 126   ;;  %vm258_vm0 = vcmask 1039360   ;;  %vm439_vm1 = vcmask 1031168   ;;  %vm620_vm2 = vcmask 900096   ;;  %vm801_vm3 = vcmask 891904  }
  0x2a   :  { %v114_v5 = vsub.s32 5, %v6446_v3  ;;  %v106_v18 = vsub.s32 3, %v6446_v3  ;;  %v98_v19 = vsub.s32 1, %v6446_v3  ;;  %v102_v22 = vsub.s32 2, %v6446_v3  ;;  %s6348_s15 = smov 110   ;;  %s6349_s16 = smov 109  }
  0x2b   :  { %v94_v23 = vsub.s32 0, %v6446_v3  ;;  %v110_v25 = vsub.s32 4, %v6446_v3  ;;  %s6350_s17 = smov 108   ;;  %s6351_s19 = smov 92   ;;  %vm982_vm4 = vcmask 883712   ;;  %vm1163_vm5 = vcmask 752640  }
  0x2c   :  { %v6458_v7 = vrot.slane %v6455_v6, %v114_v5  ;;  %5924 = vset.pattern.permute.xlu0 %v6339_v8  ;;  %5926 = vset.pattern.permute.xlu1 %v6340_v9  ;;  %v6502_v20 = vrot.slane %v6455_v6, %v106_v18  ;;  %v6505_v21 = vrot.slane %v6455_v6, %v98_v19  ;;  %s6352_s22 = smov 91   ;;  %s6353_s3 = smov 90   ;;  %vm1344_vm6 = vcmask 744448  }
  0x2d   :  { %328 = vperm.xlu0 %5924, %v67_v4   ;;  %690 = vperm.xlu1 %5926, %v67_v4   ;;  %v6517_v28 = vrot.slane %v6455_v6, %v102_v22  ;;  %v6520_v29 = vrot.slane %v6455_v6, %v94_v23  ;;  %v6533_v34 = vrot.slane %v6455_v6, %v110_v25  ;;  %vm1525_vm7 = vcmask 736256   ;;  %s6355_s27 = smov 117   ;;  %s6356_s28 = smov 116  }
  0x2e   :  { %vm2108_vm8 = vcmask 64512   ;;  %s6357_s29 = smov 107   ;;  %s6358_s12 = smov 106   ;;  %vm2468_vm9 = vcmask 965632   ;;  %vm2497_vm10 = vcmask 957440   ;;  %vm2526_vm11 = vcmask 949248  }
  0x2f   :  { %vm2583_vm12 = vcmask 875520   ;;  %vm2612_vm13 = vcmask 867328   ;;  %vm2697_vm14 = vcmask 261120   ;;  %vm3172_vm15 = vcmask 588800  }
  0x31   :  { %5927 = vset.pattern.permute.xlu1 %v6341_v11  ;;  %5930 = vset.pattern.permute.xlu0 %v6337_v0 }
  0x32   :  { %871 = vperm.xlu1 %5927, %v67_v4   ;;  %151 = vperm.xlu0 %5930, %v6463_v10  }
  0x36   :  { %5928 = vset.pattern.permute.xlu1 %v6342_v12  ;;  %5933 = vset.pattern.permute.xlu0 %v6338_v1 }
  0x37   :  { %1233 = vperm.xlu1 %5928, %v67_v4   ;;  %513 = vperm.xlu0 %5933, %v6463_v10  }
  0x3b   :  { %5929 = vset.pattern.permute.xlu1 %v6343_v13  ;;  %5938 = vset.pattern.permute.xlu0 %v6341_v11 }
  0x3c   :  { %1414 = vperm.xlu1 %5929, %v67_v4   ;;  %875 = vperm.xlu0 %5938, %v6463_v10  }
  0x40   :  { %5931 = vset.pattern.permute.xlu1 %v6339_v8  ;;  %5939 = vset.pattern.permute.xlu0 %v6344_v14 }
  0x41   :  { %332 = vperm.xlu1 %5931, %v6463_v10   ;;  %1052 = vperm.xlu0 %5939, %v67_v4  }
  0x45   :  { %5932 = vset.pattern.permute.xlu1 %v6337_v0  ;;  %1056 = vperm.xlu0 %5939, %v6463_v10  }
  0x46   :  { %155 = vperm.xlu1 %5932, %v6472_v15  }
  0x49   :  { %5944 = vset.pattern.permute.xlu0 %v6342_v12 }
  0x4a   :  { %5934 = vset.pattern.permute.xlu1 %v6339_v8  ;;  %1237 = vperm.xlu0 %5944, %v6463_v10  }
  0x4b   :  { %336 = vperm.xlu1 %5934, %v6472_v15  }
  0x4e   :  { %1241 = vperm.xlu0 %5944, %v6472_v15  }
  0x4f   :  { %5935 = vset.pattern.permute.xlu1 %v6340_v9 }
  0x50   :  { %694 = vperm.xlu1 %5935, %v6463_v10  }
  0x52   :  { %5948 = vset.pattern.permute.xlu0 %v6343_v13 }
  0x53   :  { %1418 = vperm.xlu0 %5948, %v6463_v10  }
  0x54   :  { %5936 = vset.pattern.permute.xlu1 %v6337_v0 }
  0x55   :  { %159 = vperm.xlu1 %5936, %v6483_v16  }
  0x57   :  { %1422 = vperm.xlu0 %5948, %v6472_v15  }
  0x59   :  { %5937 = vset.pattern.permute.xlu1 %v6338_v1 }
  0x5a   :  { %517 = vperm.xlu1 %5937, %v6472_v15  }
  0x5b   :  { %5950 = vset.pattern.permute.xlu0 %v6345_v17 }
  0x5c   :  { %73 = vperm.xlu0 %5950, %v67_v4  }
  0x5e   :  { %5940 = vset.pattern.permute.xlu1 %v6339_v8 }
  0x5f   :  { %340 = vperm.xlu1 %5940, %v6483_v16  }
  0x63   :  { %5941 = vset.pattern.permute.xlu1 %v6340_v9 }
  0x64   :  { %698 = vperm.xlu1 %5941, %v6472_v15  }
  0x68   :  { %5942 = vset.pattern.permute.xlu1 %v6338_v1 }
  0x69   :  { %521 = vperm.xlu1 %5942, %v6483_v16  }
  0x6d   :  { %5943 = vset.pattern.permute.xlu1 %v6341_v11 }
  0x6e   :  { %879 = vperm.xlu1 %5943, %v6472_v15  }
  0x72   :  { %5945 = vset.pattern.permute.xlu1 %v6340_v9 }
  0x73   :  { %702 = vperm.xlu1 %5945, %v6483_v16  }
  0x77   :  { %5946 = vset.pattern.permute.xlu1 %v6344_v14 }
  0x78   :  { %1060 = vperm.xlu1 %5946, %v6472_v15  }
  0x7c   :  { %5947 = vset.pattern.permute.xlu1 %v6341_v11 }
  0x7d   :  { %883 = vperm.xlu1 %5947, %v6483_v16  }
  0x81   :  { %5949 = vset.pattern.permute.xlu1 %v6344_v14  ;;  %v1594_v14 = vld [vmem:[%s9155_s2] sm:$0xff] }
  0x82   :  { %1064 = vperm.xlu1 %5949, %v6483_v16  }
  0x86   :  { %5951 = vset.pattern.permute.xlu1 %v6342_v12 }
  0x87   :  { %1245 = vperm.xlu1 %5951, %v6483_v16  }
  0x8b   :  { %5952 = vset.pattern.permute.xlu1 %v6343_v13 }
  0x8c   :  { %1426 = vperm.xlu1 %5952, %v6483_v16  }
  0x90   :  { %5953 = vset.pattern.permute.xlu1 %v6345_v17 }
  0xa7   :  { %v6509_v24 = vpop.permute.xlu0 %147  ;;  %v6522_v30 = vpop.permute.xlu1 %509 }
  0xa8   :  { %v165_v26 = vmul.f32 %v6509_v24, %v6502_v20  ;;  %v163_v27 = vmul.f32 %v6509_v24, %v6505_v21  ;;  %v164_v31 = vmul.f32 %v6509_v24, %v6517_v28  ;;  %v162_v32 = vmul.f32 %v6509_v24, %v6520_v29 }
  0xa9   :  { %v166_v37 = vmul.f32 %v6509_v24, %v6533_v34  ;;  %v527_v41 = vmul.f32 %v6522_v30, %v6502_v20  ;;  %v524_v44 = vmul.f32 %v6522_v30, %v6520_v29  ;;  %v525_v47 = vmul.f32 %v6522_v30, %v6505_v21 }
  0xaa   :  { %216 = vrot.lane.b32.xlu0 %v165_v26, %s6346_s1  ;;  %212 = vrot.lane.b32.xlu1 %v163_v27, %s6346_s1  ;;  %v526_v52 = vmul.f32 %v6522_v30, %v6517_v28  ;;  %v528_v56 = vmul.f32 %v6522_v30, %v6533_v34 }
  0xac   :  { %v6530_v33 = vpop.permute.xlu0 %328  ;;  %v6535_v35 = vpop.permute.xlu1 %690 }
  0xad   :  { %v346_v36 = vmul.f32 %v6530_v33, %v6502_v20  ;;  %v344_v39 = vmul.f32 %v6530_v33, %v6505_v21  ;;  %v343_v40 = vmul.f32 %v6530_v33, %v6520_v29  ;;  %v345_v43 = vmul.f32 %v6530_v33, %v6517_v28 }
  0xae   :  { %214 = vrot.lane.b32.xlu1 %v164_v31, %s6346_s1  ;;  %210 = vrot.lane.b32.xlu0 %v162_v32, %s6346_s1  ;;  %v347_v46 = vmul.f32 %v6530_v33, %v6533_v34  ;;  %v706_v48 = vmul.f32 %v6535_v35, %v6505_v21  ;;  %v708_v51 = vmul.f32 %v6535_v35, %v6502_v20 }
  0xaf   :  { %v705_v54 = vmul.f32 %v6535_v35, %v6520_v29  ;;  %v707_v59 = vmul.f32 %v6535_v35, %v6517_v28  ;;  %v709_v62 = vmul.f32 %v6535_v35, %v6533_v34 }
  0xb1   :  { %v6543_v38 = vpop.permute.xlu1 %871  ;;  %v6575_v50 = vpop.permute.xlu0 %151 }
  0xb2   :  { %218 = vrot.lane.b32.xlu1 %v166_v37, %s6346_s1  ;;  %397 = vrot.lane.b32.xlu0 %v346_v36, %s6347_s14  ;;  %9284 = vst [vmem:[#allocation11_spill] sm:$0xff] %v6575_v50  ;;  %v887_v57 = vmul.f32 %v6543_v38, %v6505_v21  ;;  %v889_v63 = vmul.f32 %v6543_v38, %v6502_v20 }
  0xb3   :  { %v888_v1 = vmul.f32 %v6543_v38, %v6517_v28  ;;  %v886_v2 = vmul.f32 %v6543_v38, %v6520_v29  ;;  %v890_v5 = vmul.f32 %v6543_v38, %v6533_v34 }
  0xb6   :  { %393 = vrot.lane.b32.xlu1 %v344_v39, %s6347_s14  ;;  %391 = vrot.lane.b32.xlu0 %v343_v40, %s6347_s14  ;;  %v6555_v42 = vpop.permute.xlu1 %1233  ;;  %v6589_v55 = vpop.permute.xlu0 %513 }
  0xb7   :  { %9281 = vst [vmem:[#allocation8_spill] sm:$0xff] %v6555_v42  ;;  %9286 = vst [vmem:[#allocation13_spill] sm:$0xff] %v6589_v55  ;;  %v1250_v17 = vmul.f32 %v6555_v42, %v6517_v28  ;;  %v1249_v19 = vmul.f32 %v6555_v42, %v6505_v21  ;;  %v1252_v22 = vmul.f32 %v6555_v42, %v6533_v34 }
  0xb8   :  { %v1251_v23 = vmul.f32 %v6555_v42, %v6502_v20  ;;  %v1248_v27 = vmul.f32 %v6555_v42, %v6520_v29 }
  0xba   :  { %395 = vrot.lane.b32.xlu1 %v345_v43, %s6347_s14  ;;  %578 = vrot.lane.b32.xlu0 %v527_v41, %s6348_s15  ;;  %v170_v43 = vmul.f32 %v6575_v50, %v6517_v28 }
  0xbb   :  { %v6563_v45 = vpop.permute.xlu1 %1414  ;;  %v6601_v60 = vpop.permute.xlu0 %875 }
  0xbc   :  { %9282 = vst [vmem:[#allocation9_spill] sm:$0xff] %v6563_v45  ;;  %9288 = vst [vmem:[#allocation15_spill] sm:$0xff] %v6601_v60  ;;  %v1430_v25 = vmul.f32 %v6563_v45, %v6505_v21  ;;  %v1432_v31 = vmul.f32 %v6563_v45, %v6502_v20  ;;  %v1431_v36 = vmul.f32 %v6563_v45, %v6517_v28 }
  0xbd   :  { %v1429_v37 = vmul.f32 %v6563_v45, %v6520_v29  ;;  %v1433_v39 = vmul.f32 %v6563_v45, %v6533_v34  ;;  %v895_v45 = vmul.f32 %v6601_v60, %v6502_v20  ;;  %v892_v42 = vmul.f32 %v6601_v60, %v6520_v29 }
  0xbe   :  { %399 = vrot.lane.b32.xlu1 %v347_v46, %s6347_s14  ;;  %572 = vrot.lane.b32.xlu0 %v524_v44, %s6348_s15 }
  0xc0   :  { %v6573_v49 = vpop.permute.xlu1 %332  ;;  %v6613_v0 = vpop.permute.xlu0 %1052 }
  0xc1   :  { %9283 = vst [vmem:[#allocation10_spill] sm:$0xff] %v6573_v49  ;;  %v1069_v4 = vmul.f32 %v6613_v0, %v6517_v28  ;;  %v1068_v6 = vmul.f32 %v6613_v0, %v6505_v21  ;;  %v1071_v8 = vmul.f32 %v6613_v0, %v6533_v34  ;;  %v1070_v11 = vmul.f32 %v6613_v0, %v6502_v20 }
  0xc2   :  { %574 = vrot.lane.b32.xlu1 %v525_v47, %s6348_s15  ;;  %755 = vrot.lane.b32.xlu0 %v706_v48, %s6349_s16  ;;  %v1067_v12 = vmul.f32 %v6613_v0, %v6520_v29  ;;  %v172_v47 = vmul.f32 %v6575_v50, %v6533_v34  ;;  %v350_v48 = vmul.f32 %v6573_v49, %v6505_v21 }
  0xc4   :  { %v6685_v41 = vpop.permute.xlu0 %1056 }
  0xc5   :  { %v6583_v53 = vpop.permute.xlu1 %155  ;;  %9295 = vst [vmem:[#allocation22_spill] sm:$0xff] %v6685_v41 }
  0xc6   :  { %9285 = vst [vmem:[#allocation12_spill] sm:$0xff] %v6583_v53  ;;  %576 = vrot.lane.b32.xlu1 %v526_v52, %s6348_s15  ;;  %759 = vrot.lane.b32.xlu0 %v708_v51, %s6349_s16  ;;  %v171_v52 = vmul.f32 %v6575_v50, %v6502_v20 }
  0xc9   :  { %v6695_v46 = vpop.permute.xlu0 %1237 }
  0xca   :  { %580 = vrot.lane.b32.xlu1 %v528_v56, %s6348_s15  ;;  %753 = vrot.lane.b32.xlu0 %v705_v54, %s6349_s16  ;;  %v6597_v58 = vpop.permute.xlu1 %336 }
  0xcb   :  { %9287 = vst [vmem:[#allocation14_spill] sm:$0xff] %v6597_v58 }
  0xcd   :  { %v6707_v51 = vpop.permute.xlu0 %1241 }
  0xce   :  { %757 = vrot.lane.b32.xlu1 %v707_v59, %s6349_s16  ;;  %936 = vrot.lane.b32.xlu0 %v887_v57, %s6350_s17  ;;  %9296 = vst [vmem:[#allocation23_spill] sm:$0xff] %v6707_v51  ;;  %v168_v57 = vmul.f32 %v6575_v50, %v6520_v29  ;;  %v349_v59 = vmul.f32 %v6573_v49, %v6520_v29 }
  0xcf   :  { %v6605_v61 = vpop.permute.xlu1 %694 }
  0xd0   :  { %9289 = vst [vmem:[#allocation16_spill] sm:$0xff] %v6605_v61 }
  0xd2   :  { %761 = vrot.lane.b32.xlu1 %v709_v62, %s6349_s16  ;;  %940 = vrot.lane.b32.xlu0 %v889_v63, %s6350_s17  ;;  %v6719_v56 = vpop.permute.xlu0 %1418  ;;  %v351_v62 = vmul.f32 %v6573_v49, %v6517_v28  ;;  %v176_v63 = vmul.f32 %v6583_v53, %v6517_v28 }
  0xd4   :  { %v6619_v3 = vpop.permute.xlu1 %159 }
  0xd5   :  { %9290 = vst [vmem:[#allocation17_spill] sm:$0xff] %v6619_v3 }
  0xd6   :  { %938 = vrot.lane.b32.xlu1 %v888_v1, %s6350_s17  ;;  %934 = vrot.lane.b32.xlu0 %v886_v2, %s6350_s17  ;;  %v6733_v2 = vpop.permute.xlu0 %1422 }
  0xd9   :  { %v6633_v9 = vpop.permute.xlu1 %517 }
  0xda   :  { %942 = vrot.lane.b32.xlu1 %v890_v5, %s6350_s17  ;;  %1119 = vrot.lane.b32.xlu0 %v1069_v4, %s6351_s19  ;;  %9291 = vst [vmem:[#allocation18_spill] sm:$0xff] %v6633_v9  ;;  %v353_v4 = vmul.f32 %v6573_v49, %v6533_v34  ;;  %v178_v5 = vmul.f32 %v6583_v53, %v6533_v34 }
  0xde   :  { %1117 = vrot.lane.b32.xlu1 %v1068_v6, %s6351_s19  ;;  %1123 = vrot.lane.b32.xlu0 %v1071_v8, %s6351_s19  ;;  %v6641_v13 = vpop.permute.xlu1 %340  ;;  %v6745_v8 = vpop.permute.xlu0 %73 }
  0xdf   :  { %9292 = vst [vmem:[#allocation19_spill] sm:$0xff] %v6641_v13 }
  0xe2   :  { %1121 = vrot.lane.b32.xlu1 %v1070_v11, %s6351_s19  ;;  %1115 = vrot.lane.b32.xlu0 %v1067_v12, %s6351_s19  ;;  %v175_v11 = vmul.f32 %v6583_v53, %v6505_v21  ;;  %v532_v12 = vmul.f32 %v6589_v55, %v6517_v28 }
  0xe3   :  { %v6651_v18 = vpop.permute.xlu1 %698 }
  0xe4   :  { %9293 = vst [vmem:[#allocation20_spill] sm:$0xff] %v6651_v18 }
  0xe6   :  { %1600 = vperm.xlu1 %5953, %v1594_v14   ;;  %1300 = vrot.lane.b32.xlu0 %v1250_v17, %s6352_s22 }
  0xe8   :  { %v6663_v26 = vpop.permute.xlu1 %521 }
  0xea   :  { %1298 = vrot.lane.b32.xlu1 %v1249_v19, %s6352_s22  ;;  %1304 = vrot.lane.b32.xlu0 %v1252_v22, %s6352_s22  ;;  %v177_v19 = vmul.f32 %v6583_v53, %v6502_v20  ;;  %v534_v22 = vmul.f32 %v6589_v55, %v6533_v34 }
  0xed   :  { %v6673_v32 = vpop.permute.xlu1 %879 }
  0xee   :  { %1302 = vrot.lane.b32.xlu1 %v1251_v23, %s6352_s22  ;;  %1479 = vrot.lane.b32.xlu0 %v1430_v25, %s6353_s3  ;;  %9294 = vst [vmem:[#allocation21_spill] sm:$0xff] %v6673_v32 }
  0xf2   :  { %1296 = vrot.lane.b32.xlu1 %v1248_v27, %s6352_s22  ;;  %1483 = vrot.lane.b32.xlu0 %v1432_v31, %s6353_s3  ;;  %v6683_v40 = vpop.permute.xlu1 %702  ;;  %v531_v27 = vmul.f32 %v6589_v55, %v6505_v21  ;;  %v530_v31 = vmul.f32 %v6589_v55, %v6520_v29 }
  0xf6   :  { %1481 = vrot.lane.b32.xlu1 %v1431_v36, %s6353_s3  ;;  %1477 = vrot.lane.b32.xlu0 %v1429_v37, %s6353_s3 }
  0xf7   :  { %v6693_v44 = vpop.permute.xlu1 %1060 }
  0xfa   :  { %1485 = vrot.lane.b32.xlu1 %v1433_v39, %s6353_s3  ;;  %83 = vperm.xlu0 %5950, %v6472_v15   ;;  %v169_v15 = vmul.f32 %v6575_v50, %v6505_v21  ;;  %v533_v39 = vmul.f32 %v6589_v55, %v6502_v20 }
  0xfe   :  { %78 = vperm.xlu1 %5953, %v6463_v10   ;;  %226 = vrot.lane.b32.xlu0 %v170_v43, %s6346_s1  ;;  %v6705_v10 = vpop.permute.xlu1 %883  ;;  %v357_v43 = vmul.f32 %v6597_v58, %v6517_v28 }
 0x102   :  { %88 = vperm.xlu1 %5953, %v6483_v16   ;;  %230 = vrot.lane.b32.xlu0 %v172_v47, %s6346_s1  ;;  %v352_v16 = vmul.f32 %v6573_v49, %v6502_v20  ;;  %v6717_v54 = vpop.permute.xlu1 %1064 }
 0x103   :  { %9297 = vst [vmem:[#allocation24_spill] sm:$0xff] %v6717_v54 }
 0x106   :  { %224 = vrot.lane.b32.xlu1 %v169_v15, %s6346_s1  ;;  %405 = vrot.lane.b32.xlu0 %v350_v48, %s6347_s14  ;;  %v6731_v1 = vpop.permute.xlu1 %1245  ;;  %v174_v48 = vmul.f32 %v6583_v53, %v6520_v29  ;;  %v893_v53 = vmul.f32 %v6601_v60, %v6505_v21 }
 0x10a   :  { %228 = vrot.lane.b32.xlu1 %v171_v52, %s6346_s1  ;;  %409 = vrot.lane.b32.xlu0 %v352_v16, %s6347_s14  ;;  %v359_v52 = vmul.f32 %v6597_v58, %v6533_v34 }
 0x10b   :  { %v6743_v6 = vpop.permute.xlu1 %1426 }
 0x10e   :  { %222 = vrot.lane.b32.xlu1 %v168_v57, %s6346_s1  ;;  %403 = vrot.lane.b32.xlu0 %v349_v59, %s6347_s14  ;;  %v356_v59 = vmul.f32 %v6597_v58, %v6505_v21 }
 0x112   :  { %407 = vrot.lane.b32.xlu1 %v351_v62, %s6347_s14  ;;  %238 = vrot.lane.b32.xlu0 %v176_v63, %s6346_s1  ;;  %v713_v62 = vmul.f32 %v6605_v61, %v6517_v28 }
 0x116   :  { %411 = vrot.lane.b32.xlu1 %v353_v4, %s6347_s14  ;;  %242 = vrot.lane.b32.xlu0 %v178_v5, %s6346_s1  ;;  %v358_v5 = vmul.f32 %v6597_v58, %v6502_v20 }
 0x11a   :  { %236 = vrot.lane.b32.xlu1 %v175_v11, %s6346_s1  ;;  %588 = vrot.lane.b32.xlu0 %v532_v12, %s6348_s15  ;;  %v715_v11 = vmul.f32 %v6605_v61, %v6533_v34 }
 0x11c   :  { %v6753_v14 = vpop.permute.xlu0 %216  ;;  %v6755_v17 = vpop.permute.xlu1 %212 }
 0x11e   :  { %240 = vrot.lane.b32.xlu1 %v177_v19, %s6346_s1  ;;  %592 = vrot.lane.b32.xlu0 %v534_v22, %s6348_s15  ;;  %v712_v22 = vmul.f32 %v6605_v61, %v6505_v21 }
 0x120   :  { %v6763_v23 = vpop.permute.xlu1 %214  ;;  %v6765_v25 = vpop.permute.xlu0 %210 }
 0x122   :  { %586 = vrot.lane.b32.xlu1 %v531_v27, %s6348_s15  ;;  %584 = vrot.lane.b32.xlu0 %v530_v31, %s6348_s15  ;;  %v711_v27 = vmul.f32 %v6605_v61, %v6520_v29 }
 0x124   :  { %v6773_v36 = vpop.permute.xlu1 %218  ;;  %v6775_v37 = vpop.permute.xlu0 %397 }
 0x125   :  { %9298 = vst [vmem:[#allocation25_spill] sm:$0xff] %v6773_v36 }
 0x126   :  { %590 = vrot.lane.b32.xlu1 %v533_v39, %s6348_s15  ;;  %419 = vrot.lane.b32.xlu0 %v357_v43, %s6347_s14  ;;  %v714_v43 = vmul.f32 %v6605_v61, %v6502_v20 }
 0x128   :  { %v6783_v47 = vpop.permute.xlu1 %393  ;;  %v6785_v15 = vpop.permute.xlu0 %391 }
 0x12a   :  { %234 = vrot.lane.b32.xlu1 %v174_v48, %s6346_s1  ;;  %423 = vrot.lane.b32.xlu0 %v359_v52, %s6347_s14  ;;  %v182_v48 = vmul.f32 %v6619_v3, %v6517_v28 }
 0x12c   :  { %v6793_v16 = vpop.permute.xlu1 %395  ;;  %v6795_v57 = vpop.permute.xlu0 %578 }
 0x12e   :  { %417 = vrot.lane.b32.xlu1 %v356_v59, %s6347_s14  ;;  %769 = vrot.lane.b32.xlu0 %v713_v62, %s6349_s16  ;;  %v355_v59 = vmul.f32 %v6597_v58, %v6520_v29  ;;  %v184_v62 = vmul.f32 %v6619_v3, %v6533_v34 }
 0x130   :  { %v6803_v63 = vpop.permute.xlu1 %399  ;;  %v6805_v4 = vpop.permute.xlu0 %572 }
 0x131   :  { %9299 = vst [vmem:[#allocation26_spill] sm:$0xff] %v6803_v63 }
 0x132   :  { %421 = vrot.lane.b32.xlu1 %v358_v5, %s6347_s14  ;;  %773 = vrot.lane.b32.xlu0 %v715_v11, %s6349_s16 }
 0x134   :  { %v6813_v12 = vpop.permute.xlu1 %574  ;;  %v6815_v19 = vpop.permute.xlu0 %755 }
 0x136   :  { %767 = vrot.lane.b32.xlu1 %v712_v22, %s6349_s16  ;;  %765 = vrot.lane.b32.xlu0 %v711_v27, %s6349_s16  ;;  %v181_v22 = vmul.f32 %v6619_v3, %v6505_v21  ;;  %v538_v27 = vmul.f32 %v6633_v9, %v6517_v28 }
 0x138   :  { %v6823_v31 = vpop.permute.xlu1 %576  ;;  %v6825_v39 = vpop.permute.xlu0 %759 }
 0x13a   :  { %771 = vrot.lane.b32.xlu1 %v714_v43, %s6349_s16  ;;  %250 = vrot.lane.b32.xlu0 %v182_v48, %s6346_s1 }
 0x13c   :  { %v6833_v52 = vpop.permute.xlu0 %753  ;;  %v6839_v5 = vpop.permute.xlu1 %580 }
 0x13d   :  { %9300 = vst [vmem:[#allocation27_spill] sm:$0xff] %v6833_v52  ;;  %9301 = vst [vmem:[#allocation28_spill] sm:$0xff] %v6839_v5 }
 0x13e   :  { %415 = vrot.lane.b32.xlu1 %v355_v59, %s6347_s14  ;;  %254 = vrot.lane.b32.xlu0 %v184_v62, %s6346_s1  ;;  %v183_v59 = vmul.f32 %v6619_v3, %v6502_v20  ;;  %v540_v62 = vmul.f32 %v6633_v9, %v6533_v34 }
 0x140   :  { %v6843_v11 = vpop.permute.xlu0 %936  ;;  %v6851_v43 = vpop.permute.xlu1 %757 }
 0x142   :  { %248 = vrot.lane.b32.xlu1 %v181_v22, %s6346_s1  ;;  %600 = vrot.lane.b32.xlu0 %v538_v27, %s6348_s15  ;;  %v537_v22 = vmul.f32 %v6633_v9, %v6505_v21  ;;  %v894_v27 = vmul.f32 %v6601_v60, %v6517_v28 }
 0x144   :  { %v6853_v48 = vpop.permute.xlu0 %940  ;;  %v6867_v55 = vpop.permute.xlu1 %761 }
 0x145   :  { %9303 = vst [vmem:[#allocation30_spill] sm:$0xff] %v6867_v55  ;;  %v1077_v55 = vmul.f32 %v6685_v41, %v6533_v34 }
 0x146   :  { %252 = vrot.lane.b32.xlu1 %v183_v59, %s6346_s1  ;;  %604 = vrot.lane.b32.xlu0 %v540_v62, %s6348_s15  ;;  %v539_v59 = vmul.f32 %v6633_v9, %v6502_v20  ;;  %v896_v62 = vmul.f32 %v6601_v60, %v6533_v34 }
 0x148   :  { %v6861_v61 = vpop.permute.xlu0 %934  ;;  %v6879_v58 = vpop.permute.xlu1 %938 }
 0x149   :  { %9302 = vst [vmem:[#allocation29_spill] sm:$0xff] %v6861_v61  ;;  %v1075_v61 = vmul.f32 %v6685_v41, %v6517_v28 }
 0x14a   :  { %598 = vrot.lane.b32.xlu1 %v537_v22, %s6348_s15  ;;  %950 = vrot.lane.b32.xlu0 %v894_v27, %s6350_s17  ;;  %v536_v22 = vmul.f32 %v6633_v9, %v6520_v29  ;;  %v180_v9 = vmul.f32 %v6619_v3, %v6520_v29  ;;  %v363_v3 = vmul.f32 %v6641_v13, %v6517_v28 }
 0x14c   :  { %v6871_v49 = vpop.permute.xlu0 %1119 }
 0x14e   :  { %602 = vrot.lane.b32.xlu1 %v539_v59, %s6348_s15  ;;  %954 = vrot.lane.b32.xlu0 %v896_v62, %s6350_s17  ;;  %v362_v59 = vmul.f32 %v6641_v13, %v6505_v21  ;;  %v6893_v62 = vpop.permute.xlu1 %942 }
 0x14f   :  { %9305 = vst [vmem:[#allocation32_spill] sm:$0xff] %v6893_v62 }
 0x150   :  { %v6885_v27 = vpop.permute.xlu0 %1123 }
 0x151   :  { %9304 = vst [vmem:[#allocation31_spill] sm:$0xff] %v6885_v27  ;;  %v719_v27 = vmul.f32 %v6651_v18, %v6517_v28 }
 0x152   :  { %948 = vrot.lane.b32.xlu1 %v893_v53, %s6350_s17  ;;  %596 = vrot.lane.b32.xlu0 %v536_v22, %s6348_s15  ;;  %v364_v53 = vmul.f32 %v6641_v13, %v6502_v20  ;;  %v6905_v22 = vpop.permute.xlu1 %1117 }
 0x154   :  { %v6897_v50 = vpop.permute.xlu0 %1115 }
 0x155   :  { %9306 = vst [vmem:[#allocation33_spill] sm:$0xff] %v6897_v50  ;;  %v365_v50 = vmul.f32 %v6641_v13, %v6533_v34 }
 0x156   :  { %952 = vrot.lane.b32.xlu1 %v895_v45, %s6350_s17  ;;  %429 = vrot.lane.b32.xlu0 %v362_v59, %s6347_s14  ;;  %v718_v45 = vmul.f32 %v6651_v18, %v6505_v21 }
 0x158   :  { %v6911_v59 = vpop.permute.xlu0 %1300 }
 0x15a   :  { %246 = vrot.lane.b32.xlu1 %v180_v9, %s6346_s1  ;;  %433 = vrot.lane.b32.xlu0 %v364_v53, %s6347_s14  ;;  %v720_v9 = vmul.f32 %v6651_v18, %v6502_v20  ;;  %v6919_v53 = vpop.permute.xlu1 %1121 }
 0x15c   :  { %v6923_v60 = vpop.permute.xlu0 %1304 }
 0x15d   :  { %9307 = vst [vmem:[#allocation34_spill] sm:$0xff] %v6923_v60 }
 0x15e   :  { %946 = vrot.lane.b32.xlu1 %v892_v42, %s6350_s17  ;;  %779 = vrot.lane.b32.xlu0 %v718_v45, %s6349_s16  ;;  %v1074_v42 = vmul.f32 %v6685_v41, %v6505_v21 }
 0x162   :  { %431 = vrot.lane.b32.xlu1 %v363_v3, %s6347_s14  ;;  %783 = vrot.lane.b32.xlu0 %v720_v9, %s6349_s16  ;;  %v1076_v3 = vmul.f32 %v6685_v41, %v6502_v20  ;;  %v6937_v9 = vpop.permute.xlu0 %1479 }
 0x165   :  { %v6929_v45 = vpop.permute.xlu1 %1600 }
 0x166   :  { %9308 = vst [vmem:[#allocation35_spill] sm:$0xff] %v6929_v45  ;;  %435 = vrot.lane.b32.xlu1 %v365_v50, %s6347_s14  ;;  %1129 = vrot.lane.b32.xlu0 %v1074_v42, %s6351_s19  ;;  %v1595_v50 = vld [vmem:[%s9155_s2 + $0x8] sm:$0xff]  ;;  %v721_v42 = vmul.f32 %v6651_v18, %v6533_v34  ;;  %v6951_v62 = vpop.permute.xlu0 %1483 }
 0x169   :  { %v6939_v60 = vpop.permute.xlu1 %1298 }
 0x16a   :  { %781 = vrot.lane.b32.xlu1 %v719_v27, %s6349_s16  ;;  %1133 = vrot.lane.b32.xlu0 %v1076_v3, %s6351_s19  ;;  %v717_v27 = vmul.f32 %v6651_v18, %v6520_v29  ;;  %v361_v18 = vmul.f32 %v6641_v13, %v6520_v29 }
 0x16d   :  { %v6948_v45 = vpop.permute.xlu1 %1302 }
 0x16e   :  { %785 = vrot.lane.b32.xlu1 %v721_v42, %s6349_s16  ;;  %1605 = vperm.xlu0 %5950, %v1595_v50   ;;  %v167_v50 = vmul.f32 %v6509_v24, %v6458_v7  ;;  %v6965_v42 = vpop.permute.xlu0 %1477  ;;  %v1073_v24 = vmul.f32 %v6685_v41, %v6520_v29 }
 0x171   :  { %v6957_v3 = vpop.permute.xlu1 %1296 }
 0x172   :  { %9309 = vst [vmem:[#allocation36_spill] sm:$0xff] %v6957_v3  ;;  %1131 = vrot.lane.b32.xlu1 %v1075_v61, %s6351_s19  ;;  %777 = vrot.lane.b32.xlu0 %v717_v27, %s6349_s16  ;;  %v544_v61 = vmul.f32 %v6663_v26, %v6517_v28 }
 0x175   :  { %v6967_v52 = vpop.permute.xlu1 %1481 }
 0x176   :  { %1135 = vrot.lane.b32.xlu1 %v1077_v55, %s6351_s19  ;;  %220 = vrot.lane.b32.xlu0 %v167_v50, %s6346_s1  ;;  %v546_v55 = vmul.f32 %v6663_v26, %v6533_v34 }
 0x179   :  { %v6975_v27 = vpop.permute.xlu1 %1485  ;;  %v6977_v3 = vpop.permute.xlu0 %83 }
 0x17a   :  { %9310 = vst [vmem:[#allocation37_spill] sm:$0xff] %v6975_v27  ;;  %9311 = vst [vmem:[#allocation38_spill] sm:$0xff] %v6977_v3  ;;  %427 = vrot.lane.b32.xlu1 %v361_v18, %s6347_s14  ;;  %612 = vrot.lane.b32.xlu0 %v544_v61, %s6348_s15  ;;  %v543_v3 = vmul.f32 %v6663_v26, %v6505_v21  ;;  %v900_v18 = vmul.f32 %v6673_v32, %v6517_v28 }
 0x17d   :  { %v6985_v50 = vpop.permute.xlu1 %78  ;;  %v6987_v13 = vpop.permute.xlu0 %226 }
 0x17e   :  { %9312 = vst [vmem:[#allocation39_spill] sm:$0xff] %v6985_v50  ;;  %9313 = vst [vmem:[#allocation40_spill] sm:$0xff] %v6987_v13  ;;  %1127 = vrot.lane.b32.xlu1 %v1073_v24, %s6351_s19  ;;  %616 = vrot.lane.b32.xlu0 %v546_v55, %s6348_s15  ;;  %v545_v50 = vmul.f32 %v6663_v26, %v6502_v20  ;;  %v902_v24 = vmul.f32 %v6673_v32, %v6533_v34 }
 0x181   :  { %v6995_v61 = vpop.permute.xlu1 %88  ;;  %v6997_v41 = vpop.permute.xlu0 %230 }
 0x182   :  { %9314 = vst [vmem:[#allocation41_spill] sm:$0xff] %v6995_v61  ;;  %9315 = vst [vmem:[#allocation42_spill] sm:$0xff] %v6997_v41  ;;  %610 = vrot.lane.b32.xlu1 %v543_v3, %s6348_s15  ;;  %962 = vrot.lane.b32.xlu0 %v900_v18, %s6350_s17  ;;  %v899_v61 = vmul.f32 %v6673_v32, %v6505_v21  ;;  %v1256_v3 = vmul.f32 %v6695_v46, %v6517_v28 }
 0x185   :  { %v7005_v55 = vpop.permute.xlu1 %224  ;;  %v7007_v13 = vpop.permute.xlu0 %405 }
 0x186   :  { %9316 = vst [vmem:[#allocation43_spill] sm:$0xff] %v7005_v55  ;;  %9317 = vst [vmem:[#allocation44_spill] sm:$0xff] %v7007_v13  ;;  %614 = vrot.lane.b32.xlu1 %v545_v50, %s6348_s15  ;;  %966 = vrot.lane.b32.xlu0 %v902_v24, %s6350_s17  ;;  %v901_v13 = vmul.f32 %v6673_v32, %v6502_v20  ;;  %v1258_v50 = vmul.f32 %v6695_v46, %v6533_v34 }
 0x189   :  { %v7015_v18 = vpop.permute.xlu1 %228  ;;  %v7017_v41 = vpop.permute.xlu0 %409 }
 0x18a   :  { %9318 = vst [vmem:[#allocation45_spill] sm:$0xff] %v7015_v18  ;;  %9319 = vst [vmem:[#allocation46_spill] sm:$0xff] %v7017_v41  ;;  %960 = vrot.lane.b32.xlu1 %v899_v61, %s6350_s17  ;;  %1312 = vrot.lane.b32.xlu0 %v1256_v3, %s6352_s22  ;;  %v1255_v41 = vmul.f32 %v6695_v46, %v6505_v21  ;;  %v898_v61 = vmul.f32 %v6673_v32, %v6520_v29 }
 0x18d   :  { %v7025_v24 = vpop.permute.xlu1 %222  ;;  %v7027_v55 = vpop.permute.xlu0 %403 }
 0x18e   :  { %9320 = vst [vmem:[#allocation47_spill] sm:$0xff] %v7025_v24  ;;  %9321 = vst [vmem:[#allocation48_spill] sm:$0xff] %v7027_v55  ;;  %964 = vrot.lane.b32.xlu1 %v901_v13, %s6350_s17  ;;  %1316 = vrot.lane.b32.xlu0 %v1258_v50, %s6352_s22  ;;  %v1257_v55 = vmul.f32 %v6695_v46, %v6502_v20  ;;  %v348_v13 = vmul.f32 %v6530_v33, %v6458_v7 }
 0x18f   :  { %v1254_v33 = vmul.f32 %v6695_v46, %v6520_v29 }
 0x191   :  { %v7035_v3 = vpop.permute.xlu1 %407  ;;  %v7037_v18 = vpop.permute.xlu0 %238 }
 0x192   :  { %9322 = vst [vmem:[#allocation49_spill] sm:$0xff] %v7037_v18  ;;  %1310 = vrot.lane.b32.xlu1 %v1255_v41, %s6352_s22  ;;  %958 = vrot.lane.b32.xlu0 %v898_v61, %s6350_s17  ;;  %v542_v18 = vmul.f32 %v6663_v26, %v6520_v29  ;;  %v725_v41 = vmul.f32 %v6683_v40, %v6517_v28 }
 0x195   :  { %v7045_v50 = vpop.permute.xlu1 %411  ;;  %v7047_v24 = vpop.permute.xlu0 %242 }
 0x196   :  { %9323 = vst [vmem:[#allocation50_spill] sm:$0xff] %v7045_v50  ;;  %9324 = vst [vmem:[#allocation51_spill] sm:$0xff] %v7047_v24  ;;  %1314 = vrot.lane.b32.xlu1 %v1257_v55, %s6352_s22  ;;  %401 = vrot.lane.b32.xlu0 %v348_v13, %s6347_s14  ;;  %v727_v55 = vmul.f32 %v6683_v40, %v6533_v34 }
 0x199   :  { %v7055_v61 = vpop.permute.xlu1 %236  ;;  %v7057_v32 = vpop.permute.xlu0 %588 }
 0x19a   :  { %9325 = vst [vmem:[#allocation52_spill] sm:$0xff] %v7055_v61  ;;  %608 = vrot.lane.b32.xlu1 %v542_v18, %s6348_s15  ;;  %793 = vrot.lane.b32.xlu0 %v725_v41, %s6349_s16  ;;  %v724_v61 = vmul.f32 %v6683_v40, %v6505_v21  ;;  %v1081_v18 = vmul.f32 %v6693_v44, %v6517_v28 }
 0x19d   :  { %v7065_v13 = vpop.permute.xlu1 %240  ;;  %v7067_v24 = vpop.permute.xlu0 %592 }
 0x19e   :  { %9326 = vst [vmem:[#allocation53_spill] sm:$0xff] %v7065_v13  ;;  %9327 = vst [vmem:[#allocation54_spill] sm:$0xff] %v7067_v24  ;;  %1308 = vrot.lane.b32.xlu1 %v1254_v33, %s6352_s22  ;;  %797 = vrot.lane.b32.xlu0 %v727_v55, %s6349_s16  ;;  %v726_v13 = vmul.f32 %v6683_v40, %v6502_v20  ;;  %v1083_v33 = vmul.f32 %v6693_v44, %v6533_v34 }
 0x1a1   :  { %v7075_v41 = vpop.permute.xlu1 %586  ;;  %v7077_v50 = vpop.permute.xlu0 %584 }
 0x1a2   :  { %9328 = vst [vmem:[#allocation55_spill] sm:$0xff] %v7075_v41  ;;  %9329 = vst [vmem:[#allocation56_spill] sm:$0xff] %v7077_v50  ;;  %791 = vrot.lane.b32.xlu1 %v724_v61, %s6349_s16  ;;  %1143 = vrot.lane.b32.xlu0 %v1081_v18, %s6351_s19  ;;  %v1080_v50 = vmul.f32 %v6693_v44, %v6505_v21  ;;  %v1437_v61 = vmul.f32 %v6719_v56, %v6517_v28 }
 0x1a5   :  { %v7085_v55 = vpop.permute.xlu1 %590  ;;  %v7087_v24 = vpop.permute.xlu0 %419 }
 0x1a6   :  { %9330 = vst [vmem:[#allocation57_spill] sm:$0xff] %v7085_v55  ;;  %9331 = vst [vmem:[#allocation58_spill] sm:$0xff] %v7087_v24  ;;  %795 = vrot.lane.b32.xlu1 %v726_v13, %s6349_s16  ;;  %1147 = vrot.lane.b32.xlu0 %v1083_v33, %s6351_s19  ;;  %v1082_v24 = vmul.f32 %v6693_v44, %v6502_v20  ;;  %v1439_v13 = vmul.f32 %v6719_v56, %v6533_v34 }
 0x1a9   :  { %v7095_v18 = vpop.permute.xlu1 %234  ;;  %v7097_v41 = vpop.permute.xlu0 %423 }
 0x1aa   :  { %9332 = vst [vmem:[#allocation59_spill] sm:$0xff] %v7095_v18  ;;  %9333 = vst [vmem:[#allocation60_spill] sm:$0xff] %v7097_v41  ;;  %1141 = vrot.lane.b32.xlu1 %v1080_v50, %s6351_s19  ;;  %1493 = vrot.lane.b32.xlu0 %v1437_v61, %s6353_s3  ;;  %v1436_v18 = vmul.f32 %v6719_v56, %v6505_v21  ;;  %v723_v50 = vmul.f32 %v6683_v40, %v6520_v29 }
 0x1ad   :  { %v7105_v33 = vpop.permute.xlu1 %417  ;;  %v7107_v55 = vpop.permute.xlu0 %769 }
 0x1ae   :  { %9334 = vst [vmem:[#allocation61_spill] sm:$0xff] %v7105_v33  ;;  %9335 = vst [vmem:[#allocation62_spill] sm:$0xff] %v7107_v55  ;;  %1145 = vrot.lane.b32.xlu1 %v1082_v24, %s6351_s19  ;;  %1497 = vrot.lane.b32.xlu0 %v1439_v13, %s6353_s3  ;;  %v1438_v33 = vmul.f32 %v6719_v56, %v6502_v20  ;;  %v1435_v24 = vmul.f32 %v6719_v56, %v6520_v29 }
 0x1b1   :  { %v7115_v61 = vpop.permute.xlu1 %421  ;;  %v7117_v41 = vpop.permute.xlu0 %773 }
 0x1b2   :  { %9336 = vst [vmem:[#allocation63_spill] sm:$0xff] %v7115_v61  ;;  %9337 = vst [vmem:[#allocation64_spill] sm:$0xff] %v7117_v41  ;;  %1491 = vrot.lane.b32.xlu1 %v1436_v18, %s6353_s3  ;;  %789 = vrot.lane.b32.xlu0 %v723_v50, %s6349_s16  ;;  %v1596_v18 = vld [vmem:[%s9155_s2 + $0x10] sm:$0xff]  ;;  %v905_v50 = vmul.f32 %v6705_v10, %v6505_v21 }
 0x1b5   :  { %v7125_v13 = vpop.permute.xlu1 %767  ;;  %v7127_v55 = vpop.permute.xlu0 %765 }
 0x1b6   :  { %9338 = vst [vmem:[#allocation65_spill] sm:$0xff] %v7125_v13  ;;  %9339 = vst [vmem:[#allocation66_spill] sm:$0xff] %v7127_v55  ;;  %1495 = vrot.lane.b32.xlu1 %v1438_v33, %s6353_s3  ;;  %1489 = vrot.lane.b32.xlu0 %v1435_v24, %s6353_s3  ;;  %v1079_v55 = vmul.f32 %v6693_v44, %v6520_v29  ;;  %v907_v33 = vmul.f32 %v6705_v10, %v6502_v20 }
 0x1b9   :  { %v7136_v61 = vpop.permute.xlu1 %771  ;;  %v7138_v41 = vpop.permute.xlu0 %250 }
 0x1ba   :  { %9340 = vst [vmem:[#allocation67_spill] sm:$0xff] %v7136_v61  ;;  %9341 = vst [vmem:[#allocation68_spill] sm:$0xff] %v7138_v41  ;;  %1610 = vperm.xlu1 %5953, %v1596_v18   ;;  %972 = vrot.lane.b32.xlu0 %v905_v50, %s6350_s17  ;;  %v529_v41 = vmul.f32 %v6522_v30, %v6458_v7  ;;  %v1261_v18 = vmul.f32 %v6707_v51, %v6505_v21 }
 0x1bd   :  { %v7145_v24 = vpop.permute.xlu1 %415  ;;  %v7147_v13 = vpop.permute.xlu0 %254 }
 0x1be   :  { %9342 = vst [vmem:[#allocation69_spill] sm:$0xff] %v7145_v24  ;;  %9343 = vst [vmem:[#allocation70_spill] sm:$0xff] %v7147_v13  ;;  %1139 = vrot.lane.b32.xlu1 %v1079_v55, %s6351_s19  ;;  %976 = vrot.lane.b32.xlu0 %v907_v33, %s6350_s17  ;;  %v906_v13 = vmul.f32 %v6705_v10, %v6517_v28  ;;  %v1263_v55 = vmul.f32 %v6707_v51, %v6502_v20 }
 0x1c1   :  { %v7155_v50 = vpop.permute.xlu1 %248  ;;  %v7157_v61 = vpop.permute.xlu0 %600 }
 0x1c2   :  { %9344 = vst [vmem:[#allocation71_spill] sm:$0xff] %v7155_v50  ;;  %9345 = vst [vmem:[#allocation72_spill] sm:$0xff] %v7157_v61  ;;  %582 = vrot.lane.b32.xlu1 %v529_v41, %s6348_s15  ;;  %1322 = vrot.lane.b32.xlu0 %v1261_v18, %s6352_s22  ;;  %v908_v50 = vmul.f32 %v6705_v10, %v6533_v34  ;;  %v904_v41 = vmul.f32 %v6705_v10, %v6520_v29 }
 0x1c5   :  { %v7165_v33 = vpop.permute.xlu1 %252  ;;  %v7167_v30 = vpop.permute.xlu0 %604 }
 0x1c6   :  { %9346 = vst [vmem:[#allocation73_spill] sm:$0xff] %v7165_v33  ;;  %9347 = vst [vmem:[#allocation74_spill] sm:$0xff] %v7167_v30  ;;  %974 = vrot.lane.b32.xlu1 %v906_v13, %s6350_s17  ;;  %1326 = vrot.lane.b32.xlu0 %v1263_v55, %s6352_s22  ;;  %v1262_v33 = vmul.f32 %v6707_v51, %v6517_v28  ;;  %v710_v13 = vmul.f32 %v6535_v35, %v6458_v7 }
 0x1c7   :  { %v1260_v35 = vmul.f32 %v6707_v51, %v6520_v29 }
 0x1c9   :  { %v7175_v18 = vpop.permute.xlu1 %598  ;;  %v7177_v24 = vpop.permute.xlu0 %950 }
 0x1ca   :  { %9348 = vst [vmem:[#allocation75_spill] sm:$0xff] %v7175_v18  ;;  %9349 = vst [vmem:[#allocation76_spill] sm:$0xff] %v7177_v24  ;;  %978 = vrot.lane.b32.xlu1 %v908_v50, %s6350_s17  ;;  %970 = vrot.lane.b32.xlu0 %v904_v41, %s6350_s17  ;;  %v1264_v18 = vmul.f32 %v6707_v51, %v6533_v34  ;;  %v1087_v50 = vmul.f32 %v6717_v54, %v6517_v28 }
 0x1cd   :  { %v7185_v55 = vpop.permute.xlu1 %602  ;;  %v7187_v30 = vpop.permute.xlu0 %954 }
 0x1ce   :  { %9350 = vst [vmem:[#allocation77_spill] sm:$0xff] %v7185_v55  ;;  %9351 = vst [vmem:[#allocation78_spill] sm:$0xff] %v7187_v30  ;;  %1324 = vrot.lane.b32.xlu1 %v1262_v33, %s6352_s22  ;;  %763 = vrot.lane.b32.xlu0 %v710_v13, %s6349_s16  ;;  %v1089_v33 = vmul.f32 %v6717_v54, %v6533_v34 }
 0x1d1   :  { %v7195_v41 = vpop.permute.xlu1 %948  ;;  %v7197_v61 = vpop.permute.xlu0 %596 }
 0x1d2   :  { %9352 = vst [vmem:[#allocation79_spill] sm:$0xff] %v7195_v41  ;;  %9353 = vst [vmem:[#allocation80_spill] sm:$0xff] %v7197_v61  ;;  %1328 = vrot.lane.b32.xlu1 %v1264_v18, %s6352_s22  ;;  %1155 = vrot.lane.b32.xlu0 %v1087_v50, %s6351_s19  ;;  %v1086_v61 = vmul.f32 %v6717_v54, %v6505_v21  ;;  %v1443_v18 = vmul.f32 %v6733_v2, %v6517_v28 }
 0x1d5   :  { %v7205_v13 = vpop.permute.xlu1 %952  ;;  %v7207_v55 = vpop.permute.xlu0 %429 }
 0x1d6   :  { %9354 = vst [vmem:[#allocation81_spill] sm:$0xff] %v7205_v13  ;;  %9355 = vst [vmem:[#allocation82_spill] sm:$0xff] %v7207_v55  ;;  %1320 = vrot.lane.b32.xlu1 %v1260_v35, %s6352_s22  ;;  %1159 = vrot.lane.b32.xlu0 %v1089_v33, %s6351_s19  ;;  %v1088_v55 = vmul.f32 %v6717_v54, %v6502_v20  ;;  %v1445_v35 = vmul.f32 %v6733_v2, %v6533_v34 }
 0x1d9   :  { %v7215_v50 = vpop.permute.xlu1 %246  ;;  %v7217_v51 = vpop.permute.xlu0 %433 }
 0x1da   :  { %9356 = vst [vmem:[#allocation83_spill] sm:$0xff] %v7215_v50  ;;  %9357 = vst [vmem:[#allocation84_spill] sm:$0xff] %v7217_v51  ;;  %1153 = vrot.lane.b32.xlu1 %v1086_v61, %s6351_s19  ;;  %1505 = vrot.lane.b32.xlu0 %v1443_v18, %s6353_s3  ;;  %v1442_v61 = vmul.f32 %v6733_v2, %v6505_v21  ;;  %v1085_v18 = vmul.f32 %v6717_v54, %v6520_v29 }
 0x1db   :  { %v623_v54 = vsel %vm620_vm2, %v6823_v31, %v6795_v57 }
 0x1dd   :  { %v7225_v33 = vpop.permute.xlu1 %946  ;;  %v7227_v30 = vpop.permute.xlu0 %779 }
 0x1de   :  { %9358 = vst [vmem:[#allocation85_spill] sm:$0xff] %v7225_v33  ;;  %9359 = vst [vmem:[#allocation86_spill] sm:$0xff] %v7227_v30  ;;  %1157 = vrot.lane.b32.xlu1 %v1088_v55, %s6351_s19  ;;  %1509 = vrot.lane.b32.xlu0 %v1445_v35, %s6353_s3  ;;  %v124_v33 = vmul.f32 %v6517_v28, %v6745_v8  ;;  %v123_v30 = vmul.f32 %v6505_v21, %v6745_v8 }
 0x1df   :  { %v260_v55 = vsel %vm258_vm0, %v6755_v17, %v6763_v23  ;;  %v261_v35 = vsel %vm258_vm0, %v6763_v23, %v6753_v14 }
 0x1e0   :  { %v304_v23 = vadd.f32 %v260_v55, %v123_v30  ;;  %v305_v24 = vadd.f32 %v261_v35, %v124_v33  ;;  %v804_v55 = vsel %vm801_vm3, %v6851_v43, %v6825_v39 }
 0x1e1   :  { %v7235_v51 = vpop.permute.xlu1 %431  ;;  %v7237_v50 = vpop.permute.xlu0 %783 }
 0x1e2   :  { %9360 = vst [vmem:[#allocation87_spill] sm:$0xff] %v7235_v51  ;;  %9361 = vst [vmem:[#allocation88_spill] sm:$0xff] %v7237_v50  ;;  %1503 = vrot.lane.b32.xlu1 %v1442_v61, %s6353_s3  ;;  %1151 = vrot.lane.b32.xlu0 %v1085_v18, %s6351_s19  ;;  %v1444_v51 = vmul.f32 %v6733_v2, %v6502_v20  ;;  %v891_v50 = vmul.f32 %v6543_v38, %v6458_v7 }
 0x1e3   :  { %v441_v61 = vsel %vm439_vm1, %v6783_v47, %v6793_v16  ;;  %v442_v18 = vsel %vm439_vm1, %v6793_v16, %v6775_v37  ;;  %v622_v38 = vsel %vm620_vm2, %v6813_v12, %v6823_v31  ;;  %v1597_v16 = vld [vmem:[%s9155_s2 + $0x18] sm:$0xff]  ;;  %s6354_s2 = smov 118  }
 0x1e4   :  { %v485_v30 = vadd.f32 %v441_v61, %v304_v23  ;;  %v486_v33 = vadd.f32 %v442_v18, %v305_v24  ;;  %v122_v24 = vmul.f32 %v6520_v29, %v6745_v8  ;;  %v984_v61 = vsel %vm982_vm4, %v6843_v11, %v6879_v58 }
 0x1e5   :  { %v7261_v13 = vpop.permute.xlu1 %435  ;;  %v7263_v41 = vpop.permute.xlu0 %1129  ;;  %v1441_v18 = vmul.f32 %v6733_v2, %v6520_v29 }
 0x1e6   :  { %9362 = vst [vmem:[#allocation89_spill] sm:$0xff] %v7261_v13  ;;  %9363 = vst [vmem:[#allocation90_spill] sm:$0xff] %v7263_v41  ;;  %1507 = vrot.lane.b32.xlu1 %v1444_v51, %s6353_s3  ;;  %944 = vrot.lane.b32.xlu0 %v891_v50, %s6350_s17  ;;  %v1268_v51 = vmul.f32 %v6731_v1, %v6517_v28  ;;  %v803_v50 = vsel %vm801_vm3, %v6815_v19, %v6851_v43 }
 0x1e7   :  { %v666_v13 = vadd.f32 %v622_v38, %v485_v30  ;;  %v667_v41 = vadd.f32 %v623_v54, %v486_v33  ;;  %v985_v43 = vsel %vm982_vm4, %v6879_v58, %v6853_v48  ;;  %v1270_v38 = vmul.f32 %v6731_v1, %v6533_v34 }
 0x1e8   :  { %v1165_v30 = vsel %vm1163_vm5, %v6905_v22, %v6871_v49  ;;  %v1166_v58 = vsel %vm1163_vm5, %v6871_v49, %v6919_v53  ;;  %v262_v49 = vsel %vm258_vm0, %v6753_v14, %v6773_v36  ;;  %v443_v14 = vsel %vm439_vm1, %v6775_v37, %v6803_v63  ;;  %v9423_v36 = vld [vmem:[#allocation54_spill] sm:$0xff] }
 0x1e9   :  { %v7284_v31 = vpop.permute.xlu1 %781  ;;  %v7286_v35 = vpop.permute.xlu0 %1133  ;;  %v847_v23 = vadd.f32 %v803_v50, %v666_v13  ;;  %v848_v54 = vadd.f32 %v804_v55, %v667_v41  ;;  %v1072_v41 = vmul.f32 %v6613_v0, %v6458_v7  ;;  %v1347_v0 = vsel %vm1344_vm6, %v6911_v59, %v6948_v45 }
 0x1ea   :  { %1615 = vperm.xlu1 %5953, %v1597_v16   ;;  %1336 = vrot.lane.b32.xlu0 %v1268_v51, %s6352_s22  ;;  %v259_v16 = vsel %vm258_vm0, %v6765_v25, %v6755_v17  ;;  %v125_v51 = vmul.f32 %v6502_v20, %v6745_v8  ;;  %v1346_v25 = vsel %vm1344_vm6, %v6939_v60, %v6911_v59 }
 0x1eb   :  { %v1028_v50 = vadd.f32 %v984_v61, %v847_v23  ;;  %v1029_v17 = vadd.f32 %v985_v43, %v848_v54  ;;  %v303_v55 = vadd.f32 %v259_v16, %v122_v24  ;;  %v440_v23 = vsel %vm439_vm1, %v6785_v15, %v6783_v47 }
 0x1ec   :  { %v1527_v54 = vsel %vm1525_vm7, %v6937_v9, %v6967_v52  ;;  %v1528_v59 = vsel %vm1525_vm7, %v6967_v52, %v6951_v62  ;;  %v306_v16 = vadd.f32 %v262_v49, %v125_v51  ;;  %v621_v37 = vsel %vm620_vm2, %v6805_v4, %v6813_v12 }
 0x1ed   :  { %v7310_v33 = vpop.permute.xlu1 %785  ;;  %v7312_v13 = vpop.permute.xlu0 %1605  ;;  %v1209_v61 = vadd.f32 %v1165_v30, %v1028_v50  ;;  %v1210_v43 = vadd.f32 %v1166_v58, %v1029_v17  ;;  %v624_v47 = vsel %vm620_vm2, %v6795_v57, %v6839_v5  ;;  %v1269_v15 = vmul.f32 %v6731_v1, %v6502_v20 }
 0x1ee   :  { %9364 = vst [vmem:[#allocation91_spill] sm:$0xff] %v7310_v33  ;;  %9365 = vst [vmem:[#allocation92_spill] sm:$0xff] %v7312_v13  ;;  %1501 = vrot.lane.b32.xlu1 %v1441_v18, %s6353_s3  ;;  %1340 = vrot.lane.b32.xlu0 %v1270_v38, %s6352_s22  ;;  %v1267_v18 = vmul.f32 %v6731_v1, %v6505_v21  ;;  %v1449_v52 = vmul.f32 %v6743_v6, %v6517_v28 }
 0x1ef   :  { %v1390_v30 = vadd.f32 %v1346_v25, %v1209_v61  ;;  %v1391_v58 = vadd.f32 %v1347_v0, %v1210_v43  ;;  %v484_v51 = vadd.f32 %v440_v23, %v303_v55  ;;  %v487_v50 = vadd.f32 %v443_v14, %v306_v16  ;;  %v9367_v0 = vld [vmem:[#allocation30_spill] sm:$0xff]  ;;  %v9369_v55 = vld [vmem:[#allocation29_spill] sm:$0xff]  ;;  %v9370_v23 = vld [vmem:[#allocation32_spill] sm:$0xff] }
 0x1f0   :  { %v805_v4 = vsel %vm801_vm3, %v6825_v39, %v9367_v0  ;;  %v1266_v39 = vmul.f32 %v6731_v1, %v6520_v29  ;;  %v1451_v14 = vmul.f32 %v6743_v6, %v6533_v34  ;;  %v9371_v16 = vld [vmem:[#allocation35_spill] sm:$0xff]  ;;  %v728_v63 = vmul.f32 %v6683_v40, %v6458_v7 }
 0x1f1   :  { %v7343_v24 = vpop.permute.xlu1 %1131  ;;  %v7345_v38 = vpop.permute.xlu0 %777  ;;  %v1571_v17 = vadd.f32 %v1527_v54, %v1390_v30  ;;  %v1572_v49 = vadd.f32 %v1528_v59, %v1391_v58  ;;  %v665_v61 = vadd.f32 %v621_v37, %v484_v51  ;;  %v668_v43 = vadd.f32 %v624_v47, %v487_v50  ;;  %v9374_v37 = vld [vmem:[#allocation31_spill] sm:$0xff] }
 0x1f2   :  { %1334 = vrot.lane.b32.xlu1 %v1267_v18, %s6352_s22  ;;  %1125 = vrot.lane.b32.xlu0 %v1072_v41, %s6351_s19  ;;  %v9366_v41 = vld [vmem:[#allocation27_spill] sm:$0xff]  ;;  %v983_v18 = vsel %vm982_vm4, %v9369_v55, %v6843_v11  ;;  %v1167_v11 = vsel %vm1163_vm5, %v6919_v53, %v9374_v37  ;;  %v9379_v53 = vld [vmem:[#allocation36_spill] sm:$0xff] }
 0x1f3   :  { %v802_v25 = vsel %vm801_vm3, %v9366_v41, %v6815_v19  ;;  %v986_v19 = vsel %vm982_vm4, %v6853_v48, %v9370_v23  ;;  %v849_v59 = vadd.f32 %v805_v4, %v668_v43  ;;  %v7382_v30 = vadd.f32 %v9371_v16, %v1571_v17  ;;  %v9375_v48 = vld [vmem:[#allocation33_spill] sm:$0xff]  ;;  %v9378_v17 = vld [vmem:[#allocation34_spill] sm:$0xff] }
 0x1f4   :  { %v846_v54 = vadd.f32 %v802_v25, %v665_v61  ;;  %v7385_v58 = vadd.f32 %v9371_v16, %v1572_v49  ;;  %v1164_v47 = vsel %vm1163_vm5, %v9375_v48, %v6905_v22  ;;  %v1348_v49 = vsel %vm1344_vm6, %v6948_v45, %v9378_v17  ;;  %v9380_v25 = vld [vmem:[#allocation8_spill] sm:$0xff] }
 0x1f5   :  { %v7365_v12 = vpop.permute.xlu1 %1135  ;;  %v7367_v57 = vpop.permute.xlu0 %220  ;;  %9372 = vst [vmem:[#allocation29_spill] sm:$0xff] %v7382_v30  ;;  %v1030_v50 = vadd.f32 %v986_v19, %v849_v59  ;;  %v1345_v41 = vsel %vm1344_vm6, %v9379_v53, %v6939_v60  ;;  %v1448_v22 = vmul.f32 %v6743_v6, %v6505_v21  ;;  %v1253_v4 = vmul.f32 %v9380_v25, %v6458_v7  ;;  %v9384_v53 = vld [vmem:[#allocation11_spill] sm:$0xff] }
 0x1f6   :  { %9368 = vst [vmem:[#allocation27_spill] sm:$0xff] %v7365_v12  ;;  %1338 = vrot.lane.b32.xlu1 %v1269_v15, %s6352_s22  ;;  %1517 = vrot.lane.b32.xlu0 %v1449_v52, %s6353_s3  ;;  %9373 = vst [vmem:[#allocation93_spill] sm:$0xff] %v7385_v58  ;;  %v1027_v51 = vadd.f32 %v983_v18, %v846_v54  ;;  %v9233_v55 = vmax.f32 %v7382_v30, 0.0  ;;  %v9232_v18 = vmax.f32 %v7385_v58, 0.0  ;;  %v9404_v30 = vld [vmem:[#allocation40_spill] sm:$0xff] }
 0x1f7   :  { %v1211_v61 = vadd.f32 %v1167_v11, %v1030_v50  ;;  %v1529_v45 = vsel %vm1525_vm7, %v6951_v62, %v6975_v27  ;;  %v1450_v59 = vmul.f32 %v6743_v6, %v6502_v20  ;;  %v1526_v62 = vsel %vm1525_vm7, %v6965_v42, %v6937_v9  ;;  %v9408_v27 = vld [vmem:[#allocation47_spill] sm:$0xff] }
 0x1f8   :  { %v1208_v43 = vadd.f32 %v1164_v47, %v1027_v51  ;;  %v5954_v11 = vpack.i.bf16 %v9232_v18, %v9233_v55  ;;  %v1084_v23 = vmul.f32 %v6693_v44, %v6458_v7 }
 0x1f9   :  { %v7393_v15 = vpop.permute.xlu1 %427  ;;  %v7395_v52 = vpop.permute.xlu0 %612  ;;  %v1392_v60 = vadd.f32 %v1348_v49, %v1211_v61  ;;  %v1447_v49 = vmul.f32 %v6743_v6, %v6520_v29 }
 0x1fa   :  { %9376 = vst [vmem:[#allocation33_spill] sm:$0xff] %v7393_v15  ;;  %9377 = vst [vmem:[#allocation94_spill] sm:$0xff] %v7395_v52  ;;  %1332 = vrot.lane.b32.xlu1 %v1266_v39, %s6352_s22  ;;  %1521 = vrot.lane.b32.xlu0 %v1451_v14, %s6353_s3  ;;  %v1389_v14 = vadd.f32 %v1345_v41, %v1208_v43  ;;  %v173_v41 = vmul.f32 %v9384_v53, %v6458_v7  ;;  %v9388_v43 = vld [vmem:[#allocation12_spill] sm:$0xff]  ;;  %v9391_v53 = vld [vmem:[#allocation17_spill] sm:$0xff] }
 0x1fb   :  { %v1573_v54 = vadd.f32 %v1529_v45, %v1392_v60  ;;  %v179_v45 = vmul.f32 %v9388_v43, %v6458_v7  ;;  %v9421_v52 = vld [vmem:[#allocation56_spill] sm:$0xff] }
 0x1fc   :  { %v1570_v51 = vadd.f32 %v1526_v62, %v1389_v14 }
 0x1fd   :  { %v7414_v19 = vpop.permute.xlu1 %1127  ;;  %v7416_v39 = vpop.permute.xlu0 %616  ;;  %v7436_v50 = vadd.f32 %v9371_v16, %v1573_v54 }
 0x1fe   :  { %9381 = vst [vmem:[#allocation36_spill] sm:$0xff] %v7416_v39  ;;  %1515 = vrot.lane.b32.xlu1 %v1448_v22, %s6353_s3  ;;  %1306 = vrot.lane.b32.xlu0 %v1253_v4, %s6352_s22  ;;  %v7447_v42 = vadd.f32 %v9371_v16, %v1570_v51  ;;  %v9387_v4 = vld [vmem:[#allocation9_spill] sm:$0xff]  ;;  %v9416_v39 = vld [vmem:[#allocation50_spill] sm:$0xff] }
 0x1ff   :  { %9383 = vst [vmem:[#allocation95_spill] sm:$0xff] %v7436_v50  ;;  %v9231_v25 = vmax.f32 %v7436_v50, 0.0  ;;  %v1434_v61 = vmul.f32 %v9387_v4, %v6458_v7  ;;  %v9392_v4 = vld [vmem:[#allocation10_spill] sm:$0xff] }
 0x200   :  { %9386 = vst [vmem:[#allocation96_spill] sm:$0xff] %v7447_v42  ;;  %v9234_v54 = vmax.f32 %v7447_v42, 0.0  ;;  %v9405_v42 = vld [vmem:[#allocation43_spill] sm:$0xff] }
 0x201   :  { %v7429_v48 = vpop.permute.xlu1 %610  ;;  %v7431_v47 = vpop.permute.xlu0 %962  ;;  %v265_v16 = vsel %vm258_vm0, %v9405_v42, %v9404_v30  ;;  %v264_v17 = vsel %vm258_vm0, %v9408_v27, %v9405_v42  ;;  %v9411_v27 = vld [vmem:[#allocation21_spill] sm:$0xff] }
 0x202   :  { %9382 = vst [vmem:[#allocation8_spill] sm:$0xff] %v7429_v48  ;;  %1519 = vrot.lane.b32.xlu1 %v1450_v59, %s6353_s3  ;;  %5955 = vrot.lane.b32.xlu0 %v5954_v11, %s6346_s1  ;;  %v9389_v59 = vld [vmem:[#allocation14_spill] sm:$0xff]  ;;  %v5959_v62 = vpack.i.bf16 %v9234_v54, %v9231_v25  ;;  %v903_v42 = vmul.f32 %v9411_v27, %v6458_v7 }
 0x203   :  { %v360_v11 = vmul.f32 %v9389_v59, %v6458_v7  ;;  %v9393_v59 = vld [vmem:[#allocation15_spill] sm:$0xff]  ;;  %v909_v27 = vmul.f32 %v6705_v10, %v6458_v7  ;;  %v9418_v10 = vld [vmem:[#allocation65_spill] sm:$0xff] }
 0x204   :  { %v897_v25 = vmul.f32 %v9393_v59, %v6458_v7  ;;  %v9399_v59 = vld [vmem:[#allocation16_spill] sm:$0xff] }
 0x205   :  { %v7442_v22 = vpop.permute.xlu1 %614  ;;  %v7444_v9 = vpop.permute.xlu0 %966  ;;  %v716_v54 = vmul.f32 %v9399_v59, %v6458_v7  ;;  %v1259_v59 = vmul.f32 %v6695_v46, %v6458_v7  ;;  %v9407_v46 = vld [vmem:[#allocation22_spill] sm:$0xff] }
 0x206   :  { %9385 = vst [vmem:[#allocation11_spill] sm:$0xff] %v7442_v22  ;;  %1513 = vrot.lane.b32.xlu1 %v1447_v49, %s6353_s3  ;;  %232 = vrot.lane.b32.xlu0 %v173_v41, %s6346_s1  ;;  %v185_v41 = vmul.f32 %v9391_v53, %v6458_v7  ;;  %v9395_v53 = vld [vmem:[#allocation13_spill] sm:$0xff]  ;;  %v9419_v22 = vld [vmem:[#allocation24_spill] sm:$0xff] }
 0x207   :  { %v535_v18 = vmul.f32 %v9395_v53, %v6458_v7  ;;  %v547_v53 = vmul.f32 %v6663_v26, %v6458_v7  ;;  %v9403_v26 = vld [vmem:[#allocation19_spill] sm:$0xff]  ;;  %v1090_v48 = vmul.f32 %v9419_v22, %v6458_v7 }
 0x208   :  { %v366_v58 = vmul.f32 %v9403_v26, %v6458_v7  ;;  %v9409_v26 = vld [vmem:[#allocation44_spill] sm:$0xff] }
 0x209   :  { %v7456_v60 = vpop.permute.xlu1 %960  ;;  %v7458_v14 = vpop.permute.xlu0 %1312  ;;  %v446_v37 = vsel %vm439_vm1, %v9409_v26, %v7035_v3 }
 0x20a   :  { %1487 = vrot.lane.b32.xlu1 %v1434_v61, %s6353_s3  ;;  %244 = vrot.lane.b32.xlu0 %v179_v45, %s6346_s1  ;;  %v354_v61 = vmul.f32 %v9392_v4, %v6458_v7  ;;  %v9396_v4 = vld [vmem:[#allocation20_spill] sm:$0xff] }
 0x20b   :  { %v722_v55 = vmul.f32 %v9396_v4, %v6458_v7  ;;  %v9401_v4 = vld [vmem:[#allocation18_spill] sm:$0xff] }
 0x20c   :  { %v541_v50 = vmul.f32 %v9401_v4, %v6458_v7  ;;  %v9406_v4 = vld [vmem:[#allocation39_spill] sm:$0xff] }
 0x20d   :  { %v7469_v51 = vpop.permute.xlu1 %964  ;;  %v7471_v49 = vpop.permute.xlu0 %1316  ;;  %v130_v40 = vmul.f32 %v6517_v28, %v9406_v4 }
 0x20e   :  { %9390 = vst [vmem:[#allocation9_spill] sm:$0xff] %v7471_v49  ;;  %425 = vrot.lane.b32.xlu0 %v360_v11, %s6347_s14  ;;  %5960 = vrot.lane.b32.xlu1 %v5959_v62, %s6346_s1 }
 0x211   :  { %v7479_v43 = vpop.permute.xlu1 %1310  ;;  %v7481_v45 = vpop.permute.xlu0 %958 }
 0x212   :  { %256 = vrot.lane.b32.xlu0 %v185_v41, %s6346_s1  ;;  %413 = vrot.lane.b32.xlu1 %v354_v61, %s6347_s14 }
 0x215   :  { %v7487_v11 = vpop.permute.xlu1 %1314  ;;  %v7489_v62 = vpop.permute.xlu0 %401 }
 0x216   :  { %9394 = vst [vmem:[#allocation12_spill] sm:$0xff] %v7489_v62  ;;  %956 = vrot.lane.b32.xlu0 %v897_v25, %s6350_s17  ;;  %594 = vrot.lane.b32.xlu1 %v535_v18, %s6348_s15  ;;  %v9412_v62 = vld [vmem:[#allocation45_spill] sm:$0xff] }
 0x217   :  { %v266_v44 = vsel %vm258_vm0, %v9404_v30, %v9412_v62 }
 0x219   :  { %v7497_v41 = vpop.permute.xlu1 %608  ;;  %v7499_v61 = vpop.permute.xlu0 %793 }
 0x21a   :  { %9397 = vst [vmem:[#allocation14_spill] sm:$0xff] %v7497_v41  ;;  %9398 = vst [vmem:[#allocation17_spill] sm:$0xff] %v7499_v61  ;;  %787 = vrot.lane.b32.xlu0 %v722_v55, %s6349_s16  ;;  %775 = vrot.lane.b32.xlu1 %v716_v54, %s6349_s16  ;;  %v131_v41 = vmul.f32 %v6502_v20, %v9406_v4 }
 0x21d   :  { %v7507_v25 = vpop.permute.xlu1 %1308  ;;  %v7509_v18 = vpop.permute.xlu0 %797 }
 0x21e   :  { %9400 = vst [vmem:[#allocation10_spill] sm:$0xff] %v7509_v18  ;;  %618 = vrot.lane.b32.xlu0 %v547_v53, %s6348_s15  ;;  %606 = vrot.lane.b32.xlu1 %v541_v50, %s6348_s15  ;;  %v129_v53 = vmul.f32 %v6505_v21, %v9406_v4  ;;  %v1078_v50 = vmul.f32 %v9407_v46, %v6458_v7 }
 0x220   :  { %v310_v0 = vadd.f32 %v265_v16, %v129_v53  ;;  %v9414_v53 = vld [vmem:[#allocation55_spill] sm:$0xff] }
 0x221   :  { %v7517_v55 = vpop.permute.xlu1 %791  ;;  %v7519_v54 = vpop.permute.xlu0 %1143  ;;  %v627_v18 = vsel %vm620_vm2, %v9414_v53, %v7057_v32 }
 0x222   :  { %9402 = vst [vmem:[#allocation15_spill] sm:$0xff] %v7517_v55  ;;  %1318 = vrot.lane.b32.xlu0 %v1259_v59, %s6352_s22  ;;  %437 = vrot.lane.b32.xlu1 %v366_v58, %s6347_s14  ;;  %v7542_v59 = vmul.f32 %v6719_v56, %v6458_v7  ;;  %v128_v58 = vmul.f32 %v6520_v29, %v9406_v4  ;;  %v9413_v56 = vld [vmem:[#allocation42_spill] sm:$0xff] }
 0x223   :  { %v267_v16 = vsel %vm258_vm0, %v9412_v62, %v9413_v56  ;;  %v9415_v62 = vld [vmem:[#allocation46_spill] sm:$0xff]  ;;  %v311_v4 = vadd.f32 %v266_v44, %v130_v40  ;;  %v9425_v44 = vld [vmem:[#allocation79_spill] sm:$0xff] }
 0x224   :  { %v309_v30 = vadd.f32 %v264_v17, %v128_v58  ;;  %v447_v56 = vsel %vm439_vm1, %v7035_v3, %v9415_v62  ;;  %v9417_v55 = vld [vmem:[#allocation62_spill] sm:$0xff]  ;;  %v312_v17 = vadd.f32 %v267_v16, %v131_v41  ;;  %v9424_v41 = vld [vmem:[#allocation76_spill] sm:$0xff] }
 0x225   :  { %v7546_v46 = vpop.permute.xlu1 %795  ;;  %v7548_v5 = vpop.permute.xlu0 %1147  ;;  %v808_v61 = vsel %vm801_vm3, %v9418_v10, %v9417_v55 }
 0x226   :  { %9410 = vst [vmem:[#allocation13_spill] sm:$0xff] %v7546_v46  ;;  %1149 = vrot.lane.b32.xlu0 %v1084_v23, %s6351_s19  ;;  %v491_v46 = vadd.f32 %v446_v37, %v310_v0  ;;  %1137 = vrot.lane.b32.xlu1 %v1078_v50, %s6351_s19  ;;  %v448_v23 = vsel %vm439_vm1, %v9415_v62, %v9416_v39  ;;  %v9420_v0 = vld [vmem:[#allocation48_spill] sm:$0xff]  ;;  %v9422_v39 = vld [vmem:[#allocation57_spill] sm:$0xff] }
 0x227   :  { %v445_v37 = vsel %vm439_vm1, %v9420_v0, %v9409_v26  ;;  %v626_v62 = vsel %vm620_vm2, %v9421_v52, %v9414_v53  ;;  %v628_v15 = vsel %vm620_vm2, %v7057_v32, %v9422_v39  ;;  %v629_v22 = vsel %vm620_vm2, %v9422_v39, %v9423_v36  ;;  %v9426_v52 = vld [vmem:[#allocation66_spill] sm:$0xff]  ;;  %v9427_v53 = vld [vmem:[#allocation67_spill] sm:$0xff]  ;;  %v9428_v0 = vld [vmem:[#allocation64_spill] sm:$0xff] }
 0x228   :  { %v672_v50 = vadd.f32 %v627_v18, %v491_v46  ;;  %v989_v26 = vsel %vm982_vm4, %v9425_v44, %v9424_v41  ;;  %v490_v18 = vadd.f32 %v445_v37, %v309_v30  ;;  %v492_v46 = vadd.f32 %v447_v56, %v311_v4  ;;  %v9432_v37 = vld [vmem:[#allocation78_spill] sm:$0xff] }
 0x229   :  { %v7585_v58 = vpop.permute.xlu1 %1141  ;;  %v1494_v3 = vpop.permute.xlu0 %1493  ;;  %v493_v16 = vadd.f32 %v448_v23, %v312_v17  ;;  %v807_v32 = vsel %vm801_vm3, %v9426_v52, %v9418_v10  ;;  %v809_v39 = vsel %vm801_vm3, %v9417_v55, %v9427_v53  ;;  %v810_v36 = vsel %vm801_vm3, %v9427_v53, %v9428_v0  ;;  %v9431_v10 = vld [vmem:[#allocation81_spill] sm:$0xff] }
 0x22a   :  { %980 = vrot.lane.b32.xlu0 %v909_v27, %s6350_s17  ;;  %v853_v40 = vadd.f32 %v808_v61, %v672_v50  ;;  %968 = vrot.lane.b32.xlu1 %v903_v42, %s6350_s17  ;;  %v9429_v27 = vld [vmem:[#allocation90_spill] sm:$0xff]  ;;  %v671_v56 = vadd.f32 %v626_v62, %v490_v18  ;;  %v673_v61 = vadd.f32 %v628_v15, %v492_v46  ;;  %v9433_v52 = vld [vmem:[#allocation85_spill] sm:$0xff] }
 0x22b   :  { %v1170_v4 = vsel %vm1163_vm5, %v9429_v27, %v7343_v24  ;;  %v674_v30 = vadd.f32 %v629_v22, %v493_v16  ;;  %v990_v55 = vsel %vm982_vm4, %v9424_v41, %v9431_v10  ;;  %v991_v50 = vsel %vm982_vm4, %v9431_v10, %v9432_v37 }
 0x22c   :  { %v1034_v42 = vadd.f32 %v989_v26, %v853_v40  ;;  %v988_v53 = vsel %vm982_vm4, %v9433_v52, %v9425_v44  ;;  %v1351_v15 = vsel %vm1344_vm6, %v7479_v43, %v7458_v14  ;;  %v852_v62 = vadd.f32 %v807_v32, %v671_v56 }
 0x22d   :  { %v7613_v23 = vpop.permute.xlu1 %1145  ;;  %v7615_v17 = vpop.permute.xlu0 %1497  ;;  %v854_v22 = vadd.f32 %v809_v39, %v673_v61  ;;  %v855_v26 = vadd.f32 %v810_v36, %v674_v30  ;;  %v1171_v41 = vsel %vm1163_vm5, %v7343_v24, %v7286_v35  ;;  %v1172_v44 = vsel %vm1163_vm5, %v7286_v35, %v7365_v12  ;;  %v9450_v12 = vld [vmem:[#allocation51_spill] sm:$0xff] }
 0x22e   :  { %9430 = vst [vmem:[#allocation20_spill] sm:$0xff] %v7615_v17  ;;  %1161 = vrot.lane.b32.xlu0 %v1090_v48, %s6351_s19  ;;  %v1215_v18 = vadd.f32 %v1170_v4, %v1034_v42  ;;  %799 = vrot.lane.b32.xlu1 %v728_v63, %s6349_s16  ;;  %v1169_v46 = vsel %vm1163_vm5, %v7414_v19, %v9429_v27 }
 0x22f   :  { %v1271_v48 = vmul.f32 %v6731_v1, %v6458_v7  ;;  %v1035_v16 = vadd.f32 %v990_v55, %v854_v22  ;;  %v1036_v36 = vadd.f32 %v991_v50, %v855_v26  ;;  %v1033_v40 = vadd.f32 %v988_v53, %v852_v62  ;;  %v9434_v55 = vld [vmem:[#allocation23_spill] sm:$0xff] }
 0x230   :  { %v1396_v32 = vadd.f32 %v1351_v15, %v1215_v18  ;;  %v1352_v24 = vsel %vm1344_vm6, %v7458_v14, %v7487_v11  ;;  %v1353_v35 = vsel %vm1344_vm6, %v7487_v11, %v7471_v49  ;;  %v1350_v19 = vsel %vm1344_vm6, %v7507_v25, %v7479_v43  ;;  %v1964_v49 = vld [vmem:[#allocation2 + $0x90] sm:$0xff] }
 0x231   :  { %v1492_v63 = vpop.permute.xlu1 %1491  ;;  %v7642_v39 = vpop.permute.xlu0 %789  ;;  %v1216_v27 = vadd.f32 %v1171_v41, %v1035_v16  ;;  %v1217_v4 = vadd.f32 %v1172_v44, %v1036_v36  ;;  %v1214_v56 = vadd.f32 %v1169_v46, %v1033_v40  ;;  %v1265_v50 = vmul.f32 %v9434_v55, %v6458_v7 }
 0x232   :  { %v1532_v1 = vsel %vm1525_vm7, %v1492_v63, %v1494_v3  ;;  %1342 = vrot.lane.b32.xlu0 %v1271_v48, %s6352_s22  ;;  %1499 = vrot.lane.b32.xlu1 %v7542_v59, %s6353_s3  ;;  %v1446_v44 = vmul.f32 %v6733_v2, %v6458_v7 }
 0x233   :  { %v1577_v61 = vadd.f32 %v1532_v1, %v1396_v32  ;;  %v1397_v14 = vadd.f32 %v1352_v24, %v1216_v27  ;;  %v1398_v30 = vadd.f32 %v1353_v35, %v1217_v4  ;;  %v1395_v42 = vadd.f32 %v1350_v19, %v1214_v56  ;;  %v1947_v56 = vld [vmem:[#allocation2 + $0x8] sm:$0xff] }
 0x235   :  { %v1496_v10 = vpop.permute.xlu1 %1495  ;;  %v1490_v11 = vpop.permute.xlu0 %1489  ;;  %v7664_v53 = vadd.f32 %v7312_v13, %v1577_v61  ;;  %v1949_v61 = vld [vmem:[#allocation2 + $0x18] sm:$0xff] }
 0x236   :  { %v1533_v43 = vsel %vm1525_vm7, %v1494_v3, %v1496_v10  ;;  %v1534_v25 = vsel %vm1525_vm7, %v1496_v10, %v7615_v17  ;;  %v1531_v52 = vsel %vm1525_vm7, %v1490_v11, %v1492_v63  ;;  %1330 = vrot.lane.b32.xlu1 %v1265_v50, %s6352_s22  ;;  %v1452_v63 = vmul.f32 %v6743_v6, %v6458_v7  ;;  %v1951_v10 = vld [vmem:[#allocation2 + $0x28] sm:$0xff]  ;;  %v1953_v11 = vld [vmem:[#allocation2 + $0x38] sm:$0xff]  ;;  %v1962_v17 = vld [vmem:[#allocation2 + $0x80] sm:$0xff] }
 0x237   :  { %9435 = vst [vmem:[#allocation16_spill] sm:$0xff] %v7664_v53  ;;  %v1578_v15 = vadd.f32 %v1533_v43, %v1397_v14  ;;  %v1579_v59 = vadd.f32 %v1534_v25, %v1398_v30  ;;  %v1576_v62 = vadd.f32 %v1531_v52, %v1395_v42  ;;  %v9257_v46 = vmax.f32 %v7664_v53, 0.0  ;;  %v1946_v14 = vld [vmem:[#allocation2] sm:$0xff]  ;;  %v1948_v42 = vld [vmem:[#allocation2 + $0x10] sm:$0xff]  ;;  %v1955_v52 = vld [vmem:[#allocation2 + $0x48] sm:$0xff] }
 0x238   :  { %v5376_v30 = vpack.c.bf16 %v1949_v61, %v1947_v56  ;;  %v5378_v55 = vpack.c.bf16 %v1948_v42, %v1946_v14  ;;  %v5380_v50 = vpack.c.bf16 %v1953_v11, %v1951_v10  ;;  %v1950_v43 = vld [vmem:[#allocation2 + $0x20] sm:$0xff]  ;;  %v1952_v25 = vld [vmem:[#allocation2 + $0x30] sm:$0xff]  ;;  %v1959_v56 = vld [vmem:[#allocation2 + $0x68] sm:$0xff] }
 0x239   :  { %v7668_v22 = vadd.f32 %v7312_v13, %v1578_v15  ;;  %v7671_v26 = vadd.f32 %v7312_v13, %v1579_v59  ;;  %v7674_v3 = vadd.f32 %v7312_v13, %v1576_v62  ;;  %v7676_v18 = vpop.permute.xlu1 %1610  ;;  %v7678_v41 = vpop.permute.xlu0 %972  ;;  %v1957_v15 = vld [vmem:[#allocation2 + $0x58] sm:$0xff]  ;;  %v9443_v10 = vld [vmem:[#allocation52_spill] sm:$0xff] }
 0x23a   :  { %9439 = vst [vmem:[#allocation43_spill] sm:$0xff] %v7676_v18  ;;  %1511 = vrot.lane.b32.xlu1 %v1446_v44, %s6353_s3  ;;  %5377 = vmatprep.subr.bf16.mxu0 %v5376_v30  ;;  %v5382_v44 = vpack.c.bf16 %v1952_v25, %v1950_v43  ;;  %v1961_v61 = vld [vmem:[#allocation2 + $0x78] sm:$0xff]  ;;  %v1960_v43 = vld [vmem:[#allocation2 + $0x70] sm:$0xff] }
 0x23b   :  { %9436 = vst [vmem:[#allocation18_spill] sm:$0xff] %v7668_v22  ;;  %9437 = vst [vmem:[#allocation19_spill] sm:$0xff] %v7671_v26  ;;  %v9256_v48 = vmax.f32 %v7668_v22, 0.0  ;;  %v9254_v16 = vmax.f32 %v7671_v26, 0.0  ;;  %v9255_v36 = vmax.f32 %v7674_v3, 0.0  ;;  %5379 = vmatpush1.bf16.msra.mxu0 %v5378_v55  ;;  %v9442_v30 = vld [vmem:[#allocation49_spill] sm:$0xff] }
 0x23c   :  { %9438 = vst [vmem:[#allocation40_spill] sm:$0xff] %v7674_v3  ;;  %5381 = vmatprep.subr.bf16.mxu0 %v5380_v50  ;;  %v270_v11 = vsel %vm258_vm0, %v9443_v10, %v9442_v30  ;;  %v1958_v55 = vld [vmem:[#allocation2 + $0x60] sm:$0xff]  ;;  %v9449_v22 = vld [vmem:[#allocation75_spill] sm:$0xff] }
 0x23d   :  { %v7687_v40 = vpop.permute.xlu1 %1139  ;;  %v7689_v32 = vpop.permute.xlu0 %976  ;;  %v5964_v2 = vpack.i.bf16 %v9256_v48, %v9257_v46  ;;  %v5969_v24 = vpack.i.bf16 %v9255_v36, %v9254_v16  ;;  %v5388_v36 = vpack.c.bf16 %v1961_v61, %v1959_v56  ;;  %v9444_v50 = vld [vmem:[#allocation38_spill] sm:$0xff]  ;;  %v9446_v46 = vld [vmem:[#allocation61_spill] sm:$0xff]  ;;  %v9448_v61 = vld [vmem:[#allocation72_spill] sm:$0xff] }
 0x23e   :  { %1523 = vrot.lane.b32.xlu1 %v1452_v63, %s6353_s3  ;;  %v5384_v63 = vpack.c.bf16 %v1957_v15, %v1955_v52  ;;  %v135_v25 = vmul.f32 %v6505_v21, %v9444_v50  ;;  %v1963_v52 = vld [vmem:[#allocation2 + $0x88] sm:$0xff]  ;;  %v1965_v15 = vld [vmem:[#allocation2 + $0x98] sm:$0xff]  ;;  %v9445_v48 = vld [vmem:[#allocation58_spill] sm:$0xff]  ;;  %v632_v53 = vsel %vm620_vm2, %v9449_v22, %v9448_v61 }
 0x23f   :  { %5965 = vrot.lane.b32.xlu0 %v5964_v2, %s6346_s1  ;;  %v1954_v2 = vld [vmem:[#allocation2 + $0x40] sm:$0xff]  ;;  %5383 = vmatpush1.bf16.msra.mxu0 %v5382_v44  ;;  %v451_v26 = vsel %vm439_vm1, %v9446_v46, %v9445_v48  ;;  %v5392_v13 = vpack.c.bf16 %v1965_v15, %v1963_v52 }
 0x240   :  { %5385 = vmatprep.subr.bf16.mxu0 %v5384_v63  ;;  %v316_v3 = vadd.f32 %v270_v11, %v135_v25  ;;  %v9447_v63 = vld [vmem:[#allocation53_spill] sm:$0xff]  ;;  %v136_v11 = vmul.f32 %v6517_v28, %v9444_v50 }
 0x241   :  { %v7703_v35 = vpop.permute.xlu1 %582  ;;  %v7705_v19 = vpop.permute.xlu0 %1322  ;;  %v271_v56 = vsel %vm258_vm0, %v9442_v30, %v9447_v63 }
 0x242   :  { %9440 = vst [vmem:[#allocation22_spill] sm:$0xff] %v7703_v35  ;;  %5970 = vrot.lane.b32.xlu1 %v5969_v24, %s6346_s1  ;;  %v1956_v24 = vld [vmem:[#allocation2 + $0x50] sm:$0xff]  ;;  %v497_v25 = vadd.f32 %v451_v26, %v316_v3  ;;  %v317_v52 = vadd.f32 %v271_v56, %v136_v11  ;;  %v5394_v3 = vpack.c.bf16 %v1964_v49, %v1962_v17  ;;  %v9455_v56 = vld [vmem:[#allocation59_spill] sm:$0xff] }
 0x243   :  { %v5386_v42 = vpack.c.bf16 %v1956_v24, %v1954_v2  ;;  %v5390_v24 = vpack.c.bf16 %v1960_v43, %v1958_v55  ;;  %v9451_v55 = vld [vmem:[#allocation63_spill] sm:$0xff]  ;;  %v9452_v43 = vld [vmem:[#allocation86_spill] sm:$0xff]  ;;  %v994_v35 = vsel %vm982_vm4, %v7456_v60, %v7431_v47  ;;  %v269_v11 = vsel %vm258_vm0, %v9455_v56, %v9443_v10  ;;  %v9458_v10 = vld [vmem:[#allocation69_spill] sm:$0xff] }
 0x244   :  { %v452_v30 = vsel %vm439_vm1, %v9445_v48, %v9451_v55  ;;  %v813_v37 = vsel %vm801_vm3, %v9452_v43, %v7284_v31  ;;  %v678_v15 = vadd.f32 %v632_v53, %v497_v25  ;;  %v9454_v48 = vld [vmem:[#allocation77_spill] sm:$0xff]  ;;  %v134_v17 = vmul.f32 %v6520_v29, %v9444_v50  ;;  %v9456_v25 = vld [vmem:[#allocation74_spill] sm:$0xff] }
 0x245   :  { %v7708_v6 = vpop.permute.xlu1 %974  ;;  %v7710_v1 = vpop.permute.xlu0 %1326  ;;  %5387 = vmatpush1.bf16.msra.mxu0 %v5386_v42  ;;  %v272_v42 = vsel %vm258_vm0, %v9447_v63, %v9450_v12  ;;  %v9453_v63 = vld [vmem:[#allocation60_spill] sm:$0xff] }
 0x246   :  { %5389 = vmatprep.subr.bf16.mxu0 %v5388_v36  ;;  %v137_v36 = vmul.f32 %v6502_v20, %v9444_v50  ;;  %v453_v12 = vsel %vm439_vm1, %v9451_v55, %v9453_v63  ;;  %v859_v49 = vadd.f32 %v813_v37, %v678_v15  ;;  %v634_v55 = vsel %vm620_vm2, %v9454_v48, %v9456_v25 }
 0x247   :  { %v450_v37 = vsel %vm439_vm1, %v9458_v10, %v9446_v46 }
 0x248   :  { %v318_v53 = vadd.f32 %v272_v42, %v137_v36  ;;  %v1040_v36 = vadd.f32 %v994_v35, %v859_v49 }
 0x249   :  { %v7712_v27 = vpop.permute.xlu1 %978  ;;  %v7714_v4 = vpop.permute.xlu0 %970  ;;  %5391 = vmatpush1.bf16.msra.mxu0 %v5390_v24  ;;  %v498_v24 = vadd.f32 %v452_v30, %v317_v52 }
 0x24a   :  { %5393 = vmatprep.subr.bf16.mxu0 %v5392_v13  ;;  %v1175_v13 = vsel %vm1163_vm5, %v7585_v58, %v7519_v54  ;;  %v499_v42 = vadd.f32 %v453_v12, %v318_v53  ;;  %v995_v12 = vsel %vm982_vm4, %v7431_v47, %v7469_v51 }
 0x24b   :  { %v1221_v53 = vadd.f32 %v1175_v13, %v1040_v36 }
 0x24d   :  { %v7716_v59 = vpop.permute.xlu1 %1324  ;;  %v7718_v62 = vpop.permute.xlu0 %763  ;;  %5395 = vmatpush1.bf16.msra.mxu0 %v5394_v3  ;;  %v1176_v3 = vsel %vm1163_vm5, %v7519_v54, %v7613_v23 }
 0x24e   :  { %9441 = vst [vmem:[#allocation47_spill] sm:$0xff] %v7718_v62  ;;  %v633_v62 = vsel %vm620_vm2, %v9448_v61, %v9454_v48  ;;  %v9457_v61 = vld [vmem:[#allocation88_spill] sm:$0xff]  ;;  %v315_v48 = vadd.f32 %v269_v11, %v134_v17  ;;  %v1356_v46 = vsel %vm1344_vm6, %v7705_v19, %v7716_v59  ;;  %v1357_v54 = vsel %vm1344_vm6, %v7716_v59, %v7710_v1 }
 0x24f   :  { %v814_v63 = vsel %vm801_vm3, %v7284_v31, %v9457_v61  ;;  %v679_v30 = vadd.f32 %v633_v62, %v498_v24  ;;  %v815_v31 = vsel %vm801_vm3, %v9457_v61, %v7310_v33  ;;  %v680_v62 = vadd.f32 %v634_v55, %v499_v42  ;;  %v9459_v11 = vld [vmem:[#allocation80_spill] sm:$0xff]  ;;  %v1967_v33 = vld [vmem:[#allocation2 + $0xa8] sm:$0xff]  ;;  %v1969_v55 = vld [vmem:[#allocation2 + $0xb8] sm:$0xff] }
 0x250   :  { %v496_v56 = vadd.f32 %v450_v37, %v315_v48  ;;  %v631_v24 = vsel %vm620_vm2, %v9459_v11, %v9449_v22  ;;  %v1402_v61 = vadd.f32 %v1356_v46, %v1221_v53  ;;  %v5396_v13 = vpack.c.bf16 %v1969_v55, %v1967_v33  ;;  %v1966_v42 = vld [vmem:[#allocation2 + $0xa0] sm:$0xff]  ;;  %v1968_v37 = vld [vmem:[#allocation2 + $0xb0] sm:$0xff] }
 0x251   :  { %v7720_v16 = vpop.permute.xlu1 %1328  ;;  %v7722_v14 = vpop.permute.xlu0 %1155  ;;  %v860_v35 = vadd.f32 %v814_v63, %v679_v30  ;;  %v861_v49 = vadd.f32 %v815_v31, %v680_v62  ;;  %v996_v63 = vsel %vm982_vm4, %v7469_v51, %v7444_v9  ;;  %v812_v30 = vsel %vm801_vm3, %v7345_v38, %v9452_v43  ;;  %v1971_v38 = vld [vmem:[#allocation2 + $0xc8] sm:$0xff]  ;;  %v1973_v43 = vld [vmem:[#allocation2 + $0xd8] sm:$0xff]  ;;  %v1970_v53 = vld [vmem:[#allocation2 + $0xc0] sm:$0xff] }
 0x252   :  { %v5398_v31 = vpack.c.bf16 %v1968_v37, %v1966_v42  ;;  %v1177_v51 = vsel %vm1163_vm5, %v7613_v23, %v7548_v5  ;;  %5397 = vmatprep.subr.bf16.mxu0 %v5396_v13  ;;  %v993_v33 = vsel %vm982_vm4, %v7481_v45, %v7456_v60  ;;  %v1358_v23 = vsel %vm1344_vm6, %v7710_v1, %v7720_v16  ;;  %v1972_v60 = vld [vmem:[#allocation2 + $0xd0] sm:$0xff] }
 0x253   :  { %v1041_v17 = vadd.f32 %v995_v12, %v860_v35  ;;  %v677_v12 = vadd.f32 %v631_v24, %v496_v56  ;;  %v1042_v59 = vadd.f32 %v996_v63, %v861_v49  ;;  %v1174_v49 = vsel %vm1163_vm5, %v7687_v40, %v7585_v58  ;;  %v9462_v1 = vld [vmem:[#allocation68_spill] sm:$0xff] }
 0x254   :  { %5399 = vmatpush1.bf16.msra.mxu0 %v5398_v31  ;;  %v5400_v63 = vpack.c.bf16 %v1973_v43, %v1971_v38 }
 0x255   :  { %v7732_v44 = vpop.permute.xlu1 %1320  ;;  %v7734_v2 = vpop.permute.xlu0 %1159  ;;  %v1222_v36 = vadd.f32 %v1176_v3, %v1041_v17  ;;  %v9460_v3 = vld [vmem:[#allocation41_spill] sm:$0xff]  ;;  %v858_v11 = vadd.f32 %v812_v30, %v677_v12  ;;  %v1223_v45 = vadd.f32 %v1177_v51, %v1042_v59  ;;  %v1975_v30 = vld [vmem:[#allocation2 + $0xe8] sm:$0xff]  ;;  %v1974_v59 = vld [vmem:[#allocation2 + $0xe0] sm:$0xff] }
 0x256   :  { %v141_v56 = vmul.f32 %v6505_v21, %v9460_v3  ;;  %v142_v13 = vmul.f32 %v6517_v28, %v9460_v3  ;;  %v1355_v51 = vsel %vm1344_vm6, %v7732_v44, %v7705_v19  ;;  %5401 = vmatprep.subr.bf16.mxu0 %v5400_v63  ;;  %v140_v19 = vmul.f32 %v6520_v29, %v9460_v3  ;;  %v1978_v63 = vld [vmem:[#allocation2 + $0x100] sm:$0xff] }
 0x257   :  { %v1403_v46 = vadd.f32 %v1357_v54, %v1222_v36  ;;  %v1039_v55 = vadd.f32 %v993_v33, %v858_v11  ;;  %v5402_v54 = vpack.c.bf16 %v1972_v60, %v1970_v53  ;;  %v1404_v42 = vadd.f32 %v1358_v23, %v1223_v45  ;;  %v1977_v36 = vld [vmem:[#allocation2 + $0xf8] sm:$0xff]  ;;  %v1976_v33 = vld [vmem:[#allocation2 + $0xf0] sm:$0xff]  ;;  %v9466_v23 = vld [vmem:[#allocation70_spill] sm:$0xff] }
 0x258   :  { %v5404_v28 = vpack.c.bf16 %v1977_v36, %v1975_v30  ;;  %v5406_v43 = vpack.c.bf16 %v1976_v33, %v1974_v59  ;;  %v143_v11 = vmul.f32 %v6502_v20, %v9460_v3  ;;  %v9467_v60 = vld [vmem:[#allocation83_spill] sm:$0xff]  ;;  %v9469_v29 = vld [vmem:[#allocation82_spill] sm:$0xff]  ;;  %v1980_v30 = vld [vmem:[#allocation2 + $0x110] sm:$0xff]  ;;  %v127_v59 = vmul.f32 %v6458_v7, %v6745_v8 }
 0x259   :  { %v7755_v0 = vpop.permute.xlu1 %1153  ;;  %v7757_v26 = vpop.permute.xlu0 %1505  ;;  %v1220_v12 = vadd.f32 %v1174_v49, %v1039_v55  ;;  %5403 = vmatpush1.bf16.msra.mxu0 %v5402_v54  ;;  %v9468_v54 = vld [vmem:[#allocation87_spill] sm:$0xff] }
 0x25a   :  { %5405 = vmatprep.subr.bf16.mxu0 %v5404_v28  ;;  %v126_v28 = vmul.f32 %v6533_v34, %v6745_v8 }
 0x25b   :  { %v1401_v49 = vadd.f32 %v1355_v51, %v1220_v12 }
 0x25d   :  { %v7785_v52 = vpop.permute.xlu1 %1157  ;;  %v7787_v15 = vpop.permute.xlu0 %1509  ;;  %5407 = vmatpush1.bf16.msra.mxu0 %v5406_v43 }
 0x261   :  { %v7804_v47 = vpop.permute.xlu1 %1503  ;;  %v7806_v10 = vpop.permute.xlu0 %1151 }
 0x262   :  { %v1537_v22 = vsel %vm1525_vm7, %v7804_v47, %v7757_v26 }
 0x263   :  { %v1583_v48 = vadd.f32 %v1537_v22, %v1402_v61  ;;  %v9463_v22 = vld [vmem:[#allocation71_spill] sm:$0xff] }
 0x264   :  { %v274_v45 = vsel %vm258_vm0, %v9467_v60, %v9463_v22  ;;  %v9471_v60 = vld [vmem:[#allocation89_spill] sm:$0xff] }
 0x265   :  { %v1508_v62 = vpop.permute.xlu1 %1507  ;;  %v7826_v35 = vpop.permute.xlu0 %944  ;;  %v7839_v17 = vadd.f32 %v7676_v18, %v1583_v48  ;;  %v9465_v48 = vld [vmem:[#allocation73_spill] sm:$0xff]  ;;  %v321_v51 = vadd.f32 %v274_v45, %v140_v19  ;;  %v1982_v45 = vld [vmem:[#allocation2 + $0x120] sm:$0xff] }
 0x266   :  { %v1538_v24 = vsel %vm1525_vm7, %v7757_v26, %v1508_v62  ;;  %v1539_v21 = vsel %vm1525_vm7, %v1508_v62, %v7787_v15  ;;  %v275_v26 = vsel %vm258_vm0, %v9463_v22, %v9462_v1  ;;  %v276_v31 = vsel %vm258_vm0, %v9462_v1, %v9465_v48  ;;  %v1985_v19 = vld [vmem:[#allocation2 + $0x138] sm:$0xff] }
 0x267   :  { %9461 = vst [vmem:[#allocation44_spill] sm:$0xff] %v7839_v17  ;;  %v1584_v61 = vadd.f32 %v1538_v24, %v1403_v46  ;;  %v9271_v46 = vmax.f32 %v7839_v17, 0.0  ;;  %v1585_v62 = vadd.f32 %v1539_v21, %v1404_v42  ;;  %v322_v53 = vadd.f32 %v275_v26, %v141_v56  ;;  %v1979_v56 = vld [vmem:[#allocation2 + $0x108] sm:$0xff]  ;;  %v1981_v21 = vld [vmem:[#allocation2 + $0x118] sm:$0xff]  ;;  %v9470_v26 = vld [vmem:[#allocation84_spill] sm:$0xff] }
 0x268   :  { %v277_v24 = vsel %vm258_vm0, %v9465_v48, %v9466_v23  ;;  %v323_v44 = vadd.f32 %v276_v31, %v142_v13  ;;  %v456_v1 = vsel %vm439_vm1, %v9469_v29, %v9468_v54  ;;  %v457_v22 = vsel %vm439_vm1, %v9468_v54, %v9470_v26  ;;  %v1984_v54 = vld [vmem:[#allocation2 + $0x130] sm:$0xff] }
 0x269   :  { %v7849_v58 = vadd.f32 %v7676_v18, %v1584_v61  ;;  %v7851_v40 = vpop.permute.xlu1 %1615  ;;  %v7853_v37 = vpop.permute.xlu0 %1336  ;;  %v5408_v42 = vpack.c.bf16 %v1981_v21, %v1979_v56  ;;  %v7888_v36 = vadd.f32 %v7676_v18, %v1585_v62  ;;  %v5410_v31 = vpack.c.bf16 %v1980_v30, %v1978_v63  ;;  %v9475_v56 = vld [vmem:[#allocation8_spill] sm:$0xff] }
 0x26a   :  { %v324_v12 = vadd.f32 %v277_v24, %v143_v11  ;;  %v504_v33 = vadd.f32 %v457_v22, %v323_v44  ;;  %v458_v62 = vsel %vm439_vm1, %v9470_v26, %v9471_v60  ;;  %v1983_v24 = vld [vmem:[#allocation2 + $0x128] sm:$0xff]  ;;  %v1989_v26 = vld [vmem:[#allocation2 + $0x158] sm:$0xff] }
 0x26b   :  { %9464 = vst [vmem:[#allocation21_spill] sm:$0xff] %v7849_v58  ;;  %v9270_v38 = vmax.f32 %v7849_v58, 0.0  ;;  %5409 = vmatprep.subr.bf16.mxu0 %v5408_v42  ;;  %v5412_v63 = vpack.c.bf16 %v1985_v19, %v1983_v24  ;;  %v9476_v22 = vld [vmem:[#allocation11_spill] sm:$0xff]  ;;  %v9278_v42 = vmax.f32 %v7888_v36, 0.0  ;;  %v1988_v58 = vld [vmem:[#allocation2 + $0x150] sm:$0xff] }
 0x26c   :  { %5411 = vmatpush1.bf16.msra.mxu0 %v5410_v31 }
 0x26d   :  { %v1502_v61 = vpop.permute.xlu1 %1501  ;;  %v7873_v55 = vpop.permute.xlu0 %1340  ;;  %v5974_v20 = vpack.i.bf16 %v9270_v38, %v9271_v46  ;;  %v9478_v38 = vld [vmem:[#allocation15_spill] sm:$0xff]  ;;  %5413 = vmatprep.subr.bf16.mxu0 %v5412_v63  ;;  %v1986_v46 = vld [vmem:[#allocation2 + $0x140] sm:$0xff] }
 0x26e   :  { %v1536_v13 = vsel %vm1525_vm7, %v1502_v61, %v7804_v47  ;;  %v503_v47 = vadd.f32 %v456_v1, %v322_v53  ;;  %v9472_v61 = vld [vmem:[#allocation25_spill] sm:$0xff]  ;;  %v1987_v1 = vld [vmem:[#allocation2 + $0x148] sm:$0xff] }
 0x26f   :  { %v1582_v48 = vadd.f32 %v1536_v13, %v1401_v49  ;;  %5975 = vrot.lane.b32.xlu0 %v5974_v20, %s6346_s1  ;;  %v263_v8 = vsel %vm258_vm0, %v9472_v61, %v7367_v57  ;;  %v9473_v53 = vld [vmem:[#allocation33_spill] sm:$0xff]  ;;  %v9474_v20 = vld [vmem:[#allocation94_spill] sm:$0xff]  ;;  %v505_v61 = vadd.f32 %v458_v62, %v324_v12  ;;  %v5416_v19 = vpack.c.bf16 %v1989_v26, %v1987_v1 }
 0x270   :  { %v455_v44 = vsel %vm439_vm1, %v9473_v53, %v9469_v29  ;;  %v637_v21 = vsel %vm620_vm2, %v9475_v56, %v9474_v20  ;;  %v638_v13 = vsel %vm620_vm2, %v9474_v20, %v9476_v22  ;;  %v308_v29 = vadd.f32 %v7367_v57, %v127_v59  ;;  %v9477_v53 = vld [vmem:[#allocation17_spill] sm:$0xff]  ;;  %v1991_v57 = vld [vmem:[#allocation2 + $0x168] sm:$0xff]  ;;  %v9482_v26 = vld [vmem:[#allocation10_spill] sm:$0xff] }
 0x271   :  { %v7899_v49 = vadd.f32 %v7676_v18, %v1582_v48  ;;  %v7901_v43 = vpop.permute.xlu1 %1334  ;;  %v7903_v11 = vpop.permute.xlu0 %1125  ;;  %v5414_v48 = vpack.c.bf16 %v1984_v54, %v1982_v45  ;;  %v818_v24 = vsel %vm801_vm3, %v9478_v38, %v9477_v53  ;;  %v7923_v17 = vadd.f32 %v263_v8, %v126_v28  ;;  %v1993_v59 = vld [vmem:[#allocation2 + $0x178] sm:$0xff]  ;;  %v9479_v45 = vld [vmem:[#allocation36_spill] sm:$0xff] }
 0x272   :  { %v502_v20 = vadd.f32 %v455_v44, %v321_v51  ;;  %v684_v18 = vadd.f32 %v637_v21, %v503_v47  ;;  %v639_v63 = vsel %vm620_vm2, %v9476_v22, %v9479_v45  ;;  %v685_v54 = vadd.f32 %v638_v13, %v504_v33  ;;  %v9480_v1 = vld [vmem:[#allocation13_spill] sm:$0xff]  ;;  %v9481_v47 = vld [vmem:[#allocation14_spill] sm:$0xff] }
 0x273   :  { %v1654_v30 = vmax.f32 %v7899_v49, 0.0  ;;  %v819_v51 = vsel %vm801_vm3, %v9477_v53, %v9480_v1  ;;  %v999_v28 = vsel %vm982_vm4, %v7678_v41, %v7708_v6  ;;  %v636_v8 = vsel %vm620_vm2, %v9481_v47, %v9475_v56  ;;  %5415 = vmatpush1.bf16.msra.mxu0 %v5414_v48  ;;  %v1990_v56 = vld [vmem:[#allocation2 + $0x160] sm:$0xff] }
 0x274   :  { %v865_v44 = vadd.f32 %v818_v24, %v684_v18  ;;  %v5418_v21 = vpack.c.bf16 %v1988_v58, %v1986_v46  ;;  %v820_v33 = vsel %vm801_vm3, %v9480_v1, %v9482_v26  ;;  %v1000_v22 = vsel %vm982_vm4, %v7708_v6, %v7689_v32  ;;  %5417 = vmatprep.subr.bf16.mxu0 %v5416_v19  ;;  %v1992_v18 = vld [vmem:[#allocation2 + $0x170] sm:$0xff] }
 0x275   :  { %v5979_v31 = vpack.i.bf16 %v1654_v30, %v9278_v42  ;;  %v1339_v12 = vpop.permute.xlu1 %1338  ;;  %v7929_v62 = vpop.permute.xlu0 %1517  ;;  %v1180_v13 = vsel %vm1163_vm5, %v7755_v0, %v7722_v14  ;;  %v5420_v53 = vpack.c.bf16 %v1993_v59, %v1991_v57  ;;  %v686_v24 = vadd.f32 %v639_v63, %v505_v61  ;;  %v9483_v63 = vld [vmem:[#allocation12_spill] sm:$0xff] }
 0x276   :  { %v817_v58 = vsel %vm801_vm3, %v7642_v39, %v9478_v38  ;;  %v1046_v46 = vadd.f32 %v999_v28, %v865_v44  ;;  %v683_v47 = vadd.f32 %v636_v8, %v502_v20  ;;  %v1001_v6 = vsel %vm982_vm4, %v7689_v32, %v7712_v27  ;;  %v9504_v42 = vld [vmem:[#allocation64_spill] sm:$0xff] }
 0x277   :  { %5980 = vrot.lane.b32.xlu1 %v5979_v31, %s6346_s1  ;;  %v866_v31 = vadd.f32 %v819_v51, %v685_v54  ;;  %v1181_v19 = vsel %vm1163_vm5, %v7722_v14, %v7785_v52  ;;  %v1361_v61 = vsel %vm1344_vm6, %v7901_v43, %v7853_v37  ;;  %v867_v57 = vadd.f32 %v820_v33, %v686_v24  ;;  %v9484_v54 = vld [vmem:[#allocation26_spill] sm:$0xff] }
 0x278   :  { %v1227_v39 = vadd.f32 %v1180_v13, %v1046_v46  ;;  %5419 = vmatpush1.bf16.msra.mxu0 %v5418_v21  ;;  %v5422_v38 = vpack.c.bf16 %v1992_v18, %v1990_v56  ;;  %v444_v20 = vsel %vm439_vm1, %v9484_v54, %v9483_v63  ;;  %v489_v51 = vadd.f32 %v9483_v63, %v308_v29  ;;  %v1995_v13 = vld [vmem:[#allocation2 + $0x188] sm:$0xff]  ;;  %v1997_v56 = vld [vmem:[#allocation2 + $0x198] sm:$0xff]  ;;  %v1994_v24 = vld [vmem:[#allocation2 + $0x180] sm:$0xff] }
 0x279   :  { %v1333_v48 = vpop.permute.xlu1 %1332  ;;  %v7956_v1 = vpop.permute.xlu0 %1521  ;;  %v1047_v59 = vadd.f32 %v1000_v22, %v866_v31  ;;  %v864_v32 = vadd.f32 %v817_v58, %v683_v47  ;;  %v1182_v14 = vsel %vm1163_vm5, %v7785_v52, %v7734_v2  ;;  %5421 = vmatprep.subr.bf16.mxu0 %v5420_v53  ;;  %v1048_v28 = vadd.f32 %v1001_v6, %v867_v57  ;;  %v1996_v31 = vld [vmem:[#allocation2 + $0x190] sm:$0xff]  ;;  %v9485_v6 = vld [vmem:[#allocation22_spill] sm:$0xff]  ;;  %v1999_v54 = vld [vmem:[#allocation2 + $0x1a8] sm:$0xff] }
 0x27a   :  { %v998_v8 = vsel %vm982_vm4, %v7714_v4, %v7678_v41  ;;  %v1408_v21 = vadd.f32 %v1361_v61, %v1227_v39  ;;  %v1362_v29 = vsel %vm1344_vm6, %v7853_v37, %v1339_v12  ;;  %v1363_v18 = vsel %vm1344_vm6, %v1339_v12, %v7873_v55  ;;  %v9486_v12 = vld [vmem:[#allocation28_spill] sm:$0xff] }
 0x27b   :  { %v1228_v44 = vadd.f32 %v1181_v19, %v1047_v59  ;;  %v5424_v53 = vpack.c.bf16 %v1997_v56, %v1995_v13  ;;  %v1229_v41 = vadd.f32 %v1182_v14, %v1048_v28  ;;  %v1179_v4 = vsel %vm1163_vm5, %v7806_v10, %v7755_v0  ;;  %v2001_v0 = vld [vmem:[#allocation2 + $0x1b8] sm:$0xff]  ;;  %v2000_v14 = vld [vmem:[#allocation2 + $0x1b0] sm:$0xff] }
 0x27c   :  { %5423 = vmatpush1.bf16.msra.mxu0 %v5422_v38  ;;  %v5426_v46 = vpack.c.bf16 %v1996_v31, %v1994_v24  ;;  %v488_v47 = vadd.f32 %v444_v20, %v7923_v17  ;;  %v1045_v37 = vadd.f32 %v998_v8, %v864_v32  ;;  %v625_v19 = vsel %vm620_vm2, %v9486_v12, %v9485_v6  ;;  %v1998_v32 = vld [vmem:[#allocation2 + $0x1a0] sm:$0xff]  ;;  %v2003_v24 = vld [vmem:[#allocation2 + $0x1c8] sm:$0xff]  ;;  %v2005_v31 = vld [vmem:[#allocation2 + $0x1d8] sm:$0xff] }
 0x27d   :  { %v1516_v33 = vpop.permute.xlu1 %1515  ;;  %v7977_v22 = vpop.permute.xlu0 %1306  ;;  %5425 = vmatprep.subr.bf16.mxu0 %v5424_v53  ;;  %v670_v61 = vadd.f32 %v9485_v6, %v489_v51  ;;  %v1409_v57 = vadd.f32 %v1362_v29, %v1228_v44  ;;  %v1410_v59 = vadd.f32 %v1363_v18, %v1229_v41  ;;  %v1360_v38 = vsel %vm1344_vm6, %v1333_v48, %v7901_v43  ;;  %v9488_v43 = vld [vmem:[#allocation30_spill] sm:$0xff]  ;;  %v2004_v6 = vld [vmem:[#allocation2 + $0x1d0] sm:$0xff] }
 0x27e   :  { %v1542_v52 = vsel %vm1525_vm7, %v1516_v33, %v7929_v62  ;;  %v1226_v10 = vadd.f32 %v1179_v4, %v1045_v37  ;;  %v5428_v44 = vpack.c.bf16 %v2001_v0, %v1999_v54  ;;  %v5430_v56 = vpack.c.bf16 %v2000_v14, %v1998_v32  ;;  %v2002_v41 = vld [vmem:[#allocation2 + $0x1c0] sm:$0xff]  ;;  %v9489_v4 = vld [vmem:[#allocation32_spill] sm:$0xff]  ;;  %v2009_v32 = vld [vmem:[#allocation2 + $0x1f8] sm:$0xff] }
 0x27f   :  { %v1589_v58 = vadd.f32 %v1542_v52, %v1408_v21  ;;  %v9487_v21 = vld [vmem:[#allocation47_spill] sm:$0xff]  ;;  %v669_v29 = vadd.f32 %v625_v19, %v488_v47  ;;  %v5432_v37 = vpack.c.bf16 %v2005_v31, %v2003_v24  ;;  %v5434_v54 = vpack.c.bf16 %v2004_v6, %v2002_v41  ;;  %v9492_v24 = vld [vmem:[#allocation37_spill] sm:$0xff] }
 0x280   :  { %5427 = vmatpush1.bf16.msra.mxu0 %v5426_v46  ;;  %v851_v13 = vadd.f32 %v9487_v21, %v670_v61  ;;  %v1407_v48 = vadd.f32 %v1360_v38, %v1226_v10 }
 0x281   :  { %v1520_v39 = vpop.permute.xlu1 %1519  ;;  %v7993_v63 = vpop.permute.xlu0 %5955  ;;  %v8002_v51 = vadd.f32 %v7851_v40, %v1589_v58  ;;  %5429 = vmatprep.subr.bf16.mxu0 %v5428_v44  ;;  %v987_v58 = vsel %vm982_vm4, %v9489_v4, %v7826_v35 }
 0x282   :  { %v1543_v17 = vsel %vm1525_vm7, %v7929_v62, %v1520_v39  ;;  %v1544_v20 = vsel %vm1525_vm7, %v1520_v39, %v7956_v1  ;;  %v806_v62 = vsel %vm801_vm3, %v9488_v43, %v9487_v21  ;;  %v1032_v46 = vadd.f32 %v7826_v35, %v851_v13  ;;  %v9490_v35 = vld [vmem:[#allocation31_spill] sm:$0xff]  ;;  %v2006_v21 = vld [vmem:[#allocation2 + $0x1e0] sm:$0xff]  ;;  %v2008_v13 = vld [vmem:[#allocation2 + $0x1f0] sm:$0xff] }
 0x283   :  { %v1590_v28 = vadd.f32 %v1543_v17, %v1409_v57  ;;  %v1591_v8 = vadd.f32 %v1544_v20, %v1410_v59  ;;  %v1661_v12 = vmax.f32 %v8002_v51, 0.0  ;;  %v850_v59 = vadd.f32 %v806_v62, %v669_v29  ;;  %v2007_v20 = vld [vmem:[#allocation2 + $0x1e8] sm:$0xff]  ;;  %v2010_v51 = vld [vmem:[#allocation2 + $0x200] sm:$0xff] }
 0x284   :  { %5431 = vmatpush1.bf16.msra.mxu0 %v5430_v56  ;;  %v1213_v39 = vadd.f32 %v7903_v11, %v1032_v46  ;;  %v5958_v44 = vunpack.i.h.bf16 %v7993_v63  ;;  %v5957_v29 = vunpack.i.l.bf16 %v7993_v63  ;;  %v5436_v62 = vpack.c.bf16 %v2009_v32, %v2007_v20  ;;  %v9496_v32 = vld [vmem:[#allocation29_spill] sm:$0xff] }
 0x285   :  { %v8009_v18 = vadd.f32 %v7851_v40, %v1590_v28  ;;  %v1514_v52 = vpop.permute.xlu1 %1513  ;;  %v8011_v53 = vpop.permute.xlu0 %232  ;;  %v8020_v19 = vadd.f32 %v7851_v40, %v1591_v8  ;;  %5433 = vmatprep.subr.bf16.mxu0 %v5432_v37  ;;  %v1031_v14 = vadd.f32 %v987_v58, %v850_v59  ;;  %v9491_v28 = vld [vmem:[#allocation34_spill] sm:$0xff]  ;;  %v9493_v59 = vld [vmem:[#allocation35_spill] sm:$0xff] }
 0x286   :  { %v1541_v47 = vsel %vm1525_vm7, %v1514_v52, %v1516_v33  ;;  %v1168_v33 = vsel %vm1163_vm5, %v9490_v35, %v7903_v11  ;;  %v1349_v8 = vsel %vm1344_vm6, %v9491_v28, %v7977_v22  ;;  %v1394_v11 = vadd.f32 %v7977_v22, %v1213_v39 }
 0x287   :  { %v1662_v61 = vmax.f32 %v8009_v18, 0.0  ;;  %v1588_v57 = vadd.f32 %v1541_v47, %v1407_v48  ;;  %v9277_v56 = vmax.f32 %v8020_v19, 0.0  ;;  %v1212_v48 = vadd.f32 %v1168_v33, %v1031_v14  ;;  %v2017_v18 = vld [vmem:[#allocation2 + $0x238] sm:$0xff] }
 0x288   :  { %5435 = vmatpush1.bf16.msra.mxu0 %v5434_v54  ;;  %v5438_v52 = vpack.c.bf16 %v2008_v13, %v2006_v21  ;;  %v1739_v47 = vsel %vm258_vm0, %v5957_v29, %v5958_v44  ;;  %v9497_v14 = vmax.f32 %v9496_v32, 0.0 }
 0x289   :  { %v8028_v0 = vadd.f32 %v7851_v40, %v1588_v57  ;;  %v1488_v10 = vpop.permute.xlu1 %1487  ;;  %v8030_v38 = vpop.permute.xlu0 %244  ;;  %v5984_v17 = vpack.i.bf16 %v1662_v61, %v1661_v12  ;;  %5437 = vmatprep.subr.bf16.mxu0 %v5436_v62  ;;  %v1393_v63 = vadd.f32 %v1349_v8, %v1212_v48  ;;  %v9498_v8 = vld [vmem:[#allocation93_spill] sm:$0xff] }
 0x28a   :  { %v1530_v31 = vsel %vm1525_vm7, %v9492_v24, %v1488_v10  ;;  %v1575_v41 = vadd.f32 %v1488_v10, %v1394_v11  ;;  %v9494_v10 = vld [vmem:[#allocation96_spill] sm:$0xff]  ;;  %v8070_v28 = vmax.f32 %v9497_v14, %v1739_v47  ;;  %v9499_v11 = vmax.f32 %v9498_v8, 0.0  ;;  %v9501_v47 = vld [vmem:[#allocation42_spill] sm:$0xff] }
 0x28b   :  { %v9280_v43 = vmax.f32 %v8028_v0, 0.0  ;;  %5985 = vrot.lane.b32.xlu0 %v5984_v17, %s6346_s1  ;;  %v1574_v6 = vadd.f32 %v1530_v31, %v1393_v63  ;;  %v9495_v17 = vmax.f32 %v9494_v10, 0.0  ;;  %v9500_v63 = vld [vmem:[#allocation39_spill] sm:$0xff] }
 0x28c   :  { %5439 = vmatpush1.bf16.msra.mxu0 %v5438_v52  ;;  %v8059_v39 = vadd.f32 %v9493_v59, %v1575_v41 }
 0x28d   :  { %v5989_v22 = vpack.i.bf16 %v9280_v43, %v9277_v56  ;;  %v426_v4 = vpop.permute.xlu0 %425  ;;  %v8051_v58 = vpop.permute.xlu1 %5960  ;;  %v8079_v13 = vadd.f32 %v9493_v59, %v1574_v6  ;;  %v268_v6 = vsel %vm258_vm0, %v9501_v47, %v8011_v53 }
 0x28e   :  { %v5963_v46 = vunpack.i.h.bf16 %v8051_v58  ;;  %v5962_v37 = vunpack.i.l.bf16 %v8051_v58  ;;  %v2019_v58 = vld [vmem:[#allocation2 + $0x248] sm:$0xff] }
 0x28f   :  { %5990 = vrot.lane.b32.xlu1 %v5989_v22, %s6346_s1  ;;  %v9279_v52 = vmax.f32 %v8079_v13, 0.0 }
 0x290   :  { %v1738_v57 = vsel %vm258_vm0, %v5963_v46, %v5957_v29  ;;  %v1740_v54 = vsel %vm258_vm0, %v5958_v44, %v5962_v37  ;;  %v9276_v29 = vmax.f32 %v8059_v39, 0.0  ;;  %v133_v46 = vmul.f32 %v6458_v7, %v9500_v63 }
 0x291   :  { %v257_v35 = vpop.permute.xlu0 %256  ;;  %v414_v33 = vpop.permute.xlu1 %413  ;;  %v8066_v20 = vmax.f32 %v9495_v17, %v1738_v57  ;;  %v8074_v21 = vmax.f32 %v9499_v11, %v1740_v54  ;;  %v132_v57 = vmul.f32 %v6533_v34, %v9500_v63  ;;  %v9502_v54 = vld [vmem:[#allocation50_spill] sm:$0xff]  ;;  %v139_v63 = vmul.f32 %v6458_v7, %v9444_v50 }
 0x292   :  { %v314_v59 = vadd.f32 %v8011_v53, %v133_v46  ;;  %v449_v10 = vsel %vm439_vm1, %v9502_v54, %v414_v33  ;;  %v9503_v11 = vld [vmem:[#allocation54_spill] sm:$0xff]  ;;  %v9505_v54 = vld [vmem:[#allocation51_spill] sm:$0xff] }
 0x293   :  { %1830 = vrot.lane.b32.xlu1 %v8066_v20, %s6348_s15  ;;  %v5994_v44 = vpack.i.bf16 %v8074_v21, %v8070_v28  ;;  %v313_v17 = vadd.f32 %v268_v6, %v132_v57  ;;  %v273_v6 = vsel %vm258_vm0, %v9505_v54, %v8030_v38  ;;  %v278_v57 = vsel %vm258_vm0, %v9466_v23, %v257_v35 }
 0x294   :  { %v495_v8 = vadd.f32 %v414_v33, %v314_v59  ;;  %v145_v33 = vmul.f32 %v6458_v7, %v9460_v3  ;;  %v320_v59 = vadd.f32 %v8030_v38, %v139_v63 }
 0x295   :  { %v957_v62 = vpop.permute.xlu0 %956  ;;  %v595_v48 = vpop.permute.xlu1 %594  ;;  %5995 = vrot.lane.b32.xlu0 %v5994_v44, %s6348_s15 }
 0x296   :  { %v630_v44 = vsel %vm620_vm2, %v9503_v11, %v595_v48  ;;  %v676_v56 = vadd.f32 %v595_v48, %v495_v8  ;;  %v326_v11 = vadd.f32 %v257_v35, %v145_v33  ;;  %v501_v54 = vadd.f32 %v426_v4, %v320_v59 }
 0x297   :  { %1700 = vrot.lane.b32.xlu1 %v9276_v29, %s6346_s1  ;;  %v494_v29 = vadd.f32 %v449_v10, %v313_v17  ;;  %v9506_v17 = vld [vmem:[#allocation60_spill] sm:$0xff] }
 0x298   :  { %v454_v8 = vsel %vm439_vm1, %v9506_v17, %v426_v4 }
 0x299   :  { %v788_v22 = vpop.permute.xlu0 %787  ;;  %v776_v24 = vpop.permute.xlu1 %775  ;;  %1698 = vrot.lane.b32.xlu0 %v9279_v52, %s6346_s1  ;;  %v675_v52 = vadd.f32 %v630_v44, %v494_v29  ;;  %v144_v29 = vmul.f32 %v6533_v34, %v9460_v3 }
 0x29a   :  { %v811_v47 = vsel %vm801_vm3, %v9504_v42, %v776_v24  ;;  %v857_v48 = vadd.f32 %v776_v24, %v676_v56  ;;  %v138_v42 = vmul.f32 %v6533_v34, %v9444_v50  ;;  %v9507_v56 = vld [vmem:[#allocation78_spill] sm:$0xff] }
 0x29b   :  { %v856_v10 = vadd.f32 %v811_v47, %v675_v52  ;;  %v325_v23 = vadd.f32 %v278_v57, %v144_v29  ;;  %v992_v24 = vsel %vm982_vm4, %v9507_v56, %v957_v62  ;;  %v9508_v52 = vld [vmem:[#allocation27_spill] sm:$0xff]  ;;  %v9511_v56 = vld [vmem:[#allocation20_spill] sm:$0xff] }
 0x29c   :  { %v319_v44 = vadd.f32 %v273_v6, %v138_v42  ;;  %v1038_v3 = vadd.f32 %v957_v62, %v857_v48  ;;  %v9509_v62 = vld [vmem:[#allocation91_spill] sm:$0xff] }
 0x29d   :  { %v619_v31 = vpop.permute.xlu0 %618  ;;  %v607_v41 = vpop.permute.xlu1 %606 }
 0x29e   :  { %v635_v38 = vsel %vm620_vm2, %v9456_v25, %v607_v41  ;;  %v500_v35 = vadd.f32 %v454_v8, %v319_v44  ;;  %v682_v63 = vadd.f32 %v607_v41, %v501_v54  ;;  %v640_v59 = vsel %vm620_vm2, %v9479_v45, %v619_v31  ;;  %v9510_v41 = vld [vmem:[#allocation9_spill] sm:$0xff] }
 0x2a0   :  { %v681_v4 = vadd.f32 %v635_v38, %v500_v35  ;;  %v863_v48 = vadd.f32 %v788_v22, %v682_v63 }
 0x2a1   :  { %v1319_v32 = vpop.permute.xlu0 %1318  ;;  %v438_v14 = vpop.permute.xlu1 %437 }
 0x2a2   :  { %v459_v7 = vsel %vm439_vm1, %v9471_v60, %v438_v14  ;;  %v507_v34 = vadd.f32 %v438_v14, %v326_v11  ;;  %v1037_v60 = vadd.f32 %v992_v24, %v856_v10  ;;  %v816_v14 = vsel %vm801_vm3, %v9509_v62, %v788_v22 }
 0x2a3   :  { %v506_v33 = vadd.f32 %v459_v7, %v325_v23  ;;  %v1354_v10 = vsel %vm1344_vm6, %v9510_v41, %v1319_v32  ;;  %v862_v44 = vadd.f32 %v816_v14, %v681_v4  ;;  %v9513_v14 = vld [vmem:[#allocation43_spill] sm:$0xff] }
 0x2a4   :  { %v688_v17 = vadd.f32 %v619_v31, %v507_v34 }
 0x2a5   :  { %v1150_v53 = vpop.permute.xlu0 %1149  ;;  %v1138_v46 = vpop.permute.xlu1 %1137  ;;  %v687_v8 = vadd.f32 %v640_v59, %v506_v33 }
 0x2a6   :  { %v1173_v47 = vsel %vm1163_vm5, %v9508_v52, %v1138_v46  ;;  %v1219_v6 = vadd.f32 %v1138_v46, %v1038_v3 }
 0x2a7   :  { %v1218_v57 = vadd.f32 %v1173_v47, %v1037_v60  ;;  %v9512_v47 = vld [vmem:[#allocation92_spill] sm:$0xff] }
 0x2a8   :  { %v1400_v7 = vadd.f32 %v1319_v32, %v1219_v6 }
 0x2a9   :  { %v981_v50 = vpop.permute.xlu0 %980  ;;  %v969_v43 = vpop.permute.xlu1 %968  ;;  %v1399_v54 = vadd.f32 %v1354_v10, %v1218_v57 }
 0x2aa   :  { %v997_v46 = vsel %vm982_vm4, %v7444_v9, %v969_v43  ;;  %v1044_v23 = vadd.f32 %v969_v43, %v863_v48  ;;  %v1002_v34 = vsel %vm982_vm4, %v7712_v27, %v981_v50  ;;  %v1178_v43 = vsel %vm1163_vm5, %v7548_v5, %v1150_v53 }
 0x2ab   :  { %v1043_v38 = vadd.f32 %v997_v46, %v862_v44 }
 0x2ac   :  { %v1225_v60 = vadd.f32 %v1150_v53, %v1044_v23 }
 0x2ad   :  { %v800_v42 = vpop.permute.xlu1 %799  ;;  %v1162_v29 = vpop.permute.xlu0 %1161 }
 0x2ae   :  { %v821_v25 = vsel %vm801_vm3, %v9482_v26, %v800_v42  ;;  %v869_v11 = vadd.f32 %v800_v42, %v688_v17  ;;  %v1183_v4 = vsel %vm1163_vm5, %v7734_v2, %v1162_v29 }
 0x2af   :  { %v868_v45 = vadd.f32 %v821_v25, %v687_v8 }
 0x2b0   :  { %v1050_v3 = vadd.f32 %v981_v50, %v869_v11  ;;  %v1224_v50 = vadd.f32 %v1178_v43, %v1043_v38 }
 0x2b1   :  { %v1500_v31 = vpop.permute.xlu1 %1499  ;;  %v1343_v52 = vpop.permute.xlu0 %1342  ;;  %v1049_v32 = vadd.f32 %v1002_v34, %v868_v45 }
 0x2b2   :  { %v1535_v26 = vsel %vm1525_vm7, %v9511_v56, %v1500_v31  ;;  %v1581_v24 = vadd.f32 %v1500_v31, %v1400_v7  ;;  %v1231_v57 = vadd.f32 %v1162_v29, %v1050_v3  ;;  %v1364_v2 = vsel %vm1344_vm6, %v7873_v55, %v1343_v52  ;;  %v9516_v3 = vld [vmem:[#allocation18_spill] sm:$0xff] }
 0x2b3   :  { %v1580_v22 = vadd.f32 %v1535_v26, %v1399_v54  ;;  %v1230_v59 = vadd.f32 %v1183_v4, %v1049_v32  ;;  %v2011_v32 = vld [vmem:[#allocation2 + $0x208] sm:$0xff] }
 0x2b4   :  { %v8145_v9 = vadd.f32 %v9512_v47, %v1581_v24  ;;  %v1412_v29 = vadd.f32 %v1343_v52, %v1231_v57  ;;  %v9517_v52 = vmax.f32 %v9516_v3, 0.0 }
 0x2b5   :  { %v8148_v35 = vadd.f32 %v9512_v47, %v1580_v22  ;;  %v1331_v63 = vpop.permute.xlu1 %1330  ;;  %v1411_v8 = vadd.f32 %v1364_v2, %v1230_v59 }
 0x2b6   :  { %v1653_v33 = vmax.f32 %v8145_v9, 0.0  ;;  %v1359_v6 = vsel %vm1344_vm6, %v7720_v16, %v1331_v63  ;;  %v1406_v42 = vadd.f32 %v1331_v63, %v1225_v60  ;;  %v5966_v16 = vpop.permute.xlu0 %5965  ;;  %v2013_v63 = vld [vmem:[#allocation2 + $0x218] sm:$0xff]  ;;  %v2071_v9 = vld [vmem:[#allocation2 + $0x3e8] sm:$0xff] }
 0x2b7   :  { %v1652_v27 = vmax.f32 %v8148_v35, 0.0  ;;  %v1405_v5 = vadd.f32 %v1359_v6, %v1224_v50  ;;  %v5968_v41 = vunpack.i.h.bf16 %v5966_v16  ;;  %v5967_v11 = vunpack.i.l.bf16 %v5966_v16 }
 0x2b8   :  { %1712 = vrot.lane.b32.xlu1 %v1653_v33, %s6346_s1  ;;  %v5440_v43 = vpack.c.bf16 %v2013_v63, %v2011_v32 }
 0x2b9   :  { %v1512_v17 = vpop.permute.xlu1 %1511  ;;  %1710 = vrot.lane.b32.xlu0 %v1652_v27, %s6346_s1 }
 0x2ba   :  { %v1540_v53 = vsel %vm1525_vm7, %v7787_v15, %v1512_v17  ;;  %v1587_v25 = vadd.f32 %v1512_v17, %v1406_v42  ;;  %5441 = vmatprep.subr.bf16.mxu0 %v5440_v43 }
 0x2bb   :  { %v1586_v62 = vadd.f32 %v1540_v53, %v1405_v5  ;;  %v9518_v5 = vld [vmem:[#allocation40_spill] sm:$0xff] }
 0x2bc   :  { %v8169_v48 = vadd.f32 %v9513_v14, %v1587_v25  ;;  %v9519_v17 = vmax.f32 %v9518_v5, 0.0  ;;  %v9520_v53 = vld [vmem:[#allocation44_spill] sm:$0xff] }
 0x2bd   :  { %v8172_v10 = vadd.f32 %v9513_v14, %v1586_v62  ;;  %v1524_v46 = vpop.permute.xlu1 %1523  ;;  %v9521_v25 = vmax.f32 %v9520_v53, 0.0 }
 0x2be   :  { %v1659_v7 = vmax.f32 %v8169_v48, 0.0  ;;  %v1545_v15 = vsel %vm1525_vm7, %v7956_v1, %v1524_v46  ;;  %v1593_v44 = vadd.f32 %v1524_v46, %v1412_v29  ;;  %v1744_v1 = vsel %vm258_vm0, %v5967_v11, %v5968_v41 }
 0x2bf   :  { %v1658_v45 = vmax.f32 %v8172_v10, 0.0  ;;  %v1592_v55 = vadd.f32 %v1545_v15, %v1411_v8  ;;  %v9522_v15 = vld [vmem:[#allocation21_spill] sm:$0xff] }
 0x2c0   :  { %v8179_v54 = vadd.f32 %v7851_v40, %v1593_v44  ;;  %1724 = vrot.lane.b32.xlu1 %v1659_v7, %s6346_s1  ;;  %v9523_v44 = vmax.f32 %v9522_v15, 0.0 }
 0x2c1   :  { %v8185_v31 = vadd.f32 %v7851_v40, %v1592_v55  ;;  %v8187_v23 = vpop.permute.xlu1 %5970  ;;  %1722 = vrot.lane.b32.xlu0 %v1658_v45, %s6346_s1  ;;  %v9514_v40 = vld [vmem:[#allocation16_spill] sm:$0xff] }
 0x2c2   :  { %v1665_v56 = vmax.f32 %v8179_v54, 0.0  ;;  %v5972_v26 = vunpack.i.l.bf16 %v8187_v23  ;;  %v9515_v22 = vmax.f32 %v9514_v40, 0.0  ;;  %v5973_v6 = vunpack.i.h.bf16 %v8187_v23  ;;  %v2051_v23 = vld [vmem:[#allocation2 + $0x348] sm:$0xff] }
 0x2c3   :  { %v1664_v24 = vmax.f32 %v8185_v31, 0.0  ;;  %v2065_v31 = vld [vmem:[#allocation2 + $0x3b8] sm:$0xff] }
 0x2c4   :  { %v1745_v38 = vsel %vm258_vm0, %v5968_v41, %v5972_v26  ;;  %1736 = vrot.lane.b32.xlu1 %v1665_v56, %s6346_s1  ;;  %v8204_v34 = vmax.f32 %v9515_v22, %v1744_v1  ;;  %v1743_v4 = vsel %vm258_vm0, %v5973_v6, %v5967_v11 }
 0x2c5   :  { %v8208_v47 = vmax.f32 %v9517_v52, %v1745_v38  ;;  %1734 = vrot.lane.b32.xlu0 %v1664_v24, %s6346_s1  ;;  %v8221_v16 = vmax.f32 %v9519_v17, %v1743_v4 }
 0x2c7   :  { %v5999_v60 = vpack.i.bf16 %v8208_v47, %v8204_v34 }
 0x2c9   :  { %6000 = vrot.lane.b32.xlu0 %v5999_v60, %s6348_s15 }
 0x2e1   :  { %v5976_v50 = vpop.permute.xlu0 %5975 }
 0x2e2   :  { %v5978_v57 = vunpack.i.h.bf16 %v5976_v50  ;;  %v5977_v42 = vunpack.i.l.bf16 %v5976_v50 }
 0x2e4   :  { %v1749_v59 = vsel %vm258_vm0, %v5977_v42, %v5978_v57 }
 0x2e5   :  { %v8225_v62 = vmax.f32 %v9521_v25, %v1749_v59 }
 0x2e7   :  { %v6004_v2 = vpack.i.bf16 %v8225_v62, %v8221_v16 }
 0x2e9   :  { %v8229_v29 = vpop.permute.xlu1 %5980  ;;  %6005 = vrot.lane.b32.xlu1 %v6004_v2, %s6348_s15 }
 0x2ea   :  { %v5983_v14 = vunpack.i.h.bf16 %v8229_v29  ;;  %v5982_v8 = vunpack.i.l.bf16 %v8229_v29 }
 0x2ec   :  { %v1748_v41 = vsel %vm258_vm0, %v5983_v14, %v5977_v42  ;;  %v1750_v46 = vsel %vm258_vm0, %v5978_v57, %v5982_v8  ;;  %v2015_v42 = vld [vmem:[#allocation2 + $0x228] sm:$0xff] }
 0x2ed   :  { %v8240_v11 = vmax.f32 %v1654_v30, %v1748_v41  ;;  %v8244_v55 = vmax.f32 %v9523_v44, %v1750_v46  ;;  %v5444_v15 = vpack.c.bf16 %v2017_v18, %v2015_v42  ;;  %v2014_v44 = vld [vmem:[#allocation2 + $0x220] sm:$0xff] }
 0x2ee   :  { %v2022_v18 = vld [vmem:[#allocation2 + $0x260] sm:$0xff] }
 0x2ef   :  { %v6009_v1 = vpack.i.bf16 %v8240_v11, %v8244_v55 }
 0x2f1   :  { %6010 = vrot.lane.b32.xlu0 %v6009_v1, %s6348_s15  ;;  %v2016_v1 = vld [vmem:[#allocation2 + $0x230] sm:$0xff] }
 0x2fd   :  { %v5986_v38 = vpop.permute.xlu0 %5985 }
 0x2fe   :  { %v5988_v40 = vunpack.i.h.bf16 %v5986_v38  ;;  %v5987_v22 = vunpack.i.l.bf16 %v5986_v38  ;;  %v9524_v38 = vmax.f32 %v8028_v0, 0.0  ;;  %v5446_v0 = vpack.c.bf16 %v2016_v1, %v2014_v44  ;;  %v2030_v1 = vld [vmem:[#allocation2 + $0x2a0] sm:$0xff] }
 0x300   :  { %v1754_v52 = vsel %vm258_vm0, %v5987_v22, %v5988_v40 }
 0x301   :  { %v8249_v3 = vpop.permute.xlu1 %5990  ;;  %v8258_v32 = vmax.f32 %v1661_v12, %v1754_v52  ;;  %v2012_v12 = vld [vmem:[#allocation2 + $0x210] sm:$0xff] }
 0x302   :  { %v5992_v49 = vunpack.i.l.bf16 %v8249_v3  ;;  %v5993_v60 = vunpack.i.h.bf16 %v8249_v3  ;;  %v5442_v14 = vpack.c.bf16 %v2012_v12, %v2010_v51  ;;  %v2025_v51 = vld [vmem:[#allocation2 + $0x278] sm:$0xff] }
 0x304   :  { %v1755_v30 = vsel %vm258_vm0, %v5988_v40, %v5992_v49 }
 0x305   :  { %v8262_v63 = vmax.f32 %v1662_v61, %v1755_v30  ;;  %v1831_v43 = vpop.permute.xlu1 %1830  ;;  %v1753_v61 = vsel %vm258_vm0, %v5993_v60, %v5987_v22  ;;  %v9525_v22 = vld [vmem:[#allocation95_spill] sm:$0xff] }
 0x306   :  { %v8288_v40 = vmax.f32 %v9524_v38, %v1753_v61  ;;  %v9526_v52 = vmax.f32 %v9525_v22, 0.0  ;;  %v2024_v61 = vld [vmem:[#allocation2 + $0x270] sm:$0xff]  ;;  %v2035_v22 = vld [vmem:[#allocation2 + $0x2c8] sm:$0xff] }
 0x307   :  { %v6014_v6 = vpack.i.bf16 %v8262_v63, %v8258_v32  ;;  %v8267_v50 = vpop.permute.xlu0 %5995  ;;  %v2032_v38 = vld [vmem:[#allocation2 + $0x2b0] sm:$0xff] }
 0x308   :  { %v5998_v4 = vunpack.i.h.bf16 %v8267_v50  ;;  %v5997_v57 = vunpack.i.l.bf16 %v8267_v50  ;;  %v2082_v50 = vld [vmem:[#allocation2 + $0x440] sm:$0xff] }
 0x309   :  { %6015 = vrot.lane.b32.xlu1 %v6014_v6, %s6348_s15  ;;  %v8277_v17 = vpop.permute.xlu1 %1700  ;;  %v2018_v6 = vld [vmem:[#allocation2 + $0x240] sm:$0xff] }
 0x30a   :  { %v1879_v59 = vsel %vm620_vm2, %v5997_v57, %v5998_v4  ;;  %v1878_v5 = vsel %vm620_vm2, %v1831_v43, %v5997_v57  ;;  %v2020_v57 = vld [vmem:[#allocation2 + $0x250] sm:$0xff] }
 0x30b   :  { %v1699_v53 = vpop.permute.xlu0 %1698  ;;  %v1923_v25 = vmax.f32 %v8070_v28, %v1879_v59  ;;  %v1922_v2 = vmax.f32 %v8066_v20, %v1878_v5  ;;  %v9527_v20 = vmax.f32 %v8079_v13, 0.0  ;;  %v2023_v13 = vld [vmem:[#allocation2 + $0x268] sm:$0xff]  ;;  %v5450_v12 = vpack.c.bf16 %v2020_v57, %v2018_v6  ;;  %v2029_v5 = vld [vmem:[#allocation2 + $0x298] sm:$0xff] }
 0x30c   :  { %v1741_v41 = vsel %vm258_vm0, %v5962_v37, %v1699_v53  ;;  %v1742_v46 = vsel %vm258_vm0, %v1699_v53, %v8277_v17  ;;  %v2021_v37 = vld [vmem:[#allocation2 + $0x258] sm:$0xff]  ;;  %v5452_v42 = vpack.c.bf16 %v2025_v51, %v2023_v13  ;;  %v2027_v59 = vld [vmem:[#allocation2 + $0x288] sm:$0xff]  ;;  %v5454_v53 = vpack.c.bf16 %v2024_v61, %v2022_v18  ;;  %v2038_v13 = vld [vmem:[#allocation2 + $0x2e0] sm:$0xff] }
 0x30d   :  { %v8292_v28 = vmax.f32 %v9526_v52, %v1741_v41  ;;  %v8296_v30 = vmax.f32 %v9527_v20, %v1742_v46  ;;  %2185 = vmatprep.mubr.f32.mxu0 %v1923_v25  ;;  %v5448_v60 = vpack.c.bf16 %v2021_v37, %v2019_v58  ;;  %v5456_v25 = vpack.c.bf16 %v2029_v5, %v2027_v59  ;;  %v2031_v41 = vld [vmem:[#allocation2 + $0x2a8] sm:$0xff]  ;;  %v2033_v46 = vld [vmem:[#allocation2 + $0x2b8] sm:$0xff]  ;;  %v2034_v37 = vld [vmem:[#allocation2 + $0x2c0] sm:$0xff] }
 0x30e   :  { %2186 = vmatmul.mubr.f32.vlgmr.msra.gmra.mrb[0].mxu0 %v1922_v2  ;;  %v2026_v2 = vld [vmem:[#allocation2 + $0x280] sm:$0xff]  ;;  %v5460_v44 = vpack.c.bf16 %v2033_v46, %v2031_v41  ;;  %v2037_v52 = vld [vmem:[#allocation2 + $0x2d8] sm:$0xff]  ;;  %v5462_v20 = vpack.c.bf16 %v2032_v38, %v2030_v1  ;;  %v2040_v51 = vld [vmem:[#allocation2 + $0x2f0] sm:$0xff] }
 0x30f   :  { %v6019_v43 = vpack.i.bf16 %v8292_v28, %v8288_v40  ;;  %1838 = vrot.lane.b32.xlu1 %v8296_v30, %s6348_s15  ;;  %5443 = vmatpush1.bf16.msra.mxu0 %v5442_v14  ;;  %v2028_v14 = vld [vmem:[#allocation2 + $0x290] sm:$0xff]  ;;  %v5464_v58 = vpack.c.bf16 %v2037_v52, %v2035_v22  ;;  %v5470_v18 = vpack.c.bf16 %v2040_v51, %v2038_v13  ;;  %v2042_v59 = vld [vmem:[#allocation2 + $0x300] sm:$0xff] }
 0x310   :  { %5445 = vmatprep.subr.bf16.mxu0 %v5444_v15  ;;  %v5458_v15 = vpack.c.bf16 %v2028_v14, %v2026_v2  ;;  %v2044_v5 = vld [vmem:[#allocation2 + $0x310] sm:$0xff]  ;;  %v2049_v2 = vld [vmem:[#allocation2 + $0x338] sm:$0xff] }
 0x311   :  { %6020 = vrot.lane.b32.xlu0 %v6019_v43, %s6348_s15  ;;  %v2036_v43 = vld [vmem:[#allocation2 + $0x2d0] sm:$0xff] }
 0x312   :  { %v5466_v6 = vpack.c.bf16 %v2036_v43, %v2034_v37  ;;  %v2053_v37 = vld [vmem:[#allocation2 + $0x358] sm:$0xff] }
 0x313   :  { %5447 = vmatpush1.bf16.msra.mxu0 %v5446_v0  ;;  %v2039_v0 = vld [vmem:[#allocation2 + $0x2e8] sm:$0xff] }
 0x314   :  { %5449 = vmatprep.subr.bf16.mxu0 %v5448_v60  ;;  %v2041_v60 = vld [vmem:[#allocation2 + $0x2f8] sm:$0xff] }
 0x315   :  { %v5468_v57 = vpack.c.bf16 %v2041_v60, %v2039_v0  ;;  %v5480_v0 = vpack.c.bf16 %v2053_v37, %v2051_v23  ;;  %v2050_v60 = vld [vmem:[#allocation2 + $0x340] sm:$0xff]  ;;  %v2063_v37 = vld [vmem:[#allocation2 + $0x3a8] sm:$0xff] }
 0x317   :  { %5451 = vmatpush1.bf16.msra.mxu0 %v5450_v12  ;;  %v2043_v12 = vld [vmem:[#allocation2 + $0x308] sm:$0xff] }
 0x318   :  { %5453 = vmatprep.subr.bf16.mxu0 %v5452_v42  ;;  %v2045_v42 = vld [vmem:[#allocation2 + $0x318] sm:$0xff] }
 0x319   :  { %v5472_v61 = vpack.c.bf16 %v2045_v42, %v2043_v12 }
 0x31b   :  { %5455 = vmatpush1.bf16.msra.mxu0 %v5454_v53 }
 0x31c   :  { %5457 = vmatprep.subr.bf16.mxu0 %v5456_v25  ;;  %v2047_v25 = vld [vmem:[#allocation2 + $0x328] sm:$0xff] }
 0x31d   :  { %v5476_v52 = vpack.c.bf16 %v2049_v2, %v2047_v25  ;;  %v2054_v25 = vld [vmem:[#allocation2 + $0x360] sm:$0xff]  ;;  %v2056_v2 = vld [vmem:[#allocation2 + $0x370] sm:$0xff] }
 0x31e   :  { %v5486_v10 = vpack.c.bf16 %v2056_v2, %v2054_v25  ;;  %v2075_v25 = vld [vmem:[#allocation2 + $0x408] sm:$0xff]  ;;  %v2077_v2 = vld [vmem:[#allocation2 + $0x418] sm:$0xff] }
 0x31f   :  { %5459 = vmatpush1.bf16.msra.mxu0 %v5458_v15  ;;  %v5474_v15 = vpack.c.bf16 %v2044_v5, %v2042_v59 }
 0x320   :  { %5461 = vmatprep.subr.bf16.mxu0 %v5460_v44  ;;  %v9528_v44 = vld [vmem:[#allocation19_spill] sm:$0xff] }
 0x321   :  { %v9529_v1 = vmax.f32 %v9528_v44, 0.0 }
 0x323   :  { %5463 = vmatpush1.bf16.msra.mxu0 %v5462_v20  ;;  %v2046_v20 = vld [vmem:[#allocation2 + $0x320] sm:$0xff] }
 0x324   :  { %5465 = vmatprep.subr.bf16.mxu0 %v5464_v58  ;;  %v2048_v58 = vld [vmem:[#allocation2 + $0x330] sm:$0xff] }
 0x325   :  { %v5478_v43 = vpack.c.bf16 %v2048_v58, %v2046_v20  ;;  %v2060_v20 = vld [vmem:[#allocation2 + $0x390] sm:$0xff] }
 0x327   :  { %5467 = vmatpush1.bf16.msra.mxu0 %v5466_v6  ;;  %v2052_v6 = vld [vmem:[#allocation2 + $0x350] sm:$0xff] }
 0x328   :  { %5469 = vmatprep.subr.bf16.mxu0 %v5468_v57  ;;  %v2057_v57 = vld [vmem:[#allocation2 + $0x378] sm:$0xff]  ;;  %v5482_v42 = vpack.c.bf16 %v2052_v6, %v2050_v60  ;;  %v5492_v60 = vpack.c.bf16 %v2065_v31, %v2063_v37  ;;  %v2067_v6 = vld [vmem:[#allocation2 + $0x3c8] sm:$0xff] }
 0x32a   :  { %v8303_v53 = vpop.permute.xlu1 %1712 }
 0x32b   :  { %v1711_v14 = vpop.permute.xlu0 %1710  ;;  %5471 = vmatpush1.bf16.msra.mxu0 %v5470_v18  ;;  %v9530_v18 = vmax.f32 %v7888_v36, 0.0 }
 0x32c   :  { %v1746_v41 = vsel %vm258_vm0, %v5972_v26, %v1711_v14  ;;  %v1747_v46 = vsel %vm258_vm0, %v1711_v14, %v8303_v53  ;;  %5473 = vmatprep.subr.bf16.mxu0 %v5472_v61 }
 0x32d   :  { %v8312_v38 = vmax.f32 %v9529_v1, %v1746_v41  ;;  %v8316_v22 = vmax.f32 %v1652_v27, %v1747_v46  ;;  %v2055_v27 = vld [vmem:[#allocation2 + $0x368] sm:$0xff]  ;;  %v2061_v46 = vld [vmem:[#allocation2 + $0x398] sm:$0xff] }
 0x32e   :  { %v5484_v5 = vpack.c.bf16 %v2057_v57, %v2055_v27  ;;  %v2059_v41 = vld [vmem:[#allocation2 + $0x388] sm:$0xff]  ;;  %v2069_v27 = vld [vmem:[#allocation2 + $0x3d8] sm:$0xff]  ;;  %v8368_v57 = vmax.f32 %v1653_v33, %v8303_v53  ;;  %v2070_v53 = vld [vmem:[#allocation2 + $0x3e0] sm:$0xff] }
 0x32f   :  { %v6024_v26 = vpack.i.bf16 %v8316_v22, %v8312_v38  ;;  %5475 = vmatpush1.bf16.msra.mxu0 %v5474_v15  ;;  %v5488_v3 = vpack.c.bf16 %v2061_v46, %v2059_v41  ;;  %v2073_v33 = vld [vmem:[#allocation2 + $0x3f8] sm:$0xff] }
 0x330   :  { %5477 = vmatprep.subr.bf16.mxu0 %v5476_v52  ;;  %v2058_v52 = vld [vmem:[#allocation2 + $0x380] sm:$0xff] }
 0x331   :  { %6025 = vrot.lane.b32.xlu0 %v6024_v26, %s6348_s15 }
 0x332   :  { %v1725_v35 = vpop.permute.xlu1 %1724 }
 0x333   :  { %v1723_v13 = vpop.permute.xlu0 %1722  ;;  %5479 = vmatpush1.bf16.msra.mxu0 %v5478_v43  ;;  %v5490_v43 = vpack.c.bf16 %v2060_v20, %v2058_v52 }
 0x334   :  { %v1751_v51 = vsel %vm258_vm0, %v5982_v8, %v1723_v13  ;;  %v1752_v12 = vsel %vm258_vm0, %v1723_v13, %v1725_v35  ;;  %5481 = vmatprep.subr.bf16.mxu0 %v5480_v0  ;;  %v8372_v13 = vmax.f32 %v1659_v7, %v1725_v35  ;;  %v2072_v35 = vld [vmem:[#allocation2 + $0x3f0] sm:$0xff] }
 0x335   :  { %v8327_v61 = vmax.f32 %v9530_v18, %v1751_v51  ;;  %v8331_v59 = vmax.f32 %v1658_v45, %v1752_v12  ;;  %v9531_v45 = vmax.f32 %v8020_v19, 0.0  ;;  %v2066_v18 = vld [vmem:[#allocation2 + $0x3c0] sm:$0xff] }
 0x336   :  { %v1737_v14 = vpop.permute.xlu1 %1736 }
 0x337   :  { %v6029_v29 = vpack.i.bf16 %v8331_v59, %v8327_v61  ;;  %v1735_v8 = vpop.permute.xlu0 %1734  ;;  %5483 = vmatpush1.bf16.msra.mxu0 %v5482_v42  ;;  %v5496_v42 = vpack.c.bf16 %v2069_v27, %v2067_v6  ;;  %v8381_v48 = vmax.f32 %v1665_v56, %v1737_v14  ;;  %v2074_v6 = vld [vmem:[#allocation2 + $0x400] sm:$0xff]  ;;  %v2076_v27 = vld [vmem:[#allocation2 + $0x410] sm:$0xff] }
 0x338   :  { %v1756_v36 = vsel %vm258_vm0, %v5992_v49, %v1735_v8  ;;  %v1757_v15 = vsel %vm258_vm0, %v1735_v8, %v1737_v14  ;;  %5485 = vmatprep.subr.bf16.mxu0 %v5484_v5  ;;  %v9532_v49 = vmax.f32 %v8059_v39, 0.0  ;;  %v2062_v39 = vld [vmem:[#allocation2 + $0x3a0] sm:$0xff]  ;;  %v2068_v5 = vld [vmem:[#allocation2 + $0x3d0] sm:$0xff]  ;;  %v5504_v8 = vpack.c.bf16 %v2077_v2, %v2075_v25 }
 0x339   :  { %v8341_v44 = vmax.f32 %v9531_v45, %v1756_v36  ;;  %v8345_v1 = vmax.f32 %v1664_v24, %v1757_v15  ;;  %6030 = vrot.lane.b32.xlu1 %v6029_v29, %s6348_s15  ;;  %v5498_v7 = vpack.c.bf16 %v2068_v5, %v2066_v18  ;;  %v5502_v29 = vpack.c.bf16 %v2072_v35, %v2070_v53  ;;  %v2084_v53 = vld [vmem:[#allocation2 + $0x450] sm:$0xff]  ;;  %v2089_v35 = vld [vmem:[#allocation2 + $0x478] sm:$0xff] }
 0x33a   :  { %v8351_v58 = vmax.f32 %v9532_v49, %v8277_v17  ;;  %v2064_v17 = vld [vmem:[#allocation2 + $0x3b0] sm:$0xff]  ;;  %v5514_v25 = vpack.c.bf16 %v2084_v53, %v2082_v50  ;;  %v2106_v53 = vld [vmem:[#allocation2 + $0x500] sm:$0xff] }
 0x33b   :  { %v6034_v19 = vpack.i.bf16 %v8345_v1, %v8341_v44  ;;  %v8355_v23 = vpop.permute.xlu0 %6000  ;;  %5487 = vmatpush1.bf16.msra.mxu0 %v5486_v10  ;;  %v5494_v12 = vpack.c.bf16 %v2064_v17, %v2062_v39 }
 0x33c   :  { %v6003_v24 = vunpack.i.h.bf16 %v8355_v23  ;;  %v6002_v26 = vunpack.i.l.bf16 %v8355_v23  ;;  %5489 = vmatprep.subr.bf16.mxu0 %v5488_v3 }
 0x33d   :  { %1840 = vrot.lane.b32.xlu1 %v8351_v58, %s6348_s15  ;;  %6035 = vrot.lane.b32.xlu0 %v6034_v19, %s6348_s15 }
 0x33e   :  { %v1884_v0 = vsel %vm620_vm2, %v6002_v26, %v6003_v24 }
 0x33f   :  { %v1929_v51 = vmax.f32 %v8204_v34, %v1884_v0  ;;  %5491 = vmatpush1.bf16.msra.mxu0 %v5490_v43  ;;  %v5500_v34 = vpack.c.bf16 %v2073_v33, %v2071_v9  ;;  %v2078_v9 = vld [vmem:[#allocation2 + $0x420] sm:$0xff]  ;;  %v2080_v33 = vld [vmem:[#allocation2 + $0x430] sm:$0xff] }
 0x340   :  { %5493 = vmatprep.subr.bf16.mxu0 %v5492_v60 }
 0x341   :  { %1864 = vrot.lane.b32.xlu1 %v8372_v13, %s6348_s15  ;;  %1852 = vrot.lane.b32.xlu0 %v8368_v57, %s6348_s15 }
 0x342   :  { %2191 = vmatprep.mubr.f32.mxu0 %v1929_v51  ;;  %v2079_v51 = vld [vmem:[#allocation2 + $0x428] sm:$0xff] }
 0x343   :  { %5495 = vmatpush1.bf16.msra.mxu0 %v5494_v12  ;;  %v2081_v12 = vld [vmem:[#allocation2 + $0x438] sm:$0xff] }
 0x344   :  { %5497 = vmatprep.subr.bf16.mxu0 %v5496_v42  ;;  %v5506_v42 = vpack.c.bf16 %v2076_v27, %v2074_v6  ;;  %v5508_v5 = vpack.c.bf16 %v2081_v12, %v2079_v51  ;;  %v2102_v12 = vld [vmem:[#allocation2 + $0x4e0] sm:$0xff] }
 0x345   :  { %1876 = vrot.lane.b32.xlu0 %v8381_v48, %s6348_s15 }
 0x347   :  { %5499 = vmatpush1.bf16.msra.mxu0 %v5498_v7  ;;  %v2083_v7 = vld [vmem:[#allocation2 + $0x448] sm:$0xff] }
 0x348   :  { %5501 = vmatprep.subr.bf16.mxu0 %v5500_v34 }
 0x34b   :  { %5503 = vmatpush1.bf16.msra.mxu0 %v5502_v29  ;;  %v2086_v29 = vld [vmem:[#allocation2 + $0x460] sm:$0xff] }
 0x34c   :  { %5505 = vmatprep.subr.bf16.mxu0 %v5504_v8  ;;  %v2091_v8 = vld [vmem:[#allocation2 + $0x488] sm:$0xff] }
 0x35b   :  { %v6006_v54 = vpop.permute.xlu1 %6005 }
 0x35c   :  { %v6007_v56 = vunpack.i.l.bf16 %v6006_v54  ;;  %v6008_v36 = vunpack.i.h.bf16 %v6006_v54  ;;  %v2093_v54 = vld [vmem:[#allocation2 + $0x498] sm:$0xff] }
 0x35e   :  { %v1883_v14 = vsel %vm620_vm2, %v6007_v56, %v6002_v26 }
 0x35f   :  { %v1928_v41 = vmax.f32 %v8221_v16, %v1883_v14  ;;  %v5520_v14 = vpack.c.bf16 %v2093_v54, %v2091_v8 }
 0x361   :  { %2192 = vmatmul.mubr.f32.gmra.mrb[2].mxu0 %v1928_v41  ;;  %v2090_v41 = vld [vmem:[#allocation2 + $0x480] sm:$0xff] }
 0x363   :  { %v8387_v46 = vpop.permute.xlu0 %6010 }
 0x364   :  { %v6013_v15 = vunpack.i.h.bf16 %v8387_v46  ;;  %v6012_v10 = vunpack.i.l.bf16 %v8387_v46 }
 0x366   :  { %v1889_v45 = vsel %vm620_vm2, %v6008_v36, %v6012_v10  ;;  %v1888_v52 = vsel %vm620_vm2, %v6013_v15, %v6008_v36  ;;  %v2092_v36 = vld [vmem:[#allocation2 + $0x490] sm:$0xff]  ;;  %v2095_v15 = vld [vmem:[#allocation2 + $0x4a8] sm:$0xff] }
 0x367   :  { %v1935_v20 = vmax.f32 %v8225_v62, %v1889_v45  ;;  %v1934_v3 = vmax.f32 %v8240_v11, %v1888_v52  ;;  %v2097_v45 = vld [vmem:[#allocation2 + $0x4b8] sm:$0xff]  ;;  %v5522_v52 = vpack.c.bf16 %v2092_v36, %v2090_v41 }
 0x369   :  { %2197 = vmatprep.mubr.f32.mxu0 %v1935_v20  ;;  %v5524_v20 = vpack.c.bf16 %v2097_v45, %v2095_v15 }
 0x36a   :  { %2198 = vmatmul.mubr.f32.gmra.mrb[4].mxu0 %v1934_v3  ;;  %v2094_v3 = vld [vmem:[#allocation2 + $0x4a0] sm:$0xff] }
 0x37b   :  { %v8397_v16 = vpop.permute.xlu1 %6015 }
 0x37c   :  { %v6018_v49 = vunpack.i.h.bf16 %v8397_v16  ;;  %v6017_v19 = vunpack.i.l.bf16 %v8397_v16 }
 0x37e   :  { %v1894_v37 = vsel %vm620_vm2, %v6017_v19, %v6018_v49 }
 0x37f   :  { %v1941_v31 = vmax.f32 %v8258_v32, %v1894_v37  ;;  %v2099_v37 = vld [vmem:[#allocation2 + $0x4c8] sm:$0xff] }
 0x381   :  { %2203 = vmatprep.mubr.f32.mxu0 %v1941_v31  ;;  %v8405_v39 = vpop.permute.xlu1 %1838  ;;  %v2101_v31 = vld [vmem:[#allocation2 + $0x4d8] sm:$0xff] }
 0x383   :  { %v6021_v26 = vpop.permute.xlu0 %6020 }
 0x384   :  { %v6023_v43 = vunpack.i.h.bf16 %v6021_v26  ;;  %v6022_v62 = vunpack.i.l.bf16 %v6021_v26 }
 0x386   :  { %v1893_v11 = vsel %vm620_vm2, %v6022_v62, %v6017_v19  ;;  %v1881_v17 = vsel %vm620_vm2, %v6023_v43, %v8405_v39  ;;  %v1880_v32 = vsel %vm620_vm2, %v5998_v4, %v6023_v43  ;;  %v2087_v4 = vld [vmem:[#allocation2 + $0x468] sm:$0xff]  ;;  %v2096_v19 = vld [vmem:[#allocation2 + $0x4b0] sm:$0xff]  ;;  %v5528_v43 = vpack.c.bf16 %v2101_v31, %v2099_v37  ;;  %v2098_v62 = vld [vmem:[#allocation2 + $0x4c0] sm:$0xff] }
 0x387   :  { %v1940_v0 = vmax.f32 %v8288_v40, %v1893_v11  ;;  %v1925_v60 = vmax.f32 %v8292_v28, %v1881_v17  ;;  %v1924_v18 = vmax.f32 %v8074_v21, %v1880_v32  ;;  %v2085_v40 = vld [vmem:[#allocation2 + $0x458] sm:$0xff]  ;;  %v5510_v28 = vpack.c.bf16 %v2080_v33, %v2078_v9  ;;  %v2088_v21 = vld [vmem:[#allocation2 + $0x470] sm:$0xff]  ;;  %v2103_v17 = vld [vmem:[#allocation2 + $0x4e8] sm:$0xff] }
 0x388   :  { %v5512_v34 = vpack.c.bf16 %v2085_v40, %v2083_v7  ;;  %v5516_v2 = vpack.c.bf16 %v2089_v35, %v2087_v4  ;;  %v5518_v56 = vpack.c.bf16 %v2088_v21, %v2086_v29  ;;  %v5526_v26 = vpack.c.bf16 %v2096_v19, %v2094_v3  ;;  %v2100_v11 = vld [vmem:[#allocation2 + $0x4d0] sm:$0xff]  ;;  %v2107_v40 = vld [vmem:[#allocation2 + $0x508] sm:$0xff] }
 0x389   :  { %2204 = vmatmul.mubr.f32.gmra.mrb[6].mxu0 %v1940_v0  ;;  %v2105_v0 = vld [vmem:[#allocation2 + $0x4f8] sm:$0xff]  ;;  %v5530_v6 = vpack.c.bf16 %v2100_v11, %v2098_v62  ;;  %v2626_v62 = vld [vmem:[%s9157_s4 + $0x8] sm:$0xff]  ;;  %v2649_v11 = vld [vmem:[%s9158_s5] sm:$0xff] }
 0x38a   :  { %2274 = vmatprep.mubr.f32.mxu0 %v1925_v60  ;;  %v5532_v51 = vpack.c.bf16 %v2105_v0, %v2103_v17  ;;  %2786 = vmatprep.mubr.f32.mxu1 %v2626_v62  ;;  %v2651_v17 = vld [vmem:[%s9158_s5 + $0x10] sm:$0xff]  ;;  %v2650_v0 = vld [vmem:[%s9158_s5 + $0x8] sm:$0xff] }
 0x38d   :  { %2275 = vmatmul.mubr.f32.vlgmr.msra.gmra.mrb[0].mxu0 %v1924_v18 }
 0x38e   :  { %5507 = vmatpush1.bf16.msra.mxu0 %v5506_v42  ;;  %v2104_v42 = vld [vmem:[#allocation2 + $0x4f0] sm:$0xff] }
 0x38f   :  { %5509 = vmatprep.subr.bf16.mxu0 %v5508_v5  ;;  %v5534_v7 = vpack.c.bf16 %v2104_v42, %v2102_v12 }
 0x392   :  { %5511 = vmatpush1.bf16.msra.mxu0 %v5510_v28 }
 0x393   :  { %5513 = vmatprep.subr.bf16.mxu0 %v5512_v34 }
 0x396   :  { %5515 = vmatpush1.bf16.msra.mxu0 %v5514_v25 }
 0x397   :  { %5517 = vmatprep.subr.bf16.mxu0 %v5516_v2 }
 0x39a   :  { %5519 = vmatpush1.bf16.msra.mxu0 %v5518_v56 }
 0x39b   :  { %5521 = vmatprep.subr.bf16.mxu0 %v5520_v14 }
 0x39e   :  { %5523 = vmatpush1.bf16.msra.mxu0 %v5522_v52 }
 0x39f   :  { %5525 = vmatprep.subr.bf16.mxu0 %v5524_v20 }
 0x3a2   :  { %5527 = vmatpush1.bf16.msra.mxu0 %v5526_v26 }
 0x3a3   :  { %v6026_v60 = vpop.permute.xlu0 %6025  ;;  %5529 = vmatprep.subr.bf16.mxu0 %v5528_v43 }
 0x3a4   :  { %v6028_v27 = vunpack.i.h.bf16 %v6026_v60  ;;  %v6027_v32 = vunpack.i.l.bf16 %v6026_v60  ;;  %v2653_v60 = vld [vmem:[%s9158_s5 + $0x20] sm:$0xff] }
 0x3a6   :  { %v1886_v18 = vsel %vm620_vm2, %v6027_v32, %v6028_v27  ;;  %v1885_v5 = vsel %vm620_vm2, %v6003_v24, %v6027_v32  ;;  %5531 = vmatpush1.bf16.msra.mxu0 %v5530_v6  ;;  %v2652_v6 = vld [vmem:[%s9158_s5 + $0x18] sm:$0xff]  ;;  %v2654_v32 = vld [vmem:[%s9158_s5 + $0x28] sm:$0xff] }
 0x3a7   :  { %v1931_v9 = vmax.f32 %v8312_v38, %v1886_v18  ;;  %v1930_v33 = vmax.f32 %v8208_v47, %v1885_v5  ;;  %5533 = vmatprep.subr.bf16.mxu0 %v5532_v51  ;;  %v2656_v51 = vld [vmem:[%s9158_s5 + $0x38] sm:$0xff] }
 0x3a9   :  { %2280 = vmatprep.mubr.f32.mxu0 %v1931_v9 }
 0x3aa   :  { %2281 = vmatmul.mubr.f32.gmra.mrb[2].mxu0 %v1930_v33 }
 0x3ab   :  { %v6031_v28 = vpop.permute.xlu1 %6030  ;;  %5535 = vmatpush1.bf16.msra.mxu0 %v5534_v7 }
 0x3ac   :  { %v6033_v34 = vunpack.i.h.bf16 %v6031_v28  ;;  %v6032_v50 = vunpack.i.l.bf16 %v6031_v28  ;;  %2331 = vmatprep.subr.mxu0 %v2107_v40 }
 0x3ae   :  { %v1891_v23 = vsel %vm620_vm2, %v6032_v50, %v6033_v34  ;;  %v1890_v38 = vsel %vm620_vm2, %v6012_v10, %v6032_v50 }
 0x3af   :  { %v6036_v24 = vpop.permute.xlu0 %6035  ;;  %v1937_v47 = vmax.f32 %v8327_v61, %v1891_v23  ;;  %v1936_v4 = vmax.f32 %v8244_v55, %v1890_v38  ;;  %2332 = vmatpush1.msra.mxu0 %v2106_v53  ;;  %v1841_v2 = vpop.permute.xlu1 %1840 }
 0x3b0   :  { %v6038_v35 = vunpack.i.h.bf16 %v6036_v24  ;;  %v6037_v25 = vunpack.i.l.bf16 %v6036_v24  ;;  %v1882_v55 = vsel %vm620_vm2, %v8405_v39, %v1841_v2  ;;  %v1927_v61 = vmax.f32 %v8351_v58, %v1841_v2 }
 0x3b1   :  { %2286 = vmatprep.mubr.f32.mxu0 %v1937_v47  ;;  %v1926_v54 = vmax.f32 %v8296_v30, %v1882_v55 }
 0x3b2   :  { %2287 = vmatmul.mubr.f32.gmra.mrb[4].mxu0 %v1936_v4  ;;  %v1896_v29 = vsel %vm620_vm2, %v6037_v25, %v6038_v35  ;;  %v1895_v21 = vsel %vm620_vm2, %v6018_v49, %v6037_v25 }
 0x3b3   :  { %v1943_v46 = vmax.f32 %v8341_v44, %v1896_v29  ;;  %v1942_v10 = vmax.f32 %v8262_v63, %v1895_v21  ;;  %v1853_v8 = vpop.permute.xlu0 %1852  ;;  %v1865_v44 = vpop.permute.xlu1 %1864 }
 0x3b4   :  { %v1887_v16 = vsel %vm620_vm2, %v6028_v27, %v1853_v8  ;;  %v1933_v49 = vmax.f32 %v8368_v57, %v1853_v8  ;;  %v1892_v39 = vsel %vm620_vm2, %v6033_v34, %v1865_v44  ;;  %v1939_v58 = vmax.f32 %v8372_v13, %v1865_v44  ;;  %v2655_v27 = vld [vmem:[%s9158_s5 + $0x30] sm:$0xff] }
 0x3b5   :  { %2292 = vmatprep.mubr.f32.mxu0 %v1943_v46  ;;  %v1932_v63 = vmax.f32 %v8316_v22, %v1887_v16  ;;  %v1938_v30 = vmax.f32 %v8331_v59, %v1892_v39 }
 0x3b6   :  { %2293 = vmatmul.mubr.f32.gmra.mrb[6].mxu0 %v1942_v10 }
 0x3b7   :  { %4822 = vmatprep.mubr.msk.f32.mxu0 %vm2108_vm8, %v1927_v61  ;;  %v1877_v56 = vpop.permute.xlu0 %1876 }
 0x3b8   :  { %v1897_v14 = vsel %vm620_vm2, %v6038_v35, %v1877_v56  ;;  %v1945_v57 = vmax.f32 %v8381_v48, %v1877_v56  ;;  %vm3406_vm2 = vcmask 523264  }
 0x3b9   :  { %v1944_v41 = vmax.f32 %v8345_v1, %v1897_v14 }
 0x3ba   :  { %2364 = vmatmul.mubr.f32.vlgmr.msra.gmra.mrb[0].mxu0 %v1926_v54 }
 0x3bb   :  { %4823 = vmatprep.mubr.msk.f32.mxu0 %vm2108_vm8, %v1933_v49 }
 0x3be   :  { %2370 = vmatmul.mubr.f32.gmra.mrb[2].mxu0 %v1932_v63 }
 0x3bf   :  { %4824 = vmatprep.mubr.msk.f32.mxu0 %vm2108_vm8, %v1939_v58 }
 0x3c2   :  { %2376 = vmatmul.mubr.f32.gmra.mrb[4].mxu0 %v1938_v30 }
 0x3c3   :  { %4825 = vmatprep.mubr.msk.f32.mxu0 %vm2108_vm8, %v1945_v57 }
 0x3c6   :  { %2382 = vmatmul.mubr.f32.gmra.mrb[6].mxu0 %v1944_v41 }
 0x48d   :  { %v2365_v22 = vpop.f32.mrb[0].mxu0 }
 0x48e   :  { %v2367_v36 = vpop.f32.mrb[1].mxu0 }
 0x48f   :  { %v6039_v15 = vpack.i.bf16 %v2367_v36, %v2365_v22 }
 0x491   :  { %6040 = vrot.lane.b32.xlu1 %v6039_v15, %s6346_s1  ;;  %v2371_v13 = vpop.f32.mrb[2].mxu0 }
 0x492   :  { %v2373_v45 = vpop.f32.mrb[3].mxu0  ;;  %v5538_v52 = vpack.c.bf16 %v2371_v13, %v2365_v22 }
 0x493   :  { %v6044_v20 = vpack.i.bf16 %v2373_v45, %v2371_v13  ;;  %v5536_v59 = vpack.c.bf16 %v2373_v45, %v2367_v36 }
 0x495   :  { %6045 = vrot.lane.b32.xlu0 %v6044_v20, %s6346_s1  ;;  %v2377_v3 = vpop.f32.mrb[4].mxu0  ;;  %5537 = vmatprep.subr.bf16.mxu1 %v5536_v59 }
 0x496   :  { %v2379_v48 = vpop.f32.mrb[5].mxu0  ;;  %5539 = vmatpush1.bf16.msra.mxu1 %v5538_v52 }
 0x497   :  { %v6049_v19 = vpack.i.bf16 %v2379_v48, %v2377_v3 }
 0x499   :  { %6050 = vrot.lane.b32.xlu1 %v6049_v19, %s6346_s1  ;;  %v2383_v1 = vpop.f32.mrb[6].mxu0 }
 0x49a   :  { %v2385_v37 = vpop.f32.mrb[7].mxu0  ;;  %v5542_v31 = vpack.c.bf16 %v2383_v1, %v2377_v3 }
 0x49b   :  { %v6059_v26 = vpack.i.bf16 %v2385_v37, %v2383_v1  ;;  %v5540_v43 = vpack.c.bf16 %v2385_v37, %v2379_v48 }
 0x49d   :  { %6055 = vrot.lane.b32.xlu1 %v6039_v15, %s6347_s14  ;;  %6060 = vrot.lane.b32.xlu0 %v6059_v26, %s6346_s1 }
 0x49e   :  { %5541 = vmatprep.subr.bf16.mxu1 %v5540_v43 }
 0x49f   :  { %5543 = vmatpush1.bf16.msra.mxu1 %v5542_v31 }
 0x4a1   :  { %6070 = vrot.lane.b32.xlu1 %v6049_v19, %s6347_s14  ;;  %6065 = vrot.lane.b32.xlu0 %v6044_v20, %s6347_s14 }
 0x4a5   :  { %6075 = vrot.lane.b32.xlu1 %v6039_v15, %s6354_s2  ;;  %6080 = vrot.lane.b32.xlu0 %v6059_v26, %s6347_s14 }
 0x4a9   :  { %6090 = vrot.lane.b32.xlu1 %v6049_v19, %s6354_s2  ;;  %6085 = vrot.lane.b32.xlu0 %v6044_v20, %s6354_s2 }
 0x4ad   :  { %6095 = vrot.lane.b32.xlu1 %v6039_v15, %s6355_s27  ;;  %6100 = vrot.lane.b32.xlu0 %v6059_v26, %s6354_s2 }
 0x4b1   :  { %6110 = vrot.lane.b32.xlu1 %v6049_v19, %s6355_s27  ;;  %6105 = vrot.lane.b32.xlu0 %v6044_v20, %s6355_s27 }
 0x4b5   :  { %6115 = vrot.lane.b32.xlu1 %v6039_v15, %s6356_s28  ;;  %6120 = vrot.lane.b32.xlu0 %v6059_v26, %s6355_s27 }
 0x4b9   :  { %6130 = vrot.lane.b32.xlu1 %v6049_v19, %s6356_s28  ;;  %6125 = vrot.lane.b32.xlu0 %v6044_v20, %s6356_s28 }
 0x4bd   :  { %6135 = vrot.lane.b32.xlu1 %v6039_v15, %s6350_s17  ;;  %6140 = vrot.lane.b32.xlu0 %v6059_v26, %s6356_s28 }
 0x4c1   :  { %6150 = vrot.lane.b32.xlu1 %v6049_v19, %s6350_s17  ;;  %6145 = vrot.lane.b32.xlu0 %v6044_v20, %s6350_s17 }
 0x4c5   :  { %6155 = vrot.lane.b32.xlu1 %v6039_v15, %s6357_s29  ;;  %6160 = vrot.lane.b32.xlu0 %v6059_v26, %s6350_s17 }
 0x4c9   :  { %6170 = vrot.lane.b32.xlu1 %v6049_v19, %s6357_s29  ;;  %6165 = vrot.lane.b32.xlu0 %v6044_v20, %s6357_s29 }
 0x4cd   :  { %6180 = vrot.lane.b32.xlu1 %v6039_v15, %s6358_s12  ;;  %6175 = vrot.lane.b32.xlu0 %v6059_v26, %s6357_s29 }
 0x4d1   :  { %6190 = vrot.lane.b32.xlu1 %v6049_v19, %s6358_s12  ;;  %6185 = vrot.lane.b32.xlu0 %v6044_v20, %s6358_s12 }
 0x4d5   :  { %2659 = vperm.xlu1 %5953, %v2649_v11   ;;  %6195 = vrot.lane.b32.xlu0 %v6059_v26, %s6358_s12 }
 0x4d9   :  { %2669 = vperm.xlu1 %5953, %v2651_v17   ;;  %2664 = vperm.xlu0 %5950, %v2650_v0  }
 0x4dd   :  { %2679 = vperm.xlu1 %5953, %v2653_v60   ;;  %2674 = vperm.xlu0 %5950, %v2652_v6  }
 0x4e1   :  { %2689 = vperm.xlu1 %5953, %v2655_v27   ;;  %2684 = vperm.xlu0 %5950, %v2654_v32  }
 0x4e5   :  { %2694 = vperm.xlu0 %5950, %v2656_v51  }
 0x503   :  { %v6041_v12 = vpop.permute.xlu1 %6040 }
 0x504   :  { %v6043_v42 = vunpack.i.h.bf16 %v6041_v12  ;;  %v6042_v18 = vunpack.i.l.bf16 %v6041_v12 }
 0x506   :  { %v2412_v40 = vsel %vm258_vm0, %v6042_v18, %v6043_v42 }
 0x507   :  { %v6046_v5 = vpop.permute.xlu0 %6045 }
 0x508   :  { %v6048_v9 = vunpack.i.h.bf16 %v6046_v5  ;;  %v6047_v33 = vunpack.i.l.bf16 %v6046_v5 }
 0x50a   :  { %v5544_v7 = vpack.c.bf16 %v6048_v9, %v6043_v42  ;;  %v2413_v28 = vsel %vm258_vm0, %v6047_v33, %v6048_v9 }
 0x50b   :  { %v6051_v34 = vpop.permute.xlu1 %6050  ;;  %v5546_v50 = vpack.c.bf16 %v2413_v28, %v2412_v40 }
 0x50c   :  { %5545 = vmatprep.subr.bf16.mxu1 %v5544_v7  ;;  %v6053_v53 = vunpack.i.h.bf16 %v6051_v34  ;;  %v6052_v23 = vunpack.i.l.bf16 %v6051_v34 }
 0x50d   :  { %5547 = vmatpush1.bf16.msra.mxu1 %v5546_v50 }
 0x50e   :  { %v2414_v29 = vsel %vm258_vm0, %v6052_v23, %v6053_v53 }
 0x50f   :  { %v6056_v38 = vpop.permute.xlu1 %6055  ;;  %v6061_v24 = vpop.permute.xlu0 %6060 }
 0x510   :  { %v6063_v47 = vunpack.i.h.bf16 %v6061_v24  ;;  %v6062_v4 = vunpack.i.l.bf16 %v6061_v24  ;;  %v6058_v35 = vunpack.i.h.bf16 %v6056_v38  ;;  %v6057_v25 = vunpack.i.l.bf16 %v6056_v38 }
 0x512   :  { %v5548_v2 = vpack.c.bf16 %v6063_v47, %v6053_v53  ;;  %v2415_v21 = vsel %vm258_vm0, %v6062_v4, %v6063_v47  ;;  %v2440_v54 = vsel %vm439_vm1, %v6057_v25, %v6058_v35 }
 0x513   :  { %v6071_v46 = vpop.permute.xlu1 %6070  ;;  %v6066_v10 = vpop.permute.xlu0 %6065  ;;  %v5550_v55 = vpack.c.bf16 %v2415_v21, %v2414_v29 }
 0x514   :  { %v6068_v61 = vunpack.i.h.bf16 %v6066_v10  ;;  %v6067_v8 = vunpack.i.l.bf16 %v6066_v10  ;;  %5549 = vmatprep.subr.bf16.mxu1 %v5548_v2  ;;  %v6073_v16 = vunpack.i.h.bf16 %v6071_v46  ;;  %v6072_v49 = vunpack.i.l.bf16 %v6071_v46 }
 0x515   :  { %5551 = vmatpush1.bf16.msra.mxu1 %v5550_v55 }
 0x516   :  { %v5552_v44 = vpack.c.bf16 %v6068_v61, %v6058_v35  ;;  %v2441_v63 = vsel %vm439_vm1, %v6067_v8, %v6068_v61  ;;  %v2442_v36 = vsel %vm439_vm1, %v6072_v49, %v6073_v16 }
 0x517   :  { %v6076_v39 = vpop.permute.xlu1 %6075  ;;  %v6081_v58 = vpop.permute.xlu0 %6080  ;;  %v5554_v56 = vpack.c.bf16 %v2441_v63, %v2440_v54 }
 0x518   :  { %v6083_v30 = vunpack.i.h.bf16 %v6081_v58  ;;  %v6082_v14 = vunpack.i.l.bf16 %v6081_v58  ;;  %5553 = vmatprep.subr.bf16.mxu1 %v5552_v44  ;;  %v6078_v57 = vunpack.i.h.bf16 %v6076_v39  ;;  %v6077_v41 = vunpack.i.l.bf16 %v6076_v39 }
 0x519   :  { %5555 = vmatpush1.bf16.msra.mxu1 %v5554_v56 }
 0x51a   :  { %v5556_v22 = vpack.c.bf16 %v6083_v30, %v6073_v16  ;;  %v2443_v15 = vsel %vm439_vm1, %v6082_v14, %v6083_v30  ;;  %v2469_v3 = vsel %vm2468_vm9, %v6077_v41, %v6078_v57  ;;  %vm6361_vm1 = vmmov 0  }
 0x51b   :  { %v6091_v13 = vpop.permute.xlu1 %6090  ;;  %v6086_v45 = vpop.permute.xlu0 %6085  ;;  %v5558_v52 = vpack.c.bf16 %v2443_v15, %v2442_v36 }
 0x51c   :  { %v6088_v20 = vunpack.i.h.bf16 %v6086_v45  ;;  %v6087_v59 = vunpack.i.l.bf16 %v6086_v45  ;;  %5557 = vmatprep.subr.bf16.mxu1 %v5556_v22  ;;  %v6093_v48 = vunpack.i.h.bf16 %v6091_v13  ;;  %v6092_v19 = vunpack.i.l.bf16 %v6091_v13 }
 0x51d   :  { %5559 = vmatpush1.bf16.msra.mxu1 %v5558_v52 }
 0x51e   :  { %v5560_v1 = vpack.c.bf16 %v6088_v20, %v6078_v57  ;;  %v2470_v37 = vsel %vm2468_vm9, %v6087_v59, %v6088_v20  ;;  %v2471_v6 = vsel %vm2468_vm9, %v6092_v19, %v6093_v48 }
 0x51f   :  { %v6096_v31 = vpop.permute.xlu1 %6095  ;;  %v6101_v26 = vpop.permute.xlu0 %6100  ;;  %v5562_v43 = vpack.c.bf16 %v2470_v37, %v2469_v3 }
 0x520   :  { %v6103_v62 = vunpack.i.h.bf16 %v6101_v26  ;;  %v6102_v11 = vunpack.i.l.bf16 %v6101_v26  ;;  %5561 = vmatprep.subr.bf16.mxu1 %v5560_v1  ;;  %v6098_v17 = vunpack.i.h.bf16 %v6096_v31  ;;  %v6097_v0 = vunpack.i.l.bf16 %v6096_v31 }
 0x521   :  { %5563 = vmatpush1.bf16.msra.mxu1 %v5562_v43 }
 0x522   :  { %v5564_v60 = vpack.c.bf16 %v6103_v62, %v6093_v48  ;;  %v2472_v27 = vsel %vm2468_vm9, %v6102_v11, %v6103_v62  ;;  %v2498_v5 = vsel %vm2497_vm10, %v6097_v0, %v6098_v17 }
 0x523   :  { %v6111_v32 = vpop.permute.xlu1 %6110  ;;  %v6106_v51 = vpop.permute.xlu0 %6105  ;;  %v5566_v12 = vpack.c.bf16 %v2472_v27, %v2471_v6 }
 0x524   :  { %v6108_v42 = vunpack.i.h.bf16 %v6106_v51  ;;  %v6107_v18 = vunpack.i.l.bf16 %v6106_v51  ;;  %5565 = vmatprep.subr.bf16.mxu1 %v5564_v60  ;;  %v6113_v9 = vunpack.i.h.bf16 %v6111_v32  ;;  %v6112_v33 = vunpack.i.l.bf16 %v6111_v32 }
 0x525   :  { %5567 = vmatpush1.bf16.msra.mxu1 %v5566_v12 }
 0x526   :  { %v5568_v7 = vpack.c.bf16 %v6108_v42, %v6098_v17  ;;  %v2499_v40 = vsel %vm2497_vm10, %v6107_v18, %v6108_v42  ;;  %v2500_v4 = vsel %vm2497_vm10, %v6112_v33, %v6113_v9 }
 0x527   :  { %v6116_v28 = vpop.permute.xlu1 %6115  ;;  %v6121_v34 = vpop.permute.xlu0 %6120  ;;  %v5570_v50 = vpack.c.bf16 %v2499_v40, %v2498_v5 }
 0x528   :  { %v6123_v53 = vunpack.i.h.bf16 %v6121_v34  ;;  %v6122_v23 = vunpack.i.l.bf16 %v6121_v34  ;;  %5569 = vmatprep.subr.bf16.mxu1 %v5568_v7  ;;  %v6118_v38 = vunpack.i.h.bf16 %v6116_v28  ;;  %v6117_v24 = vunpack.i.l.bf16 %v6116_v28 }
 0x529   :  { %5571 = vmatpush1.bf16.msra.mxu1 %v5570_v50 }
 0x52a   :  { %v5572_v47 = vpack.c.bf16 %v6123_v53, %v6113_v9  ;;  %v2501_v35 = vsel %vm2497_vm10, %v6122_v23, %v6123_v53  ;;  %v2527_v10 = vsel %vm2526_vm11, %v6117_v24, %v6118_v38 }
 0x52b   :  { %v6131_v25 = vpop.permute.xlu1 %6130  ;;  %v6126_v2 = vpop.permute.xlu0 %6125  ;;  %v5574_v29 = vpack.c.bf16 %v2501_v35, %v2500_v4 }
 0x52c   :  { %v6128_v21 = vunpack.i.h.bf16 %v6126_v2  ;;  %v6127_v46 = vunpack.i.l.bf16 %v6126_v2  ;;  %5573 = vmatprep.subr.bf16.mxu1 %v5572_v47  ;;  %v6133_v55 = vunpack.i.h.bf16 %v6131_v25  ;;  %v6132_v61 = vunpack.i.l.bf16 %v6131_v25 }
 0x52d   :  { %5575 = vmatpush1.bf16.msra.mxu1 %v5574_v29  ;;  %v2625_v29 = vld [vmem:[%s9157_s4] sm:$0xff] }
 0x52e   :  { %v5576_v8 = vpack.c.bf16 %v6128_v21, %v6118_v38  ;;  %v2528_v54 = vsel %vm2526_vm11, %v6127_v46, %v6128_v21  ;;  %v2529_v14 = vsel %vm2526_vm11, %v6132_v61, %v6133_v55  ;;  %v2629_v61 = vld [vmem:[%s9157_s4 + $0x20] sm:$0xff] }
 0x52f   :  { %v6136_v16 = vpop.permute.xlu1 %6135  ;;  %v6141_v49 = vpop.permute.xlu0 %6140  ;;  %v5578_v44 = vpack.c.bf16 %v2528_v54, %v2527_v10 }
 0x530   :  { %v6143_v63 = vunpack.i.h.bf16 %v6141_v49  ;;  %v6142_v39 = vunpack.i.l.bf16 %v6141_v49  ;;  %5577 = vmatprep.subr.bf16.mxu1 %v5576_v8  ;;  %v6138_v58 = vunpack.i.h.bf16 %v6136_v16  ;;  %v6137_v56 = vunpack.i.l.bf16 %v6136_v16 }
 0x531   :  { %5579 = vmatpush1.bf16.msra.mxu1 %v5578_v44  ;;  %v2628_v44 = vld [vmem:[%s9157_s4 + $0x18] sm:$0xff] }
 0x532   :  { %v5580_v30 = vpack.c.bf16 %v6143_v63, %v6133_v55  ;;  %v2530_v57 = vsel %vm2526_vm11, %v6142_v39, %v6143_v63  ;;  %v2555_v45 = vsel %vm982_vm4, %v6137_v56, %v6138_v58  ;;  %v2632_v56 = vld [vmem:[%s9157_s4 + $0x38] sm:$0xff] }
 0x533   :  { %v6151_v41 = vpop.permute.xlu1 %6150  ;;  %v6146_v22 = vpop.permute.xlu0 %6145  ;;  %v5582_v36 = vpack.c.bf16 %v2530_v57, %v2529_v14  ;;  %v2631_v14 = vld [vmem:[%s9157_s4 + $0x30] sm:$0xff] }
 0x534   :  { %v6148_v15 = vunpack.i.h.bf16 %v6146_v22  ;;  %v6147_v13 = vunpack.i.l.bf16 %v6146_v22  ;;  %5581 = vmatprep.subr.bf16.mxu1 %v5580_v30  ;;  %v6153_v52 = vunpack.i.h.bf16 %v6151_v41  ;;  %v6152_v20 = vunpack.i.l.bf16 %v6151_v41  ;;  %v2635_v57 = vld [vmem:[%s9157_s4 + $0x50] sm:$0xff]  ;;  %v2634_v41 = vld [vmem:[%s9157_s4 + $0x48] sm:$0xff] }
 0x535   :  { %5583 = vmatpush1.bf16.msra.mxu1 %v5582_v36  ;;  %v2638_v22 = vld [vmem:[%s9157_s4 + $0x68] sm:$0xff]  ;;  %v2637_v36 = vld [vmem:[%s9157_s4 + $0x60] sm:$0xff] }
 0x536   :  { %v5584_v59 = vpack.c.bf16 %v6148_v15, %v6138_v58  ;;  %v2556_v3 = vsel %vm982_vm4, %v6147_v13, %v6148_v15  ;;  %v2557_v11 = vsel %vm982_vm4, %v6152_v20, %v6153_v52  ;;  %v2641_v15 = vld [vmem:[%s9157_s4 + $0x80] sm:$0xff]  ;;  %v2640_v13 = vld [vmem:[%s9157_s4 + $0x78] sm:$0xff]  ;;  %v2647_v20 = vld [vmem:[%s9157_s4 + $0xb0] sm:$0xff] }
 0x537   :  { %v6156_v48 = vpop.permute.xlu1 %6155  ;;  %v6161_v19 = vpop.permute.xlu0 %6160  ;;  %v5586_v1 = vpack.c.bf16 %v2556_v3, %v2555_v45  ;;  %v2644_v45 = vld [vmem:[%s9157_s4 + $0x98] sm:$0xff]  ;;  %v6359_v3 = vmov 0.0  }
 0x538   :  { %v6163_v37 = vunpack.i.h.bf16 %v6161_v19  ;;  %v6162_v31 = vunpack.i.l.bf16 %v6161_v19  ;;  %5585 = vmatprep.subr.bf16.mxu1 %v5584_v59  ;;  %v6158_v26 = vunpack.i.h.bf16 %v6156_v48  ;;  %v6157_v43 = vunpack.i.l.bf16 %v6156_v48  ;;  %v2646_v59 = vld [vmem:[%s9157_s4 + $0xa8] sm:$0xff]  ;;  %v2627_v48 = vld [vmem:[%s9157_s4 + $0x10] sm:$0xff]  ;;  %5091 = vmatprep.mubr.msk.f32.mxu0 %vm6361_vm1, %v6359_v3 }
 0x539   :  { %5587 = vmatpush1.bf16.msra.mxu1 %v5586_v1  ;;  %v2630_v19 = vld [vmem:[%s9157_s4 + $0x28] sm:$0xff]  ;;  %v2633_v1 = vld [vmem:[%s9157_s4 + $0x40] sm:$0xff] }
 0x53a   :  { %v5588_v62 = vpack.c.bf16 %v6163_v37, %v6153_v52  ;;  %v2558_v17 = vsel %vm982_vm4, %v6162_v31, %v6163_v37  ;;  %v2584_v51 = vsel %vm2583_vm12, %v6157_v43, %v6158_v26  ;;  %v2643_v52 = vld [vmem:[%s9157_s4 + $0x90] sm:$0xff]  ;;  %v2636_v37 = vld [vmem:[%s9157_s4 + $0x58] sm:$0xff]  ;;  %v2645_v43 = vld [vmem:[%s9157_s4 + $0xa0] sm:$0xff] }
 0x53b   :  { %v6171_v0 = vpop.permute.xlu1 %6170  ;;  %v6166_v60 = vpop.permute.xlu0 %6165  ;;  %v5590_v6 = vpack.c.bf16 %v2558_v17, %v2557_v11  ;;  %v2639_v31 = vld [vmem:[%s9157_s4 + $0x70] sm:$0xff] }
 0x53c   :  { %v6168_v27 = vunpack.i.h.bf16 %v6166_v60  ;;  %v6167_v32 = vunpack.i.l.bf16 %v6166_v60  ;;  %5589 = vmatprep.subr.bf16.mxu1 %v5588_v62  ;;  %v6173_v12 = vunpack.i.h.bf16 %v6171_v0  ;;  %v6172_v42 = vunpack.i.l.bf16 %v6171_v0  ;;  %v2648_v62 = vld [vmem:[%s9157_s4 + $0xb8] sm:$0xff] }
 0x53d   :  { %5591 = vmatpush1.bf16.msra.mxu1 %v5590_v6 }
 0x53e   :  { %v5592_v18 = vpack.c.bf16 %v6168_v27, %v6158_v26  ;;  %v2585_v5 = vsel %vm2583_vm12, %v6167_v32, %v6168_v27  ;;  %v2586_v23 = vsel %vm2583_vm12, %v6172_v42, %v6173_v12  ;;  %v2642_v26 = vld [vmem:[%s9157_s4 + $0x88] sm:$0xff] }
 0x53f   :  { %v6181_v9 = vpop.permute.xlu1 %6180  ;;  %v6176_v33 = vpop.permute.xlu0 %6175  ;;  %v5594_v7 = vpack.c.bf16 %v2585_v5, %v2584_v51 }
 0x540   :  { %v6178_v40 = vunpack.i.h.bf16 %v6176_v33  ;;  %v6177_v28 = vunpack.i.l.bf16 %v6176_v33  ;;  %5593 = vmatprep.subr.bf16.mxu1 %v5592_v18  ;;  %v6183_v34 = vunpack.i.h.bf16 %v6181_v9  ;;  %v6182_v50 = vunpack.i.l.bf16 %v6181_v9 }
 0x541   :  { %5595 = vmatpush1.bf16.msra.mxu1 %v5594_v7 }
 0x542   :  { %v5596_v53 = vpack.c.bf16 %v6178_v40, %v6173_v12  ;;  %v2587_v38 = vsel %vm2583_vm12, %v6177_v28, %v6178_v40  ;;  %v2613_v2 = vsel %vm2612_vm13, %v6182_v50, %v6183_v34 }
 0x543   :  { %v6191_v24 = vpop.permute.xlu1 %6190  ;;  %v6186_v47 = vpop.permute.xlu0 %6185  ;;  %v5598_v4 = vpack.c.bf16 %v2587_v38, %v2586_v23 }
 0x544   :  { %v6188_v35 = vunpack.i.h.bf16 %v6186_v47  ;;  %v6187_v25 = vunpack.i.l.bf16 %v6186_v47  ;;  %5597 = vmatprep.subr.bf16.mxu1 %v5596_v53  ;;  %v6193_v21 = vunpack.i.h.bf16 %v6191_v24  ;;  %v6192_v46 = vunpack.i.l.bf16 %v6191_v24 }
 0x545   :  { %5599 = vmatpush1.bf16.msra.mxu1 %v5598_v4 }
 0x546   :  { %v5600_v10 = vpack.c.bf16 %v6188_v35, %v6183_v34  ;;  %v2614_v55 = vsel %vm2612_vm13, %v6187_v25, %v6188_v35  ;;  %v2615_v63 = vsel %vm2612_vm13, %v6192_v46, %v6193_v21 }
 0x547   :  { %v5602_v8 = vpack.c.bf16 %v2614_v55, %v2613_v2  ;;  %v6196_v54 = vpop.permute.xlu0 %6195 }
 0x548   :  { %v6198_v16 = vunpack.i.h.bf16 %v6196_v54  ;;  %v6197_v49 = vunpack.i.l.bf16 %v6196_v54  ;;  %2787 = vmatmul.mubr.f32.vlgmr.msra.gmra.mrb[0].mxu1 %v2625_v29  ;;  %5601 = vmatprep.subr.bf16.mxu1 %v5600_v10 }
 0x549   :  { %5603 = vmatpush1.bf16.msra.mxu1 %v5602_v8  ;;  %2792 = vmatprep.mubr.f32.mxu1 %v2629_v61 }
 0x54a   :  { %v5604_v39 = vpack.c.bf16 %v6198_v16, %v6193_v21  ;;  %v2616_v58 = vsel %vm2612_vm13, %v6197_v49, %v6198_v16 }
 0x54b   :  { %v5606_v30 = vpack.c.bf16 %v2616_v58, %v2615_v63 }
 0x54c   :  { %2793 = vmatmul.mubr.f32.gmra.mrb[2].mxu1 %v2628_v44  ;;  %5605 = vmatprep.subr.bf16.mxu1 %v5604_v39 }
 0x54d   :  { %5607 = vmatpush1.bf16.msra.mxu1 %v5606_v30  ;;  %2798 = vmatprep.mubr.f32.mxu1 %v2632_v56 }
 0x550   :  { %2799 = vmatmul.mubr.f32.gmra.mrb[4].mxu1 %v2631_v14 }
 0x551   :  { %2804 = vmatprep.mubr.f32.mxu1 %v2635_v57 }
 0x554   :  { %2805 = vmatmul.mubr.f32.gmra.mrb[6].mxu1 %v2634_v41  ;;  %v2660_v11 = vpop.permute.xlu1 %2659 }
 0x555   :  { %2810 = vmatprep.mubr.f32.mxu1 %v2638_v22 }
 0x558   :  { %2811 = vmatmul.mubr.f32.gmra.mrb[8].mxu1 %v2637_v36  ;;  %v2665_v32 = vpop.permute.xlu0 %2664  ;;  %v2670_v7 = vpop.permute.xlu1 %2669 }
 0x559   :  { %2816 = vmatprep.mubr.f32.mxu1 %v2641_v15 }
 0x55c   :  { %2817 = vmatmul.mubr.f32.gmra.mrb[10].mxu1 %v2640_v13  ;;  %v2675_v24 = vpop.permute.xlu0 %2674  ;;  %v2680_v46 = vpop.permute.xlu1 %2679 }
 0x55d   :  { %2822 = vmatprep.mubr.f32.mxu1 %v2644_v45 }
 0x560   :  { %2823 = vmatmul.mubr.f32.gmra.mrb[12].mxu1 %v2643_v52  ;;  %v2685_v44 = vpop.permute.xlu0 %2684  ;;  %v2690_v41 = vpop.permute.xlu1 %2689 }
 0x561   :  { %2828 = vmatprep.mubr.f32.mxu1 %v2647_v20 }
 0x564   :  { %2829 = vmatmul.mubr.f32.gmra.mrb[14].mxu1 %v2646_v59  ;;  %v2695_v59 = vpop.permute.xlu0 %2694 }
 0x565   :  { %2899 = vmatprep.mubr.f32.mxu1 %v6359_v3 }
 0x568   :  { %4826 = vmatmul.mubr.msk.f32.vlgmr.msra.gmra.mrb[0].mxu1 %vm2697_vm14, %v2627_v48 }
 0x569   :  { %2905 = vmatprep.mubr.f32.mxu1 %v6359_v3 }
 0x56c   :  { %4827 = vmatmul.mubr.msk.f32.gmra.mrb[2].mxu1 %vm2697_vm14, %v2630_v19 }
 0x56d   :  { %2911 = vmatprep.mubr.f32.mxu1 %v6359_v3 }
 0x570   :  { %4828 = vmatmul.mubr.msk.f32.gmra.mrb[4].mxu1 %vm2697_vm14, %v2633_v1 }
 0x571   :  { %2917 = vmatprep.mubr.f32.mxu1 %v6359_v3 }
 0x574   :  { %4829 = vmatmul.mubr.msk.f32.gmra.mrb[6].mxu1 %vm2697_vm14, %v2636_v37 }
 0x575   :  { %2923 = vmatprep.mubr.f32.mxu1 %v6359_v3 }
 0x578   :  { %4830 = vmatmul.mubr.msk.f32.gmra.mrb[8].mxu1 %vm2697_vm14, %v2639_v31 }
 0x579   :  { %2929 = vmatprep.mubr.f32.mxu1 %v6359_v3 }
 0x57c   :  { %4831 = vmatmul.mubr.msk.f32.gmra.mrb[10].mxu1 %vm2697_vm14, %v2642_v26 }
 0x57d   :  { %2935 = vmatprep.mubr.f32.mxu1 %v6359_v3 }
 0x580   :  { %4832 = vmatmul.mubr.msk.f32.gmra.mrb[12].mxu1 %vm2697_vm14, %v2645_v43 }
 0x581   :  { %2941 = vmatprep.mubr.f32.mxu1 %v6359_v3 }
 0x584   :  { %4833 = vmatmul.mubr.msk.f32.gmra.mrb[14].mxu1 %vm2697_vm14, %v2648_v62 }
 0x63b   :  { %v2901_v17 = vpop.f32.mrb[0].mxu1 }
 0x63c   :  { %v8611_v0 = vadd.f32 %v2901_v17, %v2660_v11  ;;  %v2903_v60 = vpop.f32.mrb[1].mxu1 }
 0x63d   :  { %v8613_v6 = vadd.f32 %v2903_v60, %v2660_v11 }
 0x63e   :  { %v2948_v27 = vmax.f32 %v8611_v0, 0.0 }
 0x63f   :  { %v2949_v51 = vmax.f32 %v8613_v6, 0.0  ;;  %v2907_v12 = vpop.f32.mrb[2].mxu1 }
 0x640   :  { %v8617_v42 = vadd.f32 %v2907_v12, %v2665_v32  ;;  %v2909_v18 = vpop.f32.mrb[3].mxu1 }
 0x641   :  { %v6199_v5 = vpack.i.bf16 %v2949_v51, %v2948_v27  ;;  %v8623_v9 = vadd.f32 %v2909_v18, %v2665_v32 }
 0x642   :  { %v2950_v33 = vmax.f32 %v8617_v42, 0.0 }
 0x643   :  { %v2951_v40 = vmax.f32 %v8623_v9, 0.0  ;;  %v2913_v28 = vpop.f32.mrb[4].mxu1  ;;  %6200 = vrot.lane.b32.xlu1 %v6199_v5, %s6346_s1 }
 0x644   :  { %v8628_v34 = vadd.f32 %v2913_v28, %v2670_v7  ;;  %v2915_v50 = vpop.f32.mrb[5].mxu1 }
 0x645   :  { %v6204_v53 = vpack.i.bf16 %v2951_v40, %v2950_v33  ;;  %v8634_v23 = vadd.f32 %v2915_v50, %v2670_v7 }
 0x646   :  { %v2952_v38 = vmax.f32 %v8628_v34, 0.0 }
 0x647   :  { %v2953_v47 = vmax.f32 %v8634_v23, 0.0  ;;  %v2919_v4 = vpop.f32.mrb[6].mxu1  ;;  %6205 = vrot.lane.b32.xlu0 %v6204_v53, %s6346_s1 }
 0x648   :  { %v8639_v35 = vadd.f32 %v2919_v4, %v2675_v24  ;;  %v2921_v25 = vpop.f32.mrb[7].mxu1 }
 0x649   :  { %v6209_v2 = vpack.i.bf16 %v2953_v47, %v2952_v38  ;;  %v8645_v29 = vadd.f32 %v2921_v25, %v2675_v24 }
 0x64a   :  { %v2954_v21 = vmax.f32 %v8639_v35, 0.0 }
 0x64b   :  { %v2955_v10 = vmax.f32 %v8645_v29, 0.0  ;;  %v2925_v55 = vpop.f32.mrb[8].mxu1  ;;  %6210 = vrot.lane.b32.xlu1 %v6209_v2, %s6346_s1 }
 0x64c   :  { %v8650_v61 = vadd.f32 %v2925_v55, %v2680_v46  ;;  %v2927_v8 = vpop.f32.mrb[9].mxu1 }
 0x64d   :  { %v6214_v54 = vpack.i.bf16 %v2955_v10, %v2954_v21  ;;  %v8656_v16 = vadd.f32 %v2927_v8, %v2680_v46 }
 0x64e   :  { %v2956_v49 = vmax.f32 %v8650_v61, 0.0 }
 0x64f   :  { %v2957_v63 = vmax.f32 %v8656_v16, 0.0  ;;  %v2931_v39 = vpop.f32.mrb[10].mxu1  ;;  %6215 = vrot.lane.b32.xlu0 %v6214_v54, %s6346_s1 }
 0x650   :  { %v8661_v58 = vadd.f32 %v2931_v39, %v2685_v44  ;;  %v2933_v56 = vpop.f32.mrb[11].mxu1 }
 0x651   :  { %v6219_v30 = vpack.i.bf16 %v2957_v63, %v2956_v49  ;;  %v8667_v14 = vadd.f32 %v2933_v56, %v2685_v44 }
 0x652   :  { %v2958_v57 = vmax.f32 %v8661_v58, 0.0 }
 0x653   :  { %v2959_v22 = vmax.f32 %v8667_v14, 0.0  ;;  %v2937_v36 = vpop.f32.mrb[12].mxu1  ;;  %6220 = vrot.lane.b32.xlu1 %v6219_v30, %s6346_s1 }
 0x654   :  { %v8672_v15 = vadd.f32 %v2937_v36, %v2690_v41  ;;  %v2939_v13 = vpop.f32.mrb[13].mxu1 }
 0x655   :  { %v6224_v45 = vpack.i.bf16 %v2959_v22, %v2958_v57  ;;  %v8678_v52 = vadd.f32 %v2939_v13, %v2690_v41 }
 0x656   :  { %v2960_v20 = vmax.f32 %v8672_v15, 0.0 }
 0x657   :  { %v2961_v48 = vmax.f32 %v8678_v52, 0.0  ;;  %v2943_v19 = vpop.f32.mrb[14].mxu1  ;;  %6225 = vrot.lane.b32.xlu0 %v6224_v45, %s6346_s1 }
 0x658   :  { %v8683_v1 = vadd.f32 %v2943_v19, %v2695_v59  ;;  %v2945_v37 = vpop.f32.mrb[15].mxu1 }
 0x659   :  { %v6229_v31 = vpack.i.bf16 %v2961_v48, %v2960_v20  ;;  %v8687_v26 = vadd.f32 %v2945_v37, %v2695_v59 }
 0x65a   :  { %v2962_v43 = vmax.f32 %v8683_v1, 0.0 }
 0x65b   :  { %v2963_v62 = vmax.f32 %v8687_v26, 0.0  ;;  %6230 = vrot.lane.b32.xlu1 %v6229_v31, %s6346_s1  ;;  %v6360_v31 = vmov 0.0|0.0  }
 0x65c   :  { %5652 = vmatprep.subr.bf16.mxu0 %v6360_v31 }
 0x65d   :  { %v6234_v11 = vpack.i.bf16 %v2963_v62, %v2962_v43 }
 0x65f   :  { %6235 = vrot.lane.b32.xlu0 %v6234_v11, %s6346_s1 }
 0x6b5   :  { %v6201_v17 = vpop.permute.xlu1 %6200 }
 0x6b6   :  { %v6203_v60 = vunpack.i.h.bf16 %v6201_v17  ;;  %v6202_v32 = vunpack.i.l.bf16 %v6201_v17 }
 0x6b8   :  { %v8699_v12 = vmax.f32 %v2949_v51, %v6203_v60  ;;  %v3012_v18 = vsel %vm258_vm0, %v6202_v32, %v6203_v60 }
 0x6b9   :  { %v8704_v5 = vmax.f32 %v2948_v27, %v3012_v18  ;;  %v6206_v7 = vpop.permute.xlu0 %6205 }
 0x6ba   :  { %v6208_v28 = vunpack.i.h.bf16 %v6206_v7  ;;  %v6207_v50 = vunpack.i.l.bf16 %v6206_v7 }
 0x6bb   :  { %v6239_v53 = vpack.i.bf16 %v8699_v12, %v8704_v5 }
 0x6bc   :  { %v8710_v24 = vmax.f32 %v2951_v40, %v6208_v28  ;;  %v3013_v6 = vsel %vm258_vm0, %v6207_v50, %v6208_v28 }
 0x6bd   :  { %v8715_v51 = vmax.f32 %v2950_v33, %v3013_v6  ;;  %v6211_v4 = vpop.permute.xlu1 %6210  ;;  %6240 = vrot.lane.b32.xlu1 %v6239_v53, %s6354_s2 }
 0x6be   :  { %v6213_v0 = vunpack.i.h.bf16 %v6211_v4  ;;  %v6212_v27 = vunpack.i.l.bf16 %v6211_v4 }
 0x6bf   :  { %v6244_v25 = vpack.i.bf16 %v8710_v24, %v8715_v51 }
 0x6c0   :  { %v8722_v2 = vmax.f32 %v2953_v47, %v6213_v0  ;;  %v3014_v9 = vsel %vm258_vm0, %v6212_v27, %v6213_v0 }
 0x6c1   :  { %v8727_v40 = vmax.f32 %v2952_v38, %v3014_v9  ;;  %v6216_v42 = vpop.permute.xlu0 %6215  ;;  %6245 = vrot.lane.b32.xlu0 %v6244_v25, %s6354_s2 }
 0x6c2   :  { %v6218_v33 = vunpack.i.h.bf16 %v6216_v42  ;;  %v6217_v46 = vunpack.i.l.bf16 %v6216_v42 }
 0x6c3   :  { %v6249_v55 = vpack.i.bf16 %v8722_v2, %v8727_v40 }
 0x6c4   :  { %v8734_v8 = vmax.f32 %v2955_v10, %v6218_v33  ;;  %v3015_v23 = vsel %vm258_vm0, %v6217_v46, %v6218_v33 }
 0x6c5   :  { %v8739_v47 = vmax.f32 %v2954_v21, %v3015_v23  ;;  %v6221_v34 = vpop.permute.xlu1 %6220  ;;  %6250 = vrot.lane.b32.xlu1 %v6249_v55, %s6354_s2 }
 0x6c6   :  { %v6223_v38 = vunpack.i.h.bf16 %v6221_v34  ;;  %v6222_v54 = vunpack.i.l.bf16 %v6221_v34 }
 0x6c7   :  { %v6254_v44 = vpack.i.bf16 %v8734_v8, %v8739_v47 }
 0x6c8   :  { %v8746_v39 = vmax.f32 %v2957_v63, %v6223_v38  ;;  %v3016_v29 = vsel %vm258_vm0, %v6222_v54, %v6223_v38 }
 0x6c9   :  { %v8751_v10 = vmax.f32 %v2956_v49, %v3016_v29  ;;  %v6226_v35 = vpop.permute.xlu0 %6225  ;;  %6255 = vrot.lane.b32.xlu0 %v6254_v44, %s6354_s2 }
 0x6ca   :  { %v6228_v21 = vunpack.i.h.bf16 %v6226_v35  ;;  %v6227_v56 = vunpack.i.l.bf16 %v6226_v35 }
 0x6cb   :  { %v6259_v30 = vpack.i.bf16 %v8746_v39, %v8751_v10 }
 0x6cc   :  { %v8758_v41 = vmax.f32 %v2959_v22, %v6228_v21  ;;  %v3017_v16 = vsel %vm258_vm0, %v6227_v56, %v6228_v21 }
 0x6cd   :  { %v8763_v63 = vmax.f32 %v2958_v57, %v3017_v16  ;;  %v6231_v61 = vpop.permute.xlu1 %6230  ;;  %6260 = vrot.lane.b32.xlu1 %v6259_v30, %s6354_s2 }
 0x6ce   :  { %v6233_v49 = vunpack.i.h.bf16 %v6231_v61  ;;  %v6232_v36 = vunpack.i.l.bf16 %v6231_v61 }
 0x6cf   :  { %v6264_v13 = vpack.i.bf16 %v8758_v41, %v8763_v63 }
 0x6d0   :  { %v8768_v45 = vmax.f32 %v2961_v48, %v6233_v49  ;;  %v3018_v14 = vsel %vm258_vm0, %v6232_v36, %v6233_v49  ;;  %v3141_v48 = vld [vmem:[%s9159_s6 + $0x8] sm:$0xff] }
 0x6d1   :  { %v8773_v22 = vmax.f32 %v2960_v20, %v3018_v14  ;;  %v6236_v52 = vpop.permute.xlu0 %6235  ;;  %6265 = vrot.lane.b32.xlu0 %v6264_v13, %s6354_s2  ;;  %4842 = vmatprep.mubr.msk.f32.mxu1 %vm3172_vm15, %v3141_v48 }
 0x6d2   :  { %v6238_v58 = vunpack.i.h.bf16 %v6236_v52  ;;  %v6237_v57 = vunpack.i.l.bf16 %v6236_v52 }
 0x6d3   :  { %v6269_v59 = vpack.i.bf16 %v8768_v45, %v8773_v22 }
 0x6d4   :  { %v8783_v19 = vmax.f32 %v2963_v62, %v6238_v58  ;;  %v3019_v15 = vsel %vm258_vm0, %v6237_v57, %v6238_v58  ;;  %vm8804_vm0 = vmpackc.low %vm3172_vm15, %vm3172_vm15 }
 0x6d5   :  { %v8789_v20 = vmax.f32 %v2962_v43, %v3019_v15  ;;  %6270 = vrot.lane.b32.xlu1 %v6269_v59, %s6354_s2 }
 0x6d7   :  { %v6274_v37 = vpack.i.bf16 %v8783_v19, %v8789_v20 }
 0x6d9   :  { %6275 = vrot.lane.b32.xlu0 %v6274_v37, %s6354_s2  ;;  %v3398_v37 = vld [vmem:[#allocation4 + $0x40] sm:$0xff] }
 0x72f   :  { %v6241_v26 = vpop.permute.xlu1 %6240 }
 0x730   :  { %v6243_v62 = vunpack.i.h.bf16 %v6241_v26  ;;  %v6242_v11 = vunpack.i.l.bf16 %v6241_v26  ;;  %v3399_v26 = vld [vmem:[#allocation4 + $0x48] sm:$0xff] }
 0x732   :  { %v3100_v60 = vsel %vm2468_vm9, %v6242_v11, %v6243_v62  ;;  %v3125_v43 = vmax.f32 %v8699_v12, %v6243_v62  ;;  %v3401_v62 = vld [vmem:[#allocation4 + $0x58] sm:$0xff]  ;;  %v3142_v11 = vld [vmem:[%s9159_s6 + $0x10] sm:$0xff] }
 0x733   :  { %v6246_v17 = vpop.permute.xlu0 %6245  ;;  %v3124_v28 = vmax.f32 %v8704_v5, %v3100_v60  ;;  %v3145_v60 = vld [vmem:[%s9159_s6 + $0x28] sm:$0xff] }
 0x734   :  { %v6248_v32 = vunpack.i.h.bf16 %v6246_v17  ;;  %v6247_v1 = vunpack.i.l.bf16 %v6246_v17 }
 0x736   :  { %v3127_v18 = vmax.f32 %v8710_v24, %v6248_v32  ;;  %v3101_v7 = vsel %vm2468_vm9, %v6247_v1, %v6248_v32  ;;  %v3402_v32 = vld [vmem:[#allocation4 + $0x60] sm:$0xff]  ;;  %v3403_v1 = vld [vmem:[#allocation4 + $0x68] sm:$0xff] }
 0x737   :  { %v3126_v50 = vmax.f32 %v8715_v51, %v3101_v7  ;;  %v6251_v53 = vpop.permute.xlu1 %6250  ;;  %v3147_v7 = vld [vmem:[%s9159_s6 + $0x38] sm:$0xff] }
 0x738   :  { %v5608_v4 = vpack.c.bf16 %v3127_v18, %v3125_v43  ;;  %v6253_v0 = vunpack.i.h.bf16 %v6251_v53  ;;  %v6252_v27 = vunpack.i.l.bf16 %v6251_v53  ;;  %v3144_v43 = vld [vmem:[%s9159_s6 + $0x20] sm:$0xff]  ;;  %v5635_v18 = vpack.c.bf16 %v3403_v1, %v3402_v32  ;;  %v3146_v53 = vld [vmem:[%s9159_s6 + $0x30] sm:$0xff] }
 0x739   :  { %v5611_v25 = vpack.c.bf16 %v3126_v50, %v3124_v28  ;;  %v3404_v28 = vld [vmem:[#allocation4 + $0x70] sm:$0xff]  ;;  %v3405_v50 = vld [vmem:[#allocation4 + $0x78] sm:$0xff] }
 0x73a   :  { %5610 = vmatprep.subr.msk.bf16.mxu1 %vm8804_vm0, %v5608_v4  ;;  %v3102_v5 = vsel %vm2468_vm9, %v6252_v27, %v6253_v0  ;;  %v3129_v9 = vmax.f32 %v8722_v2, %v6253_v0  ;;  %v5638_v6 = vpack.c.bf16 %v3405_v50, %v3404_v28  ;;  %v3149_v4 = vld [vmem:[%s9159_s6 + $0x48] sm:$0xff]  ;;  %v3148_v0 = vld [vmem:[%s9159_s6 + $0x40] sm:$0xff]  ;;  %v3151_v27 = vld [vmem:[%s9159_s6 + $0x58] sm:$0xff] }
 0x73b   :  { %v6256_v12 = vpop.permute.xlu0 %6255  ;;  %5612 = vmatpush1.bf16.xpose.msra.mxu1 %v5611_v25  ;;  %v3128_v46 = vmax.f32 %v8727_v40, %v3102_v5  ;;  %v3150_v25 = vld [vmem:[%s9159_s6 + $0x50] sm:$0xff]  ;;  %v3152_v5 = vld [vmem:[%s9159_s6 + $0x60] sm:$0xff]  ;;  %v3397_v28 = vld [vmem:[#allocation4 + $0x38] sm:$0xff] }
 0x73c   :  { %v6258_v24 = vunpack.i.h.bf16 %v6256_v12  ;;  %v6257_v51 = vunpack.i.l.bf16 %v6256_v12  ;;  %v3153_v12 = vld [vmem:[%s9159_s6 + $0x68] sm:$0xff]  ;;  %v3721_v50 = vld [vmem:[#allocation4 + $0x120] sm:$0xff] }
 0x73e   :  { %v3131_v42 = vmax.f32 %v8734_v8, %v6258_v24  ;;  %v3103_v33 = vsel %vm2468_vm9, %v6257_v51, %v6258_v24  ;;  %v3155_v24 = vld [vmem:[%s9159_s6 + $0x78] sm:$0xff]  ;;  %v3154_v51 = vld [vmem:[%s9159_s6 + $0x70] sm:$0xff] }
 0x73f   :  { %v3130_v55 = vmax.f32 %v8739_v47, %v3103_v33  ;;  %v6261_v23 = vpop.permute.xlu1 %6260  ;;  %v3159_v33 = vld [vmem:[%s9159_s6 + $0x98] sm:$0xff] }
 0x740   :  { %v5613_v34 = vpack.c.bf16 %v3131_v42, %v3129_v9  ;;  %v6263_v38 = vunpack.i.h.bf16 %v6261_v23  ;;  %v6262_v54 = vunpack.i.l.bf16 %v6261_v23  ;;  %v3157_v9 = vld [vmem:[%s9159_s6 + $0x88] sm:$0xff]  ;;  %v3156_v42 = vld [vmem:[%s9159_s6 + $0x80] sm:$0xff] }
 0x741   :  { %v5616_v44 = vpack.c.bf16 %v3130_v55, %v3128_v46  ;;  %v3158_v46 = vld [vmem:[%s9159_s6 + $0x90] sm:$0xff]  ;;  %v3161_v55 = vld [vmem:[%s9159_s6 + $0xa8] sm:$0xff]  ;;  %v3160_v23 = vld [vmem:[%s9159_s6 + $0xa0] sm:$0xff] }
 0x742   :  { %5615 = vmatprep.subr.msk.bf16.mxu1 %vm8804_vm0, %v5613_v34  ;;  %v3104_v2 = vsel %vm2468_vm9, %v6262_v54, %v6263_v38  ;;  %v3133_v21 = vmax.f32 %v8746_v39, %v6263_v38  ;;  %v3163_v34 = vld [vmem:[%s9159_s6 + $0xb8] sm:$0xff]  ;;  %v3162_v38 = vld [vmem:[%s9159_s6 + $0xb0] sm:$0xff]  ;;  %v3165_v54 = vld [vmem:[%s9159_s6 + $0xc8] sm:$0xff] }
 0x743   :  { %v6266_v29 = vpop.permute.xlu0 %6265  ;;  %5617 = vmatpush1.bf16.xpose.msra.mxu1 %v5616_v44  ;;  %v3132_v56 = vmax.f32 %v8751_v10, %v3104_v2  ;;  %v3164_v44 = vld [vmem:[%s9159_s6 + $0xc0] sm:$0xff]  ;;  %v3166_v2 = vld [vmem:[%s9159_s6 + $0xd0] sm:$0xff] }
 0x744   :  { %v6268_v35 = vunpack.i.h.bf16 %v6266_v29  ;;  %v6267_v8 = vunpack.i.l.bf16 %v6266_v29  ;;  %v3167_v29 = vld [vmem:[%s9159_s6 + $0xd8] sm:$0xff] }
 0x746   :  { %v3135_v40 = vmax.f32 %v8758_v41, %v6268_v35  ;;  %v3105_v47 = vsel %vm2468_vm9, %v6267_v8, %v6268_v35  ;;  %v3169_v35 = vld [vmem:[%s9159_s6 + $0xe8] sm:$0xff]  ;;  %v3168_v8 = vld [vmem:[%s9159_s6 + $0xe0] sm:$0xff] }
 0x747   :  { %v3134_v30 = vmax.f32 %v8763_v63, %v3105_v47  ;;  %v6271_v16 = vpop.permute.xlu1 %6270  ;;  %v3553_v47 = vld [vmem:[#allocation4 + $0x80] sm:$0xff] }
 0x748   :  { %v5618_v61 = vpack.c.bf16 %v3135_v40, %v3133_v21  ;;  %v6273_v49 = vunpack.i.h.bf16 %v6271_v16  ;;  %v6272_v36 = vunpack.i.l.bf16 %v6271_v16  ;;  %v3171_v21 = vld [vmem:[%s9159_s6 + $0xf8] sm:$0xff]  ;;  %v3170_v40 = vld [vmem:[%s9159_s6 + $0xf0] sm:$0xff]  ;;  %v3555_v16 = vld [vmem:[#allocation4 + $0x90] sm:$0xff] }
 0x749   :  { %v5621_v13 = vpack.c.bf16 %v3134_v30, %v3132_v56  ;;  %v3554_v56 = vld [vmem:[#allocation4 + $0x88] sm:$0xff] }
 0x74a   :  { %5620 = vmatprep.subr.msk.bf16.mxu1 %vm8804_vm0, %v5618_v61  ;;  %v3106_v39 = vsel %vm2468_vm9, %v6272_v36, %v6273_v49  ;;  %v3137_v58 = vmax.f32 %v8768_v45, %v6273_v49  ;;  %v3140_v45 = vld [vmem:[%s9159_s6] sm:$0xff]  ;;  %v5653_v30 = vpack.c.bf16 %v3554_v56, %v3553_v47  ;;  %v3556_v61 = vld [vmem:[#allocation4 + $0x98] sm:$0xff]  ;;  %v3557_v36 = vld [vmem:[#allocation4 + $0xa0] sm:$0xff] }
 0x74b   :  { %v6276_v14 = vpop.permute.xlu0 %6275  ;;  %5622 = vmatpush1.bf16.xpose.msra.mxu1 %v5621_v13  ;;  %v3136_v57 = vmax.f32 %v8773_v22, %v3106_v39  ;;  %v3143_v22 = vld [vmem:[%s9159_s6 + $0x18] sm:$0xff]  ;;  %v5656_v49 = vpack.c.bf16 %v3556_v61, %v3555_v16  ;;  %v3559_v39 = vld [vmem:[#allocation4 + $0xb0] sm:$0xff]  ;;  %v3642_v16 = vld [vmem:[#allocation4 + $0xf8] sm:$0xff] }
 0x74c   :  { %v6278_v52 = vunpack.i.h.bf16 %v6276_v14  ;;  %v6277_v41 = vunpack.i.l.bf16 %v6276_v14  ;;  %5654 = vmatpush3.bf16.msra.mxu0 %v5653_v30  ;;  %v3558_v13 = vld [vmem:[#allocation4 + $0xa8] sm:$0xff]  ;;  %v3641_v30 = vld [vmem:[#allocation4 + $0xf0] sm:$0xff] }
 0x74d   :  { %5655 = vmatprep.subr.bf16.mxu0 %v6360_v31  ;;  %v5659_v14 = vpack.c.bf16 %v3558_v13, %v3557_v36  ;;  %v3886_v36 = vld [vmem:[#allocation4 + $0x1a8] sm:$0xff] }
 0x74e   :  { %v3139_v10 = vmax.f32 %v8783_v19, %v6278_v52  ;;  %v3107_v63 = vsel %vm2468_vm9, %v6277_v41, %v6278_v52  ;;  %v5629_v19 = vpack.c.bf16 %v3399_v26, %v3398_v37  ;;  %v3560_v52 = vld [vmem:[#allocation4 + $0xb8] sm:$0xff]  ;;  %v3717_v37 = vld [vmem:[#allocation4 + $0x100] sm:$0xff]  ;;  %v3718_v26 = vld [vmem:[#allocation4 + $0x108] sm:$0xff] }
 0x74f   :  { %v3138_v59 = vmax.f32 %v8789_v20, %v3107_v63  ;;  %v3400_v20 = vld [vmem:[#allocation4 + $0x50] sm:$0xff]  ;;  %v5662_v41 = vpack.c.bf16 %v3560_v52, %v3559_v39  ;;  %v5674_v39 = vpack.c.bf16 %v3642_v16, %v3641_v30  ;;  %v3799_v52 = vld [vmem:[#allocation4 + $0x140] sm:$0xff] }
 0x750   :  { %v5623_v48 = vpack.c.bf16 %v3139_v10, %v3137_v58  ;;  %v5632_v17 = vpack.c.bf16 %v3401_v62, %v3400_v20  ;;  %5657 = vmatpush3.bf16.msra.mxu0 %v5656_v49  ;;  %v3390_v58 = vld [vmem:[#allocation4] sm:$0xff]  ;;  %v3391_v10 = vld [vmem:[#allocation4 + $0x8] sm:$0xff]  ;;  %v5677_v62 = vpack.c.bf16 %v3718_v26, %v3717_v37  ;;  %v3802_v37 = vld [vmem:[#allocation4 + $0x158] sm:$0xff] }
 0x751   :  { %v5626_v15 = vpack.c.bf16 %v3138_v59, %v3136_v57  ;;  %5658 = vmatprep.subr.bf16.mxu0 %v6360_v31  ;;  %v5641_v59 = vpack.c.bf16 %v3391_v10, %v3390_v58  ;;  %v3394_v20 = vld [vmem:[#allocation4 + $0x20] sm:$0xff]  ;;  %v3887_v10 = vld [vmem:[#allocation4 + $0x1b0] sm:$0xff] }
 0x752   :  { %5625 = vmatprep.subr.msk.bf16.mxu1 %vm8804_vm0, %v5623_v48  ;;  %v3392_v48 = vld [vmem:[#allocation4 + $0x10] sm:$0xff]  ;;  %v3885_v49 = vld [vmem:[#allocation4 + $0x1a0] sm:$0xff] }
 0x753   :  { %5627 = vmatpush1.bf16.xpose.msra.mxu1 %v5626_v15  ;;  %v3393_v15 = vld [vmem:[#allocation4 + $0x18] sm:$0xff]  ;;  %v5707_v58 = vpack.c.bf16 %v3886_v36, %v3885_v49 }
 0x754   :  { %5628 = vmatprep.subr.bf16.mxu1 %v6360_v31  ;;  %5660 = vmatpush3.bf16.msra.mxu0 %v5659_v14  ;;  %v3970_v49 = vld [vmem:[#allocation4 + $0x1f8] sm:$0xff] }
 0x755   :  { %5661 = vmatprep.subr.bf16.mxu0 %v6360_v31 }
 0x758   :  { %5663 = vmatpush3.bf16.msra.mxu0 %v5662_v41  ;;  %v3800_v41 = vld [vmem:[#allocation4 + $0x148] sm:$0xff] }
 0x759   :  { %5676 = vmatprep.subr.bf16.mxu0 %v6360_v31 }
 0x75a   :  { %3310 = vmatmul.mubr.f32.vlgmr.msra.gmra.mrb[16].mxu1 %v3140_v45 }
 0x75b   :  { %4843 = vmatprep.mubr.msk.f32.mxu1 %vm3172_vm15, %v3143_v22  ;;  %5630 = vmatpush3.bf16.msra.mxu1 %v5629_v19  ;;  %v5644_v22 = vpack.c.bf16 %v3393_v15, %v3392_v48  ;;  %v5689_v48 = vpack.c.bf16 %v3800_v41, %v3799_v52  ;;  %v3801_v15 = vld [vmem:[#allocation4 + $0x150] sm:$0xff] }
 0x75c   :  { %5631 = vmatprep.subr.bf16.mxu1 %v6360_v31 }
 0x75e   :  { %3315 = vmatmul.mubr.f32.gmra.mrb[18].mxu1 %v3142_v11  ;;  %v3395_v11 = vld [vmem:[#allocation4 + $0x28] sm:$0xff] }
 0x75f   :  { %4844 = vmatprep.mubr.msk.f32.mxu1 %vm3172_vm15, %v3145_v60  ;;  %5633 = vmatpush3.bf16.msra.mxu1 %v5632_v17  ;;  %v3719_v17 = vld [vmem:[#allocation4 + $0x110] sm:$0xff]  ;;  %v3720_v60 = vld [vmem:[#allocation4 + $0x118] sm:$0xff] }
 0x760   :  { %5634 = vmatprep.subr.bf16.mxu1 %v6360_v31 }
 0x762   :  { %3320 = vmatmul.mubr.f32.gmra.mrb[20].mxu1 %v3144_v43  ;;  %v5647_v43 = vpack.c.bf16 %v3395_v11, %v3394_v20  ;;  %v3803_v11 = vld [vmem:[#allocation4 + $0x160] sm:$0xff] }
 0x763   :  { %4845 = vmatprep.mubr.msk.f32.mxu1 %vm3172_vm15, %v3147_v7  ;;  %5636 = vmatpush3.bf16.msra.mxu1 %v5635_v18  ;;  %v3396_v18 = vld [vmem:[#allocation4 + $0x30] sm:$0xff]  ;;  %v5680_v7 = vpack.c.bf16 %v3720_v60, %v3719_v17  ;;  %v3804_v17 = vld [vmem:[#allocation4 + $0x168] sm:$0xff] }
 0x764   :  { %5637 = vmatprep.subr.bf16.mxu1 %v6360_v31 }
 0x766   :  { %3325 = vmatmul.mubr.f32.gmra.mrb[22].mxu1 %v3146_v53  ;;  %v3722_v53 = vld [vmem:[#allocation4 + $0x128] sm:$0xff] }
 0x767   :  { %4846 = vmatprep.mubr.msk.f32.mxu1 %vm3172_vm15, %v3149_v4  ;;  %5639 = vmatpush3.bf16.msra.mxu1 %v5638_v6 }
 0x768   :  { %5640 = vmatprep.subr.bf16.mxu1 %v6360_v31 }
 0x76a   :  { %3330 = vmatmul.mubr.f32.gmra.mrb[24].mxu1 %v3148_v0  ;;  %v5650_v0 = vpack.c.bf16 %v3397_v28, %v3396_v18  ;;  %v3805_v28 = vld [vmem:[#allocation4 + $0x170] sm:$0xff] }
 0x76b   :  { %4847 = vmatprep.mubr.msk.f32.mxu1 %vm3172_vm15, %v3151_v27  ;;  %v5683_v27 = vpack.c.bf16 %v3722_v53, %v3721_v50  ;;  %v3806_v50 = vld [vmem:[#allocation4 + $0x178] sm:$0xff] }
 0x76e   :  { %3335 = vmatmul.mubr.f32.gmra.mrb[26].mxu1 %v3150_v25  ;;  %v3635_v25 = vld [vmem:[#allocation4 + $0xc0] sm:$0xff] }
 0x76f   :  { %4848 = vmatprep.mubr.msk.f32.mxu1 %vm3172_vm15, %v3153_v12  ;;  %v3636_v12 = vld [vmem:[#allocation4 + $0xc8] sm:$0xff] }
 0x772   :  { %3340 = vmatmul.mubr.f32.gmra.mrb[28].mxu1 %v3152_v5  ;;  %v3723_v5 = vld [vmem:[#allocation4 + $0x130] sm:$0xff] }
 0x773   :  { %4849 = vmatprep.mubr.msk.f32.mxu1 %vm3172_vm15, %v3155_v24  ;;  %v3724_v24 = vld [vmem:[#allocation4 + $0x138] sm:$0xff] }
 0x776   :  { %3345 = vmatmul.mubr.f32.gmra.mrb[30].mxu1 %v3154_v51 }
 0x777   :  { %4850 = vmatprep.mubr.msk.f32.mxu1 %vm3172_vm15, %v3157_v9 }
 0x77a   :  { %3350 = vmatmul.mubr.f32.gmra.mrb[32].mxu1 %v3156_v42  ;;  %v5665_v42 = vpack.c.bf16 %v3636_v12, %v3635_v25  ;;  %v5698_v25 = vpack.c.bf16 %v3806_v50, %v3805_v28  ;;  %v3963_v12 = vld [vmem:[#allocation4 + $0x1c0] sm:$0xff] }
 0x77b   :  { %4851 = vmatprep.mubr.msk.f32.mxu1 %vm3172_vm15, %v3159_v33  ;;  %v3637_v33 = vld [vmem:[#allocation4 + $0xd0] sm:$0xff]  ;;  %v4377_v50 = vld [vmem:[#allocation4 + $0x320] sm:$0xff] }
 0x77e   :  { %3355 = vmatmul.mubr.f32.gmra.mrb[34].mxu1 %v3158_v46  ;;  %v3638_v46 = vld [vmem:[#allocation4 + $0xd8] sm:$0xff] }
 0x77f   :  { %4852 = vmatprep.mubr.msk.f32.mxu1 %vm3172_vm15, %v3161_v55  ;;  %v5686_v55 = vpack.c.bf16 %v3724_v24, %v3723_v5  ;;  %v3964_v5 = vld [vmem:[#allocation4 + $0x1c8] sm:$0xff] }
 0x782   :  { %3360 = vmatmul.mubr.f32.gmra.mrb[36].mxu1 %v3160_v23  ;;  %v3881_v23 = vld [vmem:[#allocation4 + $0x180] sm:$0xff] }
 0x783   :  { %4853 = vmatprep.mubr.msk.f32.mxu1 %vm3172_vm15, %v3163_v34  ;;  %v3882_v34 = vld [vmem:[#allocation4 + $0x188] sm:$0xff] }
 0x786   :  { %3365 = vmatmul.mubr.f32.gmra.mrb[38].mxu1 %v3162_v38 }
 0x787   :  { %4854 = vmatprep.mubr.msk.f32.mxu1 %vm3172_vm15, %v3165_v54 }
 0x78a   :  { %3370 = vmatmul.mubr.f32.gmra.mrb[40].mxu1 %v3164_v44  ;;  %v5668_v44 = vpack.c.bf16 %v3638_v46, %v3637_v33  ;;  %v5713_v46 = vpack.c.bf16 %v3964_v5, %v3963_v12  ;;  %v4380_v12 = vld [vmem:[#allocation4 + $0x338] sm:$0xff] }
 0x78b   :  { %4855 = vmatprep.mubr.msk.f32.mxu1 %vm3172_vm15, %v3167_v29  ;;  %v3639_v29 = vld [vmem:[#allocation4 + $0xe0] sm:$0xff] }
 0x78e   :  { %3375 = vmatmul.mubr.f32.gmra.mrb[42].mxu1 %v3166_v2  ;;  %v3640_v2 = vld [vmem:[#allocation4 + $0xe8] sm:$0xff] }
 0x78f   :  { %4856 = vmatprep.mubr.msk.f32.mxu1 %vm3172_vm15, %v3169_v35  ;;  %v5701_v35 = vpack.c.bf16 %v3882_v34, %v3881_v23  ;;  %v5671_v56 = vpack.c.bf16 %v3640_v2, %v3639_v29  ;;  %v3966_v23 = vld [vmem:[#allocation4 + $0x1d8] sm:$0xff] }
 0x792   :  { %3380 = vmatmul.mubr.f32.gmra.mrb[44].mxu1 %v3168_v8  ;;  %v3883_v8 = vld [vmem:[#allocation4 + $0x190] sm:$0xff] }
 0x793   :  { %4857 = vmatprep.mubr.msk.f32.mxu1 %vm3172_vm15, %v3171_v21  ;;  %v3884_v21 = vld [vmem:[#allocation4 + $0x198] sm:$0xff] }
 0x794   :  { %v5704_v61 = vpack.c.bf16 %v3884_v21, %v3883_v8  ;;  %v3967_v8 = vld [vmem:[#allocation4 + $0x1e0] sm:$0xff]  ;;  %v3968_v21 = vld [vmem:[#allocation4 + $0x1e8] sm:$0xff] }
 0x796   :  { %3385 = vmatmul.mubr.f32.gmra.mrb[46].mxu1 %v3170_v40 }
 0x797   :  { %5053 = vmatprep.mubr.msk.f32.mxu1 %vm6361_vm1, %v6359_v3 }
 0x82d   :  { %v3311_v63 = vpop.f32.mrb[16].mxu1 }
 0x82e   :  { %v3313_v57 = vpop.f32.mrb[17].mxu1 }
 0x831   :  { %v3316_v45 = vpop.f32.mrb[18].mxu1 }
 0x832   :  { %v3318_v19 = vpop.f32.mrb[19].mxu1  ;;  %5054 = vmatmul.mubr.msk.f32.vlgmr.msra.gmra.mrb[48].mxu1 %vm3406_vm2, %v3316_v45  ;;  %v4045_v45 = vld [vmem:[#allocation4 + $0x200] sm:$0xff] }
 0x833   :  { %5642 = vmatpush3.bf16.msra.mxu1 %v5641_v59  ;;  %5072 = vmatprep.mubr.msk.f32.mxu1 %vm6361_vm1, %v6359_v3  ;;  %v4046_v19 = vld [vmem:[#allocation4 + $0x208] sm:$0xff] }
 0x834   :  { %5643 = vmatprep.subr.bf16.mxu1 %v6360_v31  ;;  %v5725_v60 = vpack.c.bf16 %v4046_v19, %v4045_v45  ;;  %v4373_v19 = vld [vmem:[#allocation4 + $0x300] sm:$0xff] }
 0x835   :  { %v3321_v32 = vpop.f32.mrb[20].mxu1 }
 0x836   :  { %5092 = vmatmul.mubr.msk.f32.vlgmr.msra.gmra.mrb[8].mxu0 %vm3406_vm2, %v3321_v32  ;;  %v3323_v1 = vpop.f32.mrb[21].mxu1  ;;  %v4047_v32 = vld [vmem:[#allocation4 + $0x210] sm:$0xff] }
 0x837   :  { %5645 = vmatpush3.bf16.msra.mxu1 %v5644_v22  ;;  %5678 = vmatpush3.bf16.msra.mxu0 %v5677_v62  ;;  %v5692_v62 = vpack.c.bf16 %v3802_v37, %v3801_v15  ;;  %v4048_v1 = vld [vmem:[#allocation4 + $0x218] sm:$0xff]  ;;  %v4129_v37 = vld [vmem:[#allocation4 + $0x250] sm:$0xff] }
 0x838   :  { %5646 = vmatprep.subr.bf16.mxu1 %v6360_v31  ;;  %5679 = vmatprep.subr.bf16.mxu0 %v6360_v31  ;;  %v5728_v53 = vpack.c.bf16 %v4048_v1, %v4047_v32  ;;  %v4375_v32 = vld [vmem:[#allocation4 + $0x310] sm:$0xff]  ;;  %v4376_v1 = vld [vmem:[#allocation4 + $0x318] sm:$0xff] }
 0x839   :  { %v8962_v6 = vpop.f32.mrb[22].mxu1  ;;  %5129 = vmatprep.mubr.msk.f32.mxu0 %vm6361_vm1, %v6359_v3  ;;  %v5776_v28 = vpack.c.bf16 %v4376_v1, %v4375_v32  ;;  %v4712_v1 = vld [vmem:[%s9162_s9 + $0x10] sm:$0xff] }
 0x83a   :  { %v3328_v4 = vpop.f32.mrb[23].mxu1 }
 0x83b   :  { %5648 = vmatpush3.bf16.msra.mxu1 %v5647_v43  ;;  %5681 = vmatpush3.bf16.msra.mxu0 %v5680_v7  ;;  %v5695_v7 = vpack.c.bf16 %v3804_v17, %v3803_v11  ;;  %v4050_v4 = vld [vmem:[#allocation4 + $0x228] sm:$0xff]  ;;  %v4131_v11 = vld [vmem:[#allocation4 + $0x260] sm:$0xff] }
 0x83c   :  { %5649 = vmatprep.subr.bf16.mxu1 %v6360_v31  ;;  %5682 = vmatprep.subr.bf16.mxu0 %v6360_v31  ;;  %v4132_v17 = vld [vmem:[#allocation4 + $0x268] sm:$0xff] }
 0x83d   :  { %v3331_v51 = vpop.f32.mrb[24].mxu1 }
 0x83e   :  { %v3333_v9 = vpop.f32.mrb[25].mxu1 }
 0x83f   :  { %5651 = vmatpush3.bf16.msra.mxu1 %v5650_v0  ;;  %5684 = vmatpush3.bf16.msra.mxu0 %v5683_v27  ;;  %v4052_v9 = vld [vmem:[#allocation4 + $0x238] sm:$0xff] }
 0x840   :  { %5664 = vmatprep.subr.bf16.mxu1 %v6360_v31  ;;  %5685 = vmatprep.subr.bf16.mxu0 %v6360_v31 }
 0x841   :  { %v8970_v38 = vpop.f32.mrb[26].mxu1 }
 0x842   :  { %5073 = vmatmul.mubr.msk.f32.vlgmr.msra.gmra.mrb[50].mxu1 %vm3406_vm2, %v3311_v63  ;;  %v3338_v54 = vpop.f32.mrb[27].mxu1  ;;  %v3888_v63 = vld [vmem:[#allocation4 + $0x1b8] sm:$0xff] }
 0x843   :  { %5666 = vmatpush3.bf16.msra.mxu1 %v5665_v42  ;;  %5110 = vmatprep.mubr.msk.f32.mxu1 %vm6361_vm1, %v6359_v3  ;;  %v5710_v26 = vpack.c.bf16 %v3888_v63, %v3887_v10  ;;  %v4209_v54 = vld [vmem:[#allocation4 + $0x280] sm:$0xff]  ;;  %v4128_v63 = vld [vmem:[#allocation4 + $0x248] sm:$0xff] }
 0x844   :  { %5667 = vmatprep.subr.bf16.mxu1 %v6360_v31  ;;  %5687 = vmatpush3.bf16.msra.mxu0 %v5686_v55  ;;  %v3965_v55 = vld [vmem:[#allocation4 + $0x1d0] sm:$0xff]  ;;  %v4127_v10 = vld [vmem:[#allocation4 + $0x240] sm:$0xff] }
 0x845   :  { %5700 = vmatprep.subr.bf16.mxu0 %v6360_v31  ;;  %v3341_v40 = vpop.f32.mrb[28].mxu1  ;;  %v5737_v15 = vpack.c.bf16 %v4128_v63, %v4127_v10  ;;  %v4459_v10 = vld [vmem:[#allocation4 + $0x360] sm:$0xff]  ;;  %v4460_v63 = vld [vmem:[#allocation4 + $0x368] sm:$0xff] }
 0x846   :  { %v3343_v47 = vpop.f32.mrb[29].mxu1 }
 0x847   :  { %5669 = vmatpush3.bf16.msra.mxu1 %v5668_v44  ;;  %5130 = vmatmul.mubr.msk.f32.vlgmr.msra.gmra.mrb[10].mxu0 %vm3406_vm2, %v3331_v51  ;;  %v4051_v51 = vld [vmem:[#allocation4 + $0x230] sm:$0xff]  ;;  %v4210_v44 = vld [vmem:[#allocation4 + $0x288] sm:$0xff] }
 0x848   :  { %5670 = vmatprep.subr.bf16.mxu1 %v6360_v31  ;;  %5702 = vmatpush3.bf16.msra.mxu0 %v5701_v35  ;;  %v5734_v34 = vpack.c.bf16 %v4052_v9, %v4051_v51  ;;  %v5716_v35 = vpack.c.bf16 %v3966_v23, %v3965_v55  ;;  %v4211_v47 = vld [vmem:[#allocation4 + $0x290] sm:$0xff]  ;;  %v4294_v51 = vld [vmem:[#allocation4 + $0x2d8] sm:$0xff]  ;;  %v4295_v23 = vld [vmem:[#allocation4 + $0x2e0] sm:$0xff] }
 0x849   :  { %5703 = vmatprep.subr.bf16.mxu0 %v6360_v31  ;;  %5167 = vmatprep.mubr.msk.f32.mxu0 %vm6361_vm1, %v6359_v3  ;;  %v8982_v13 = vpop.f32.mrb[30].mxu1 }
 0x84a   :  { %v3348_v14 = vpop.f32.mrb[31].mxu1 }
 0x84b   :  { %5672 = vmatpush3.bf16.msra.mxu1 %v5671_v56  ;;  %v4212_v56 = vld [vmem:[#allocation4 + $0x298] sm:$0xff]  ;;  %v4213_v14 = vld [vmem:[#allocation4 + $0x2a0] sm:$0xff] }
 0x84c   :  { %5673 = vmatprep.subr.bf16.mxu1 %v6360_v31  ;;  %5705 = vmatpush3.bf16.msra.mxu0 %v5704_v61  ;;  %v3969_v61 = vld [vmem:[#allocation4 + $0x1f0] sm:$0xff]  ;;  %v5752_v36 = vpack.c.bf16 %v4212_v56, %v4211_v47  ;;  %v4542_v47 = vld [vmem:[#allocation4 + $0x3a8] sm:$0xff] }
 0x84d   :  { %5706 = vmatprep.subr.bf16.mxu0 %v6360_v31  ;;  %v8986_v57 = vpop.f32.mrb[32].mxu1 }
 0x84e   :  { %v3353_v59 = vpop.f32.mrb[33].mxu1 }
 0x84f   :  { %5675 = vmatpush3.bf16.msra.mxu1 %v5674_v39  ;;  %v4214_v39 = vld [vmem:[#allocation4 + $0x2a8] sm:$0xff]  ;;  %v4215_v59 = vld [vmem:[#allocation4 + $0x2b0] sm:$0xff] }
 0x850   :  { %5688 = vmatprep.subr.bf16.mxu1 %v6360_v31  ;;  %5708 = vmatpush3.bf16.msra.mxu0 %v5707_v58  ;;  %v5722_v58 = vpack.c.bf16 %v3970_v49, %v3969_v61  ;;  %v4543_v61 = vld [vmem:[#allocation4 + $0x3b0] sm:$0xff]  ;;  %v4544_v49 = vld [vmem:[#allocation4 + $0x3b8] sm:$0xff] }
 0x851   :  { %5709 = vmatprep.subr.bf16.mxu0 %v6360_v31  ;;  %v8990_v22 = vpop.f32.mrb[34].mxu1 }
 0x852   :  { %5111 = vmatmul.mubr.msk.f32.vlgmr.msra.gmra.mrb[52].mxu1 %vm3406_vm2, %v8962_v6  ;;  %v3358_v20 = vpop.f32.mrb[35].mxu1  ;;  %v4049_v6 = vld [vmem:[#allocation4 + $0x220] sm:$0xff] }
 0x853   :  { %5690 = vmatpush3.bf16.msra.mxu1 %v5689_v48  ;;  %5148 = vmatprep.mubr.msk.f32.mxu1 %vm6361_vm1, %v6359_v3  ;;  %v5731_v24 = vpack.c.bf16 %v4050_v4, %v4049_v6  ;;  %v4216_v48 = vld [vmem:[#allocation4 + $0x2b8] sm:$0xff]  ;;  %v4374_v20 = vld [vmem:[#allocation4 + $0x308] sm:$0xff]  ;;  %v4291_v4 = vld [vmem:[#allocation4 + $0x2c0] sm:$0xff] }
 0x854   :  { %5691 = vmatprep.subr.bf16.mxu1 %v6360_v31  ;;  %5711 = vmatpush3.bf16.msra.mxu0 %v5710_v26  ;;  %v4130_v26 = vld [vmem:[#allocation4 + $0x258] sm:$0xff]  ;;  %v5758_v45 = vpack.c.bf16 %v4216_v48, %v4215_v59 }
 0x855   :  { %5724 = vmatprep.subr.bf16.mxu0 %v6360_v31  ;;  %v8998_v43 = vpop.f32.mrb[36].mxu1  ;;  %v4462_v59 = vld [vmem:[#allocation4 + $0x378] sm:$0xff] }
 0x856   :  { %v3363_v18 = vpop.f32.mrb[37].mxu1 }
 0x857   :  { %5693 = vmatpush3.bf16.msra.mxu1 %v5692_v62  ;;  %5168 = vmatmul.mubr.msk.f32.vlgmr.msra.gmra.mrb[12].mxu0 %vm3406_vm2, %v3341_v40  ;;  %v5749_v40 = vpack.c.bf16 %v4210_v44, %v4209_v54  ;;  %v5740_v62 = vpack.c.bf16 %v4130_v26, %v4129_v37  ;;  %v5743_v18 = vpack.c.bf16 %v4132_v17, %v4131_v11  ;;  %v4539_v44 = vld [vmem:[#allocation4 + $0x390] sm:$0xff]  ;;  %v4620_v37 = vld [vmem:[#allocation4 + $0x3c8] sm:$0xff] }
 0x858   :  { %5694 = vmatprep.subr.bf16.mxu1 %v6360_v31  ;;  %5726 = vmatpush3.bf16.msra.mxu0 %v5725_v60  ;;  %v5773_v60 = vpack.c.bf16 %v4374_v20, %v4373_v19  ;;  %v4622_v19 = vld [vmem:[#allocation4 + $0x3d8] sm:$0xff]  ;;  %v4623_v20 = vld [vmem:[#allocation4 + $0x3e0] sm:$0xff]  ;;  %v4625_v17 = vld [vmem:[#allocation4 + $0x3f0] sm:$0xff] }
 0x859   :  { %5727 = vmatprep.subr.bf16.mxu0 %v6360_v31  ;;  %5205 = vmatprep.mubr.msk.f32.mxu0 %vm6361_vm1, %v6359_v3  ;;  %v9005_v0 = vpop.f32.mrb[38].mxu1 }
 0x85a   :  { %v3368_v27 = vpop.f32.mrb[39].mxu1 }
 0x85b   :  { %5696 = vmatpush3.bf16.msra.mxu1 %v5695_v7  ;;  %v4134_v7 = vld [vmem:[#allocation4 + $0x278] sm:$0xff]  ;;  %v4292_v27 = vld [vmem:[#allocation4 + $0x2c8] sm:$0xff] }
 0x85c   :  { %5697 = vmatprep.subr.bf16.mxu1 %v6360_v31  ;;  %5729 = vmatpush3.bf16.msra.mxu0 %v5728_v53  ;;  %v4378_v53 = vld [vmem:[#allocation4 + $0x328] sm:$0xff]  ;;  %v5761_v5 = vpack.c.bf16 %v4292_v27, %v4291_v4  ;;  %v4718_v27 = vld [vmem:[%s9162_s9 + $0x40] sm:$0xff] }
 0x85d   :  { %5730 = vmatprep.subr.bf16.mxu0 %v6360_v31  ;;  %v9009_v42 = vpop.f32.mrb[40].mxu1 }
 0x85e   :  { %v3373_v33 = vpop.f32.mrb[41].mxu1 }
 0x85f   :  { %5699 = vmatpush3.bf16.msra.mxu1 %v5698_v25  ;;  %v4379_v25 = vld [vmem:[#allocation4 + $0x330] sm:$0xff]  ;;  %v4537_v33 = vld [vmem:[#allocation4 + $0x380] sm:$0xff] }
 0x860   :  { %5712 = vmatprep.subr.bf16.mxu1 %v6360_v31  ;;  %5732 = vmatpush3.bf16.msra.mxu0 %v5731_v24  ;;  %v4293_v24 = vld [vmem:[#allocation4 + $0x2d0] sm:$0xff]  ;;  %v5782_v9 = vpack.c.bf16 %v4380_v12, %v4379_v25  ;;  %v4720_v12 = vld [vmem:[%s9162_s9 + $0x50] sm:$0xff] }
 0x861   :  { %5733 = vmatprep.subr.bf16.mxu0 %v6360_v31  ;;  %v9013_v29 = vpop.f32.mrb[42].mxu1  ;;  %v5764_v55 = vpack.c.bf16 %v4294_v51, %v4293_v24  ;;  %v4722_v51 = vld [vmem:[%s9162_s9 + $0x60] sm:$0xff] }
 0x862   :  { %5149 = vmatmul.mubr.msk.f32.vlgmr.msra.gmra.mrb[54].mxu1 %vm3406_vm2, %v8970_v38  ;;  %v3378_v2 = vpop.f32.mrb[43].mxu1  ;;  %v5719_v38 = vpack.c.bf16 %v3968_v21, %v3967_v8  ;;  %v4298_v8 = vld [vmem:[#allocation4 + $0x2f8] sm:$0xff] }
 0x863   :  { %5714 = vmatpush3.bf16.msra.mxu1 %v5713_v46  ;;  %5186 = vmatprep.mubr.msk.f32.mxu1 %vm6361_vm1, %v6359_v3  ;;  %v4538_v46 = vld [vmem:[#allocation4 + $0x388] sm:$0xff]  ;;  %v4540_v2 = vld [vmem:[#allocation4 + $0x398] sm:$0xff] }
 0x864   :  { %5715 = vmatprep.subr.bf16.mxu1 %v6360_v31  ;;  %5735 = vmatpush3.bf16.msra.mxu0 %v5734_v34  ;;  %v4296_v34 = vld [vmem:[#allocation4 + $0x2e8] sm:$0xff]  ;;  %v5797_v54 = vpack.c.bf16 %v4538_v46, %v4537_v33  ;;  %v5800_v21 = vpack.c.bf16 %v4540_v2, %v4539_v44 }
 0x865   :  { %5748 = vmatprep.subr.bf16.mxu0 %v6360_v31  ;;  %v9021_v30 = vpop.f32.mrb[44].mxu1 }
 0x866   :  { %v3383_v16 = vpop.f32.mrb[45].mxu1 }
 0x867   :  { %5717 = vmatpush3.bf16.msra.mxu1 %v5716_v35  ;;  %5206 = vmatmul.mubr.msk.f32.vlgmr.msra.gmra.mrb[14].mxu0 %vm3406_vm2, %v8986_v57  ;;  %v5755_v57 = vpack.c.bf16 %v4214_v39, %v4213_v14  ;;  %v5767_v35 = vpack.c.bf16 %v4296_v34, %v4295_v23  ;;  %v4455_v16 = vld [vmem:[#allocation4 + $0x340] sm:$0xff]  ;;  %v4457_v14 = vld [vmem:[#allocation4 + $0x350] sm:$0xff]  ;;  %v4458_v39 = vld [vmem:[#allocation4 + $0x358] sm:$0xff] }
 0x868   :  { %5718 = vmatprep.subr.bf16.mxu1 %v6360_v31  ;;  %5750 = vmatpush3.bf16.msra.mxu0 %v5749_v40  ;;  %v4541_v40 = vld [vmem:[#allocation4 + $0x3a0] sm:$0xff]  ;;  %v4725_v34 = vld [vmem:[%s9162_s9 + $0x78] sm:$0xff] }
 0x869   :  { %5751 = vmatprep.subr.bf16.mxu0 %v6360_v31  ;;  %5243 = vmatprep.mubr.msk.f32.mxu0 %vm6361_vm1, %v6359_v3  ;;  %v9029_v52 = vpop.f32.mrb[46].mxu1  ;;  %v4724_v23 = vld [vmem:[%s9162_s9 + $0x70] sm:$0xff] }
 0x86a   :  { %v3388_v41 = vpop.f32.mrb[47].mxu1 }
 0x86b   :  { %5720 = vmatpush3.bf16.msra.mxu1 %v5719_v38  ;;  %v4456_v38 = vld [vmem:[#allocation4 + $0x348] sm:$0xff]  ;;  %v5806_v41 = vpack.c.bf16 %v4544_v49, %v4543_v61 }
 0x86c   :  { %5721 = vmatprep.subr.bf16.mxu1 %v6360_v31  ;;  %5753 = vmatpush3.bf16.msra.mxu0 %v5752_v36  ;;  %v5785_v36 = vpack.c.bf16 %v4456_v38, %v4455_v16 }
 0x86d   :  { %5754 = vmatprep.subr.bf16.mxu0 %v6360_v31 }
 0x86f   :  { %5723 = vmatpush3.bf16.msra.mxu1 %v5722_v58  ;;  %v5788_v58 = vpack.c.bf16 %v4458_v39, %v4457_v14 }
 0x870   :  { %5736 = vmatprep.subr.bf16.mxu1 %v6360_v31  ;;  %5756 = vmatpush3.bf16.msra.mxu0 %v5755_v57  ;;  %v5791_v57 = vpack.c.bf16 %v4460_v63, %v4459_v10 }
 0x871   :  { %5757 = vmatprep.subr.bf16.mxu0 %v6360_v31 }
 0x872   :  { %5187 = vmatmul.mubr.msk.f32.vlgmr.msra.gmra.mrb[56].mxu1 %vm3406_vm2, %v8982_v13  ;;  %v4133_v13 = vld [vmem:[#allocation4 + $0x270] sm:$0xff] }
 0x873   :  { %5738 = vmatpush3.bf16.msra.mxu1 %v5737_v15  ;;  %5224 = vmatprep.mubr.msk.f32.mxu1 %vm6361_vm1, %v6359_v3  ;;  %v5746_v6 = vpack.c.bf16 %v4134_v7, %v4133_v13  ;;  %v4619_v15 = vld [vmem:[#allocation4 + $0x3c0] sm:$0xff]  ;;  %v4713_v13 = vld [vmem:[%s9162_s9 + $0x18] sm:$0xff] }
 0x874   :  { %5739 = vmatprep.subr.bf16.mxu1 %v6360_v31  ;;  %5759 = vmatpush3.bf16.msra.mxu0 %v5758_v45  ;;  %v5809_v26 = vpack.c.bf16 %v4620_v37, %v4619_v15  ;;  %v4621_v45 = vld [vmem:[#allocation4 + $0x3d0] sm:$0xff]  ;;  %v5824_v7 = vpack.c.bf16 %v4713_v13, %v4712_v1 }
 0x875   :  { %5772 = vmatprep.subr.bf16.mxu0 %v6360_v31 }
 0x877   :  { %5741 = vmatpush3.bf16.msra.mxu1 %v5740_v62  ;;  %5244 = vmatmul.mubr.msk.f32.vlgmr.msra.gmra.mrb[16].mxu0 %vm3406_vm2, %v8998_v43  ;;  %v5779_v43 = vpack.c.bf16 %v4378_v53, %v4377_v50  ;;  %v4624_v62 = vld [vmem:[#allocation4 + $0x3e8] sm:$0xff]  ;;  %v4716_v53 = vld [vmem:[%s9162_s9 + $0x30] sm:$0xff] }
 0x878   :  { %5742 = vmatprep.subr.bf16.mxu1 %v6360_v31  ;;  %5774 = vmatpush3.bf16.msra.mxu0 %v5773_v60  ;;  %v5815_v11 = vpack.c.bf16 %v4624_v62, %v4623_v20  ;;  %v4626_v60 = vld [vmem:[#allocation4 + $0x3f8] sm:$0xff] }
 0x879   :  { %5775 = vmatprep.subr.bf16.mxu0 %v6360_v31  ;;  %5281 = vmatprep.mubr.msk.f32.mxu0 %vm6361_vm1, %v6359_v3  ;;  %v5818_v32 = vpack.c.bf16 %v4626_v60, %v4625_v17 }
 0x87b   :  { %5744 = vmatpush3.bf16.msra.mxu1 %v5743_v18 }
 0x87c   :  { %5745 = vmatprep.subr.bf16.mxu1 %v6360_v31  ;;  %5777 = vmatpush3.bf16.msra.mxu0 %v5776_v28  ;;  %v4715_v28 = vld [vmem:[%s9162_s9 + $0x28] sm:$0xff] }
 0x87d   :  { %5778 = vmatprep.subr.bf16.mxu0 %v6360_v31 }
 0x87f   :  { %5747 = vmatpush3.bf16.msra.mxu1 %v5746_v6  ;;  %v4717_v6 = vld [vmem:[%s9162_s9 + $0x38] sm:$0xff] }
 0x880   :  { %5760 = vmatprep.subr.bf16.mxu1 %v6360_v31  ;;  %5780 = vmatpush3.bf16.msra.mxu0 %v5779_v43  ;;  %v5830_v4 = vpack.c.bf16 %v4717_v6, %v4716_v53  ;;  %v4719_v43 = vld [vmem:[%s9162_s9 + $0x48] sm:$0xff]  ;;  %v4875_v6 = vld [vmem:[%s9163_s10] ss:$0 sm:$0xff] }
 0x881   :  { %5781 = vmatprep.subr.bf16.mxu0 %v6360_v31  ;;  %v5833_v25 = vpack.c.bf16 %v4719_v43, %v4718_v27 }
 0x882   :  { %5225 = vmatmul.mubr.msk.f32.vlgmr.msra.gmra.mrb[58].mxu1 %vm3406_vm2, %v8990_v22  ;;  %v4297_v22 = vld [vmem:[#allocation4 + $0x2f0] sm:$0xff] }
 0x883   :  { %5762 = vmatpush3.bf16.msra.mxu1 %v5761_v5  ;;  %5262 = vmatprep.mubr.msk.f32.mxu1 %vm6361_vm1, %v6359_v3  ;;  %v5770_v56 = vpack.c.bf16 %v4298_v8, %v4297_v22  ;;  %v4721_v5 = vld [vmem:[%s9162_s9 + $0x58] sm:$0xff] }
 0x884   :  { %5763 = vmatprep.subr.bf16.mxu1 %v6360_v31  ;;  %5783 = vmatpush3.bf16.msra.mxu0 %v5782_v9  ;;  %v5836_v24 = vpack.c.bf16 %v4721_v5, %v4720_v12  ;;  %v4723_v9 = vld [vmem:[%s9162_s9 + $0x68] sm:$0xff] }
 0x885   :  { %5796 = vmatprep.subr.bf16.mxu0 %v6360_v31  ;;  %v5839_v33 = vpack.c.bf16 %v4723_v9, %v4722_v51 }
 0x887   :  { %5765 = vmatpush3.bf16.msra.mxu1 %v5764_v55  ;;  %5282 = vmatmul.mubr.msk.f32.vlgmr.msra.gmra.mrb[18].mxu0 %vm3406_vm2, %v9009_v42  ;;  %v5803_v42 = vpack.c.bf16 %v4542_v47, %v4541_v40 }
 0x888   :  { %5766 = vmatprep.subr.bf16.mxu1 %v6360_v31  ;;  %5798 = vmatpush3.bf16.msra.mxu0 %v5797_v54  ;;  %v5842_v54 = vpack.c.bf16 %v4725_v34, %v4724_v23 }
 0x889   :  { %5799 = vmatprep.subr.bf16.mxu0 %v6360_v31  ;;  %5319 = vmatprep.mubr.msk.f32.mxu0 %vm6361_vm1, %v6359_v3 }
 0x88b   :  { %5768 = vmatpush3.bf16.msra.mxu1 %v5767_v35 }
 0x88c   :  { %5769 = vmatprep.subr.bf16.mxu1 %v6360_v31  ;;  %5801 = vmatpush3.bf16.msra.mxu0 %v5800_v21 }
 0x88d   :  { %5802 = vmatprep.subr.bf16.mxu0 %v6360_v31 }
 0x88f   :  { %5771 = vmatpush3.bf16.msra.mxu1 %v5770_v56 }
 0x890   :  { %5784 = vmatprep.subr.bf16.mxu1 %v6360_v31  ;;  %5804 = vmatpush3.bf16.msra.mxu0 %v5803_v42 }
 0x891   :  { %5805 = vmatprep.subr.bf16.mxu0 %v6360_v31 }
 0x892   :  { %5263 = vmatmul.mubr.msk.f32.vlgmr.msra.gmra.mrb[60].mxu1 %vm3406_vm2, %v9005_v0  ;;  %v4461_v0 = vld [vmem:[#allocation4 + $0x370] sm:$0xff] }
 0x893   :  { %5786 = vmatpush3.bf16.msra.mxu1 %v5785_v36  ;;  %5300 = vmatprep.mubr.msk.f32.mxu1 %vm6361_vm1, %v6359_v3  ;;  %v5794_v48 = vpack.c.bf16 %v4462_v59, %v4461_v0 }
 0x894   :  { %5787 = vmatprep.subr.bf16.mxu1 %v6360_v31  ;;  %5807 = vmatpush3.bf16.msra.mxu0 %v5806_v41 }
 0x895   :  { %5820 = vmatprep.subr.bf16.mxu0 %v6360_v31 }
 0x897   :  { %5789 = vmatpush3.bf16.msra.mxu1 %v5788_v58  ;;  %5320 = vmatmul.mubr.msk.f32.vlgmr.msra.gmra.mrb[20].mxu0 %vm3406_vm2, %v9021_v30  ;;  %v5812_v30 = vpack.c.bf16 %v4622_v19, %v4621_v45 }
 0x898   :  { %5790 = vmatprep.subr.bf16.mxu1 %v6360_v31  ;;  %5373 = vmatprep.mubr.msk.f32.mxu0 %vm6361_vm1, %v6359_v3 }
 0x89b   :  { %5792 = vmatpush3.bf16.msra.mxu1 %v5791_v57 }
 0x89c   :  { %5793 = vmatprep.subr.bf16.mxu1 %v6360_v31 }
 0x89f   :  { %5795 = vmatpush3.bf16.msra.mxu1 %v5794_v48 }
 0x8a0   :  { %5808 = vmatprep.subr.bf16.mxu1 %v6360_v31 }
 0x8a2   :  { %5301 = vmatmul.mubr.msk.f32.vlgmr.msra.gmra.mrb[62].mxu1 %vm3406_vm2, %v9013_v29  ;;  %v4711_v29 = vld [vmem:[%s9162_s9 + $0x8] sm:$0xff] }
 0x8a3   :  { %5810 = vmatpush3.bf16.msra.mxu1 %v5809_v26  ;;  %5338 = vmatprep.mubr.msk.f32.mxu1 %vm6361_vm1, %v6359_v3  ;;  %v4710_v3 = vld [vmem:[%s9162_s9] sm:$0xff] }
 0x8a4   :  { %5811 = vmatprep.subr.bf16.mxu1 %v6360_v31  ;;  %v5821_v18 = vpack.c.bf16 %v4711_v29, %v4710_v3 }
 0x8a6   :  { %5822 = vmatpush3.bf16.msra.mxu0 %v5821_v18 }
 0x8a7   :  { %5813 = vmatpush3.bf16.msra.mxu1 %v5812_v30  ;;  %5823 = vmatprep.subr.bf16.mxu0 %v6360_v31 }
 0x8a8   :  { %5814 = vmatprep.subr.bf16.mxu1 %v6360_v31 }
 0x8aa   :  { %5825 = vmatpush3.bf16.msra.mxu0 %v5824_v7  ;;  %v4874_v7 = vld [vmem:[%s9161_s8] ss:$0 sm:$0xff] }
 0x8ab   :  { %5816 = vmatpush3.bf16.msra.mxu1 %v5815_v11  ;;  %5826 = vmatprep.subr.bf16.mxu0 %v6360_v31 }
 0x8ac   :  { %5817 = vmatprep.subr.bf16.mxu1 %v6360_v31 }
 0x8af   :  { %5819 = vmatpush3.bf16.msra.mxu1 %v5818_v32 }
 0x8b2   :  { %5339 = vmatmul.mubr.msk.f32.vlgmr.msra.gmra.mrb[64].mxu1 %vm3406_vm2, %v9029_v52  ;;  %v4714_v52 = vld [vmem:[%s9162_s9 + $0x20] sm:$0xff] }
 0x8b3   :  { %v5827_v50 = vpack.c.bf16 %v4715_v28, %v4714_v52 }
 0x8b5   :  { %5828 = vmatpush3.bf16.msra.mxu0 %v5827_v50 }
 0x8b6   :  { %5829 = vmatprep.subr.bf16.mxu0 %v6360_v31 }
 0x8b9   :  { %5831 = vmatpush3.bf16.msra.mxu0 %v5830_v4 }
 0x8ba   :  { %5832 = vmatprep.subr.bf16.mxu0 %v6360_v31 }
 0x8bd   :  { %5834 = vmatpush3.bf16.msra.mxu0 %v5833_v25 }
 0x8be   :  { %5835 = vmatprep.subr.bf16.mxu0 %v6360_v31 }
 0x8c1   :  { %5837 = vmatpush3.bf16.msra.mxu0 %v5836_v24 }
 0x8c2   :  { %5838 = vmatprep.subr.bf16.mxu0 %v6360_v31 }
 0x8c5   :  { %5840 = vmatpush3.bf16.msra.mxu0 %v5839_v33 }
 0x8c6   :  { %5841 = vmatprep.subr.bf16.mxu0 %v6360_v31 }
 0x8c9   :  { %5843 = vmatpush3.bf16.msra.mxu0 %v5842_v54 }
 0x905   :  { %v3476_v46 = vpop.f32.mrb[48].mxu1 }
 0x906   :  { %v5055_v55 = vpop.f32.mrb[49].mxu1 }
 0x909   :  { %v3630_v44 = vpop.f32.mrb[8].mxu0 }
 0x90a   :  { %v5093_v2 = vpop.f32.mrb[9].mxu0 }
 0x915   :  { %v3549_v35 = vpop.f32.mrb[50].mxu1 }
 0x916   :  { %v3550_v22 = vadd.f32 %v3549_v35, %v3476_v46  ;;  %v5074_v8 = vpop.f32.mrb[51].mxu1 }
 0x918   :  { %v3634_v21 = vadd.f32 %v3630_v44, %v3550_v22 }
 0x91a   :  { %v3794_v40 = vpop.f32.mrb[10].mxu0 }
 0x91b   :  { %v5131_v47 = vpop.f32.mrb[11].mxu0 }
 0x925   :  { %v3712_v56 = vpop.f32.mrb[52].mxu1 }
 0x926   :  { %v3716_v31 = vadd.f32 %v3712_v56, %v3634_v21  ;;  %v5112_v16 = vpop.f32.mrb[53].mxu1 }
 0x928   :  { %v3798_v38 = vadd.f32 %v3794_v40, %v3716_v31 }
 0x92a   :  { %v3958_v42 = vpop.f32.mrb[12].mxu0 }
 0x92b   :  { %v5169_v61 = vpop.f32.mrb[13].mxu0 }
 0x935   :  { %v3876_v49 = vpop.f32.mrb[54].mxu1 }
 0x936   :  { %v3880_v36 = vadd.f32 %v3876_v49, %v3798_v38  ;;  %v5150_v14 = vpop.f32.mrb[55].mxu1 }
 0x938   :  { %v3962_v39 = vadd.f32 %v3958_v42, %v3880_v36 }
 0x93a   :  { %v4122_v41 = vpop.f32.mrb[14].mxu0 }
 0x93b   :  { %v5207_v58 = vpop.f32.mrb[15].mxu0 }
 0x945   :  { %v4040_v10 = vpop.f32.mrb[56].mxu1 }
 0x946   :  { %v4044_v63 = vadd.f32 %v4040_v10, %v3962_v39  ;;  %v5188_v57 = vpop.f32.mrb[57].mxu1 }
 0x948   :  { %v4126_v0 = vadd.f32 %v4122_v41, %v4044_v63 }
 0x94a   :  { %v4286_v59 = vpop.f32.mrb[16].mxu0 }
 0x94b   :  { %v5245_v48 = vpop.f32.mrb[17].mxu0 }
 0x955   :  { %v4204_v15 = vpop.f32.mrb[58].mxu1 }
 0x956   :  { %v4208_v37 = vadd.f32 %v4204_v15, %v4126_v0  ;;  %v5226_v26 = vpop.f32.mrb[59].mxu1 }
 0x958   :  { %v4290_v45 = vadd.f32 %v4286_v59, %v4208_v37 }
 0x95a   :  { %v4450_v19 = vpop.f32.mrb[18].mxu0 }
 0x95b   :  { %v5283_v30 = vpop.f32.mrb[19].mxu0 }
 0x965   :  { %v4368_v20 = vpop.f32.mrb[60].mxu1 }
 0x966   :  { %v4372_v62 = vadd.f32 %v4368_v20, %v4290_v45  ;;  %v5264_v11 = vpop.f32.mrb[61].mxu1 }
 0x968   :  { %v4454_v17 = vadd.f32 %v4450_v19, %v4372_v62 }
 0x96a   :  { %v4614_v60 = vpop.f32.mrb[20].mxu0 }
 0x96b   :  { %v5321_v32 = vpop.f32.mrb[21].mxu0 }
 0x975   :  { %v4532_v3 = vpop.f32.mrb[62].mxu1 }
 0x976   :  { %v4536_v29 = vadd.f32 %v4532_v3, %v4454_v17  ;;  %v5302_v1 = vpop.f32.mrb[63].mxu1 }
 0x978   :  { %v4618_v18 = vadd.f32 %v4614_v60, %v4536_v29 }
 0x985   :  { %v4696_v13 = vpop.f32.mrb[64].mxu1 }
 0x986   :  { %v4700_v52 = vadd.f32 %v4696_v13, %v4618_v18  ;;  %v5340_v28 = vpop.f32.mrb[65].mxu1 }
 0x988   :  { %v4708_v50 = vadd.f32 %v4874_v7, %v4700_v52 }
 0x98a   :  { %v4709_v53 = vmax.f32 %v4708_v50, 0.0 }
 0x98c   :  { %5374 = vmatmul.mubr.f32.vlgmr.msra.gmra.mrb[22].mxu0 %v4709_v53 }
 0xa5f   :  { %v4799_v4 = vpop.f32.mrb[22].mxu0 }
 0xa60   :  { %v4800_v27 = vadd.f32 %v4875_v6, %v4799_v4  ;;  %v5375_v43 = vpop.f32.mrb[23].mxu0 }
 0xa62   :  { %4803 = vmax.xlane.f32.xlu1 %v4800_v27 }
 0xaef   :  { %v4804_v25 = vpop.xlane.xlu1 %4803 }
 0xaf0   :  { %v4805_v12 = vsub.f32 %v4800_v27, %v4804_v25 }
 0xaf2   :  { %v4806_v5 = vmul.f32 1.442695, %v4805_v12 }
 0xaf4   :  { %6279 = vpow2.f32 %v4806_v5 }
 0xafe   :  { %v6280_v24 = vpop.eup %6279 }
 0xaff   :  { %4808 = vadd.xlane.f32.xlu0 %v6280_v24 }
 0xb8c   :  { %v4809_v51 = vpop.xlane.xlu0 %4808 }
 0xb8d   :  { %6281 = vrcp.f32 %v4809_v51 }
 0xb97   :  { %v6282_v9 = vpop.eup %6281 }
 0xb98   :  { %v4811_v33 = vmul.f32 %v6282_v9, %v4809_v51 }
 0xb9a   :  { %v4812_v46 = vsub.f32 2.0, %v4811_v33 }
 0xb9c   :  { %v4813_v55 = vmul.f32 %v6282_v9, %v4812_v46 }
 0xb9e   :  { %v4814_v23 = vmul.f32 %v6280_v24, %v4813_v55 }
 0xba0   :  { %4815 = vst [vmem:[%s9164_s11] sm:$0xff] %v4814_v23 }
 0xba1   :  { %4820 = vsyncpa [#allocation3], 1 }
 0xba2   :  { %4821 = vsyncpa [#allocation5], 1 }

</bundles_post_ra>
